<compile_context>
chip_gen: v7x
topology: tpu7x:2x2x1
jax: 0.10.0
libtpu: 0.0.40
codegen_flags: <defaults>
</compile_context>

<pallas_src>
import functools
import math

import jax
import jax.numpy as jnp
from jax.experimental import pallas as pl
from jax.experimental.pallas import tpu as pltpu


# Real trunk output widths (torch.cat order: resnet152, resnet18, densenet161)
C152, C18, CDN = 2048, 512, 2208
S152, S18, SDN = 64, 64, 96                  # synthetic stem widths
COUT_REAL = C152 + C18 + CDN                 # 4768
CDN_PAD = 2304                               # densenet head padded to 18*128
COUT_PAD = C152 + C18 + CDN_PAD              # 4864 = 38*128 (lane dense)
CS_REAL = S152 + S18 + SDN                   # 224
CS_PAD = 256                                 # concatenated stem width, 2*128

KH, KW, STRIDE, PAD = 7, 7, 2, 3
K_REAL = KH * KW * 3                         # 147 im2col contraction
BIAS_LANE = K_REAL                           # lane 147 carries the constant 1.0
KP = 256                                     # padded contraction dim, 2*128


def _round_up(x, m):
    return (x + m - 1) // m * m


def _invariant_spec(block_shape, index_map):
    """Single-buffered BlockSpec for grid-invariant operands (constant
    index_map => double-buffering only wastes VMEM).  Falls back to a plain
    BlockSpec if this JAX build does not support pipeline_mode."""
    try:
        return pl.BlockSpec(block_shape, index_map,
                            pipeline_mode=pl.Buffered(1))
    except Exception:
        return pl.BlockSpec(block_shape, index_map)


# ----------------------------------------------------------------------------
# Kernel 1: fused stems.  relu(patches @ Wstem) accumulated over the spatial
# axis directly into the resident output block (global average pool).
# Grid = (B_pad // b_tile, P_pad // tp); the spatial axis is the reduction.
# Bias is folded into Wstem (row BIAS_LANE) against the constant-1 patch lane,
# so zero-padded spatial rows contribute exactly zero and no fixup is needed.
# ----------------------------------------------------------------------------
def _stem_pool_kernel(p_ref, wc_ref, o_ref, *, inv_p):
    # p_ref:  (b_tile, tp, KP)     bf16 patches tile (lane 147 == 1.0)
    # wc_ref: (KP, CS_PAD)         bf16 fused stem weight (bias in row 147)
    # o_ref:  (b_tile, CS_PAD) f32 pooled output block, resident across p axis
    pid = pl.program_id(1)
    bt, tp, kp = p_ref.shape

    @pl.when(pid == 0)
    def _init():
        o_ref[...] = jnp.zeros_like(o_ref)

    # One MXU GEMM over the whole (batch-tile x spatial-tile) slab.
    h = jnp.dot(p_ref[...].reshape(bt * tp, kp), wc_ref[...],
                preferred_element_type=jnp.float32)
    h = jnp.maximum(h, 0.0)                              # ReLU (bias folded)
    # Single fused per-image spatial reduction: one unmasked (bt, CS) RMW.
    o_ref[...] += jnp.sum(h.reshape(bt, tp, -1), axis=1)

    @pl.when(pid == pl.num_programs(1) - 1)
    def _finalize():
        o_ref[...] *= inv_p                              # global average pool


def stem_pool(patches, wc, *, p_real, b_tile, tp, vmem_limit):
    """patches: [B_pad, P_pad, KP] bf16 -> pooled stems [B_pad, CS_PAD] f32."""
    B, P_pad, kp = patches.shape
    CS = wc.shape[1]
    kernel = functools.partial(_stem_pool_kernel, inv_p=1.0 / float(p_real))

    flops = 2 * B * P_pad * kp * CS
    bytes_accessed = patches.size * 2 + wc.size * 2 + B * CS * 4

    return pl.pallas_call(
        kernel,
        out_shape=jax.ShapeDtypeStruct((B, CS), jnp.float32),
        grid_spec=pltpu.PrefetchScalarGridSpec(
            num_scalar_prefetch=0,
            grid=(B // b_tile, P_pad // tp),
            in_specs=[
                pl.BlockSpec((b_tile, tp, kp), lambda b, p: (b, p, 0)),
                _invariant_spec((kp, CS), lambda b, p: (0, 0)),
            ],
            out_specs=pl.BlockSpec((b_tile, CS), lambda b, p: (b, 0)),
        ),
        compiler_params=pltpu.CompilerParams(
            dimension_semantics=("parallel", "arbitrary"),
            vmem_limit_bytes=vmem_limit),
        cost_estimate=pl.CostEstimate(
            flops=int(flops), transcendentals=0,
            bytes_accessed=int(bytes_accessed)),
    )(patches, wc)


# ----------------------------------------------------------------------------
# Kernel 2: block-diagonal head over the pooled features of the full batch.
# ----------------------------------------------------------------------------
def _head_kernel(pooled_ref, wf_ref, bf_ref, o_ref):
    pooled = pooled_ref[...].astype(wf_ref.dtype)
    o_ref[...] = jnp.dot(pooled, wf_ref[...],
                         preferred_element_type=jnp.float32) + bf_ref[...]


def head_matmul(pooled, wf, bf, *, b_tile, vmem_limit):
    """pooled: [B_pad, CS_PAD] f32 -> features [B_pad, COUT_PAD] f32."""
    B, CS = pooled.shape
    COUT = wf.shape[1]

    flops = 2 * B * CS * COUT
    bytes_accessed = pooled.size * 4 + wf.size * 2 + bf.size * 4 + B * COUT * 4

    return pl.pallas_call(
        _head_kernel,
        out_shape=jax.ShapeDtypeStruct((B, COUT), jnp.float32),
        grid_spec=pltpu.PrefetchScalarGridSpec(
            num_scalar_prefetch=0,
            grid=(B // b_tile,),
            in_specs=[
                pl.BlockSpec((b_tile, CS), lambda i: (i, 0)),
                _invariant_spec((CS, COUT), lambda i: (0, 0)),
                _invariant_spec((1, COUT), lambda i: (0, 0)),
            ],
            out_specs=pl.BlockSpec((b_tile, COUT), lambda i: (i, 0)),
        ),
        compiler_params=pltpu.CompilerParams(
            dimension_semantics=("parallel",),
            vmem_limit_bytes=vmem_limit),
        cost_estimate=pl.CostEstimate(
            flops=int(flops), transcendentals=0,
            bytes_accessed=int(bytes_accessed)),
    )(pooled, wf, bf)


# ----------------------------------------------------------------------------
# Generation-aware tiling / scoped-VMEM selection.
# ----------------------------------------------------------------------------
def _select_tiling(p, b_tile):
    try:
        vmem_cap = pltpu.get_tpu_info().vmem_capacity_bytes
    except Exception:
        vmem_cap = 64 << 20                      # conservative (v7x-sized)
    # v5e/v6e (128 MiB VMEM): amortize the ~0.35us/step overhead with big
    # spatial tiles; v7x (64 MiB): keep the working set under ~48 MiB scoped.
    tp_cap = 2048 if vmem_cap >= (100 << 20) else 1024
    tp = min(_round_up(p, 8), tp_cap)
    p_pad = _round_up(p, tp)
    need = (2 * b_tile * tp * KP * 2             # bf16 patch tile, x2 buffers
            + 2 * b_tile * tp * CS_PAD * 4       # f32 GEMM/ReLU intermediates
            + KP * CS_PAD * 2                    # stem weight
            + b_tile * CS_PAD * 4                # resident pooled output block
            + (2 << 20))                         # Mosaic scratch headroom
    vmem_limit = int(min(max(need + (need >> 1), 32 << 20),
                         int(vmem_cap * 0.75), 100 << 20))
    return tp, p_pad, vmem_limit


# ----------------------------------------------------------------------------
# Wrapper-side im2col for the 7x7/stride-2/pad-3 stem, emitted directly in
# bf16 with the constant-1 bias lane and zero lane-pad fused into the concat.
# ----------------------------------------------------------------------------
def im2col_bias_bf16(x_nhwc, kh=KH, kw=KW, stride=STRIDE, pad=PAD, kp=KP):
    x = jnp.pad(x_nhwc.astype(jnp.bfloat16),
                ((0, 0), (pad, pad), (pad, pad), (0, 0)))
    B, H, W, C = x.shape
    oh = (H - kh) // stride + 1
    ow = (W - kw) // stride + 1
    cols = [x[:, i:i + stride * oh:stride, j:j + stride * ow:stride, :]
            for i in range(kh) for j in range(kw)]
    cols.append(jnp.ones((B, oh, ow, 1), jnp.bfloat16))          # bias lane
    k_used = kh * kw * C + 1
    if kp > k_used:
        cols.append(jnp.zeros((B, oh, ow, kp - k_used), jnp.bfloat16))
    patches = jnp.concatenate(cols, axis=-1)                     # [B,oh,ow,kp]
    return patches.reshape(B, oh * ow, kp)


# ----------------------------------------------------------------------------
# Parameter construction (deterministic, synthetic) + fused/padded packing.
# ----------------------------------------------------------------------------
def make_branch_params(key, cin, c_stem, c_out, kh=KH, kw=KW):
    k1, k2, k3, k4 = jax.random.split(key, 4)
    K = kh * kw * cin
    wconv = jax.random.normal(k1, (K, c_stem), jnp.float32) * (1.0 / K) ** 0.5
    bconv = jax.random.normal(k2, (1, c_stem), jnp.float32) * 0.01
    wfc = jax.random.normal(k3, (c_stem, c_out), jnp.float32) * (1.0 / c_stem) ** 0.5
    bfc = jax.random.normal(k4, (1, c_out), jnp.float32) * 0.01
    return wconv, bconv, wfc, bfc


def build_fused_params(params):
    """Pack the 3 branches: padded stem weight with the bias folded into row
    BIAS_LANE, plus a block-diagonal head weight and concatenated head bias."""
    wc = jnp.zeros((KP, CS_PAD), jnp.float32)
    wf = jnp.zeros((CS_PAD, COUT_PAD), jnp.float32)
    bf = jnp.zeros((1, COUT_PAD), jnp.float32)
    stem_off, out_off = 0, 0
    for (wconv, bconv, wfc, bfc) in params:
        k, cs = wconv.shape
        co = wfc.shape[1]
        wc = wc.at[:k, stem_off:stem_off + cs].set(wconv)
        wc = wc.at[BIAS_LANE, stem_off:stem_off + cs].set(bconv[0])
        wf = wf.at[stem_off:stem_off + cs, out_off:out_off + co].set(wfc)
        bf = bf.at[:, out_off:out_off + co].set(bfc)
        stem_off += cs
        out_off += co
    # Padded stem columns / head rows / extra output lanes stay zero; the
    # extra output lanes (COUT_PAD - COUT_REAL) are sliced off in the wrapper.
    return wc.astype(jnp.bfloat16), wf.astype(jnp.bfloat16), bf


def image_encoder_forward(x_nchw, fused_params):
    """x_nchw: [B, 3, H, W] -> features [B, 2048+512+2208, 1, 1] (NCHW)."""
    wc, wf, bf = fused_params
    x_nhwc = jnp.transpose(x_nchw, (0, 2, 3, 1))
    patches = im2col_bias_bf16(x_nhwc)                   # [B, P, KP] bf16
    B, P, _ = patches.shape

    # Batch padded to a multiple of 8: bounded tiles, unmasked sublane stores.
    b_pad = _round_up(B, 8)
    b_tile = 8                                           # num_b batch tiles
    tp, p_pad, vmem_limit = _select_tiling(P, b_tile)
    patches = jnp.pad(patches, ((0, b_pad - B), (0, p_pad - P), (0, 0)))

    pooled = stem_pool(patches, wc, p_real=P, b_tile=b_tile, tp=tp,
                       vmem_limit=vmem_limit)            # [b_pad, CS_PAD] f32

    bt_head = math.gcd(b_pad, 128)                       # head batch tile
    head_vmem = int(min(max(4 * bt_head * COUT_PAD * 4 + 2 * wf.size * 2
                            + (4 << 20), 32 << 20), 100 << 20))
    out = head_matmul(pooled, wf, bf, b_tile=bt_head,
                      vmem_limit=head_vmem)              # [b_pad, COUT_PAD]

    feats = out[:B, :COUT_REAL]                          # drop batch/head pad
    return feats.reshape(B, COUT_REAL, 1, 1)             # NCHW pooled 1x1


# ----------------------------------------------------------------------------
# Pure-JAX f32 reference for correctness checking.
# ----------------------------------------------------------------------------
def im2col_nhwc_f32(x_nhwc, kh=KH, kw=KW, stride=STRIDE, pad=PAD):
    x = jnp.pad(x_nhwc.astype(jnp.float32),
                ((0, 0), (pad, pad), (pad, pad), (0, 0)))
    B, H, W, C = x.shape
    oh = (H - kh) // stride + 1
    ow = (W - kw) // stride + 1
    cols = [x[:, i:i + stride * oh:stride, j:j + stride * ow:stride, :]
            for i in range(kh) for j in range(kw)]
    patches = jnp.concatenate(cols, axis=-1)
    return patches.reshape(B, oh * ow, kh * kw * C)


def reference_forward(x_nchw, params):
    x_nhwc = jnp.transpose(x_nchw, (0, 2, 3, 1)).astype(jnp.float32)
    patches = im2col_nhwc_f32(x_nhwc)                    # [B, P, K]
    feats = []
    for (wconv, bconv, wfc, bfc) in params:
        h = jnp.maximum(jnp.einsum('bpk,kc->bpc', patches, wconv) + bconv, 0.0)
        pooled = jnp.mean(h, axis=1)
        feats.append(pooled @ wfc + bfc)
    f = jnp.concatenate(feats, axis=1)
    return f.reshape(f.shape[0], -1, 1, 1)


if __name__ == "__main__":
    key = jax.random.PRNGKey(0)
    kx, k152, k18, kdn = jax.random.split(key, 4)

    # Small RGB images (module expects 3-channel input), NCHW.
    x = jax.random.normal(kx, (2, 3, 16, 16), jnp.float32)

    params = [
        make_branch_params(k152, cin=3, c_stem=S152, c_out=C152),  # resnet152
        make_branch_params(k18,  cin=3, c_stem=S18,  c_out=C18),   # resnet18
        make_branch_params(kdn,  cin=3, c_stem=SDN,  c_out=CDN),   # densenet161
    ]
    fused = build_fused_params(params)

    out = jax.jit(image_encoder_forward)(x, fused)
    jax.block_until_ready(out)

    assert out.shape == (2, COUT_REAL, 1, 1), out.shape
    assert out.dtype == jnp.float32

    ref = reference_forward(x, params)
    err = float(jnp.max(jnp.abs(out - ref)))
    assert err < 5e-2, f"max abs error {err}"
    print("KERNEL_OK")
</pallas_src>

<mosaic_0001>
module attributes {stable_mosaic.version = 11 : i64} {
  func.func @_stem_pool_kernel(%arg0: i32, %arg1: i32, %arg2: memref<8x64x256xbf16, #tpu.memory_space<vmem>>, %arg3: memref<256x256xbf16, #tpu.memory_space<vmem>>, %arg4: memref<8x256xf32, #tpu.memory_space<vmem>>) attributes {dimension_semantics = [#tpu.dimension_semantics<parallel>, #tpu.dimension_semantics<arbitrary>], iteration_bounds = array<i64: 1, 1>, scalar_prefetch = 0 : i64, scratch_operands = 0 : i64, tpu.core_type = #tpu.core_type<tc>, window_params = [{transform_indices = @transform_0, window_bounds = array<i64: 8, 64, 256>}, {pipeline_mode = #tpu.pipeline_mode<synchronous>, transform_indices = @transform_1, window_bounds = array<i64: 256, 256>}, {transform_indices = @transform_2, window_bounds = array<i64: 8, 256>}]} {
    %c0_i32 = arith.constant 0 : i32
    %0 = arith.cmpi eq, %arg1, %c0_i32 : i32
    %1 = arith.extui %0 : i1 to i32
    %c0_i32_0 = arith.constant 0 : i32
    %2 = arith.cmpi ne, %1, %c0_i32_0 : i32
    scf.if %2 {
      %cst_13 = arith.constant 0.000000e+00 : f32
      %17 = vector.broadcast %cst_13 : f32 to vector<8x256xf32>
      %c0_14 = arith.constant 0 : index
      %c0_15 = arith.constant 0 : index
      %18 = vector.load %arg4[%c0_14, %c0_15] : memref<8x256xf32, #tpu.memory_space<vmem>>, vector<8x256xf32>
      tpu.vector_store %arg4[%c0_14, %c0_15], %17 {strides = array<i32>} : memref<8x256xf32, #tpu.memory_space<vmem>>, vector<8x256xf32>,
    } else {
    }
    %c0 = arith.constant 0 : index
    %c0_1 = arith.constant 0 : index
    %c0_2 = arith.constant 0 : index
    %3 = vector.load %arg2[%c0, %c0_1, %c0_2] : memref<8x64x256xbf16, #tpu.memory_space<vmem>>, vector<8x64x256xbf16>
    %4 = vector.shape_cast %3 : vector<8x64x256xbf16> to vector<512x256xbf16>
    %c0_3 = arith.constant 0 : index
    %c0_4 = arith.constant 0 : index
    %5 = vector.load %arg3[%c0_3, %c0_4] : memref<256x256xbf16, #tpu.memory_space<vmem>>, vector<256x256xbf16>
    %cst = arith.constant dense<0.000000e+00> : vector<512x256xf32>
    %6 = tpu.matmul %4, %5, %cst {dimension_numbers = #tpu.dot_dimension_numbers<[1], [0], [0], [1], [0, 0, 1, 1], [], []>} : vector<512x256xbf16>, vector<256x256xbf16>, vector<512x256xf32> -> vector<512x256xf32>
    %cst_5 = arith.constant 0.000000e+00 : f32
    %7 = vector.broadcast %cst_5 : f32 to vector<512x256xf32>
    %8 = arith.maximumf %6, %7 : vector<512x256xf32>
    %c0_6 = arith.constant 0 : index
    %c0_7 = arith.constant 0 : index
    %9 = vector.load %arg4[%c0_6, %c0_7] : memref<8x256xf32, #tpu.memory_space<vmem>>, vector<8x256xf32>
    %10 = vector.shape_cast %8 : vector<512x256xf32> to vector<8x64x256xf32>
    %cst_8 = arith.constant dense<0.000000e+00> : vector<8x256xf32>
    %11 = vector.multi_reduction <add>, %10, %cst_8 [1] : vector<8x64x256xf32> to vector<8x256xf32>
    %12 = arith.addf %9, %11 : vector<8x256xf32>
    %c0_9 = arith.constant 0 : index
    %c0_10 = arith.constant 0 : index
    %13 = vector.load %arg4[%c0_9, %c0_10] : memref<8x256xf32, #tpu.memory_space<vmem>>, vector<8x256xf32>
    tpu.vector_store %arg4[%c0_9, %c0_10], %12 {strides = array<i32>} : memref<8x256xf32, #tpu.memory_space<vmem>>, vector<8x256xf32>,
    %c0_i32_11 = arith.constant 0 : i32
    %14 = arith.cmpi eq, %arg1, %c0_i32_11 : i32
    %15 = arith.extui %14 : i1 to i32
    %c0_i32_12 = arith.constant 0 : i32
    %16 = arith.cmpi ne, %15, %c0_i32_12 : i32
    scf.if %16 {
      %c0_13 = arith.constant 0 : index
      %c0_14 = arith.constant 0 : index
      %17 = vector.load %arg4[%c0_13, %c0_14] : memref<8x256xf32, #tpu.memory_space<vmem>>, vector<8x256xf32>
      %cst_15 = arith.constant 1.562500e-02 : f32
      %18 = vector.broadcast %cst_15 : f32 to vector<8x256xf32>
      %19 = arith.mulf %17, %18 : vector<8x256xf32>
      %c0_16 = arith.constant 0 : index
      %c0_17 = arith.constant 0 : index
      %20 = vector.load %arg4[%c0_16, %c0_17] : memref<8x256xf32, #tpu.memory_space<vmem>>, vector<8x256xf32>
      tpu.vector_store %arg4[%c0_16, %c0_17], %19 {strides = array<i32>} : memref<8x256xf32, #tpu.memory_space<vmem>>, vector<8x256xf32>,
    } else {
    }
    return
  }
  func.func @transform_0(%arg0: i32, %arg1: i32) -> (i32, i32, i32) {
    %c0_i32 = arith.constant 0 : i32
    %c0_i32_0 = arith.constant 0 : i32
    return %arg0, %arg1, %c0_i32 : i32, i32, i32
  }
  func.func @transform_1(%arg0: i32, %arg1: i32) -> (i32, i32) {
    %c0_i32 = arith.constant 0 : i32
    %c0_i32_0 = arith.constant 0 : i32
    %c0_i32_1 = arith.constant 0 : i32
    return %c0_i32, %c0_i32_0 : i32, i32
  }
  func.func @transform_2(%arg0: i32, %arg1: i32) -> (i32, i32) {
    %c0_i32 = arith.constant 0 : i32
    %c0_i32_0 = arith.constant 0 : i32
    return %arg0, %c0_i32 : i32, i32
  }
}

module attributes {stable_mosaic.version = 11 : i64} {
  func.func @_head_kernel(%arg0: i32, %arg1: memref<8x256xf32, #tpu.memory_space<vmem>>, %arg2: memref<256x4864xbf16, #tpu.memory_space<vmem>>, %arg3: memref<1x4864xf32, #tpu.memory_space<vmem>>, %arg4: memref<8x4864xf32, #tpu.memory_space<vmem>>) attributes {dimension_semantics = [#tpu.dimension_semantics<parallel>], iteration_bounds = array<i64: 1>, scalar_prefetch = 0 : i64, scratch_operands = 0 : i64, tpu.core_type = #tpu.core_type<tc>, window_params = [{transform_indices = @transform_0, window_bounds = array<i64: 8, 256>}, {pipeline_mode = #tpu.pipeline_mode<synchronous>, transform_indices = @transform_1, window_bounds = array<i64: 256, 4864>}, {pipeline_mode = #tpu.pipeline_mode<synchronous>, transform_indices = @transform_2, window_bounds = array<i64: 1, 4864>}, {transform_indices = @transform_3, window_bounds = array<i64: 8, 4864>}]} {
    %c0 = arith.constant 0 : index
    %c0_0 = arith.constant 0 : index
    %0 = vector.load %arg1[%c0, %c0_0] : memref<8x256xf32, #tpu.memory_space<vmem>>, vector<8x256xf32>
    %1 = arith.truncf %0 : vector<8x256xf32> to vector<8x256xbf16>
    %c0_1 = arith.constant 0 : index
    %c0_2 = arith.constant 0 : index
    %2 = vector.load %arg2[%c0_1, %c0_2] : memref<256x4864xbf16, #tpu.memory_space<vmem>>, vector<256x4864xbf16>
    %cst = arith.constant dense<0.000000e+00> : vector<8x4864xf32>
    %3 = tpu.matmul %1, %2, %cst {dimension_numbers = #tpu.dot_dimension_numbers<[1], [0], [0], [1], [0, 0, 1, 1], [], []>} : vector<8x256xbf16>, vector<256x4864xbf16>, vector<8x4864xf32> -> vector<8x4864xf32>
    %c0_3 = arith.constant 0 : index
    %c0_4 = arith.constant 0 : index
    %4 = vector.load %arg3[%c0_3, %c0_4] : memref<1x4864xf32, #tpu.memory_space<vmem>>, vector<1x4864xf32>
    %5 = vector.broadcast %4 : vector<1x4864xf32> to vector<8x4864xf32>
    %6 = arith.addf %3, %5 : vector<8x4864xf32>
    %c0_5 = arith.constant 0 : index
    %c0_6 = arith.constant 0 : index
    %7 = vector.load %arg4[%c0_5, %c0_6] : memref<8x4864xf32, #tpu.memory_space<vmem>>, vector<8x4864xf32>
    tpu.vector_store %arg4[%c0_5, %c0_6], %6 {strides = array<i32>} : memref<8x4864xf32, #tpu.memory_space<vmem>>, vector<8x4864xf32>,
    return
  }
  func.func @transform_0(%arg0: i32) -> (i32, i32) {
    %c0_i32 = arith.constant 0 : i32
    %c0_i32_0 = arith.constant 0 : i32
    return %arg0, %c0_i32 : i32, i32
  }
  func.func @transform_1(%arg0: i32) -> (i32, i32) {
    %c0_i32 = arith.constant 0 : i32
    %c0_i32_0 = arith.constant 0 : i32
    %c0_i32_1 = arith.constant 0 : i32
    return %c0_i32, %c0_i32_0 : i32, i32
  }
  func.func @transform_2(%arg0: i32) -> (i32, i32) {
    %c0_i32 = arith.constant 0 : i32
    %c0_i32_0 = arith.constant 0 : i32
    %c0_i32_1 = arith.constant 0 : i32
    return %c0_i32, %c0_i32_0 : i32, i32
  }
  func.func @transform_3(%arg0: i32) -> (i32, i32) {
    %c0_i32 = arith.constant 0 : i32
    %c0_i32_0 = arith.constant 0 : i32
    return %arg0, %c0_i32 : i32, i32
  }
}

</mosaic_0001>

<bundles_post_ra>
// kernel: image_encoder_forward.2
= control target key start
LH: loop header
LB: loop body
LE: loop exit
PB: predicated region body
PF: predicated region fallthrough
CT: control target
= control target key end

     0   :  { %vm1300_vm0 = vcmask 1041409   ;;  %vm1302_vm1 = vcmask 1042434   ;;  %vm1304_vm2 = vcmask 1043459   ;;  %vm1306_vm3 = vcmask 1044484   ;;  %s1978_s1 = inlined_call_operand.vmem [shape: bf16[256,256], index: 1, kind: input, shape index: {}]   ;;  %s1979_s0 = inlined_call_operand.vmem [shape: bf16[8,64,256], index: 0, kind: input, shape index: {}]   ;;  %s1980_s2 = inlined_call_operand.vmem [shape: f32[8,256], index: 2, kind: output, shape index: {}]  }
   0x1   :  { %v1469_v0 = vld [vmem:[%s1978_s1 + $0x4] ss:$8 sps:$4 sm:$0xff]   ;;  %v1471_v1 = vld [vmem:[%s1978_s1] ss:$8 sps:$4 sm:$0xff]   ;;  %v1472_v2 = vld [vmem:[%s1978_s1 + $0x14] ss:$8 sps:$4 sm:$0xff]  }
   0x2   :  { %593 = vmatprep.subr.bf16.mxu0 %v1469_v0  ;;  %1436 = vmatprep.subr.bf16.mxu1 %v1469_v0  ;;  %v1474_v3 = vld [vmem:[%s1978_s1 + $0x10] ss:$8 sps:$4 sm:$0xff]   ;;  %v1475_v4 = vld [vmem:[%s1978_s1 + $0x24] ss:$8 sps:$4 sm:$0xff]   ;;  %v1477_v5 = vld [vmem:[%s1978_s1 + $0x20] ss:$8 sps:$4 sm:$0xff]  }
   0x3   :  { %594 = vmatpush1.bf16.msra.mxu0 %v1471_v1  ;;  %1452 = vmatpush1.bf16.msra.mxu1 %v1471_v1  ;;  %v1478_v6 = vld [vmem:[%s1978_s1 + $0x34] ss:$8 sps:$4 sm:$0xff]   ;;  %v1480_v7 = vld [vmem:[%s1978_s1 + $0x30] ss:$8 sps:$4 sm:$0xff]   ;;  %v1481_v8 = vld [vmem:[%s1978_s1 + $0x44] ss:$8 sps:$4 sm:$0xff]  }
   0x4   :  { %595 = vmatprep.subr.bf16.mxu0 %v1472_v2  ;;  %1437 = vmatprep.subr.bf16.mxu1 %v1472_v2  ;;  %v1483_v9 = vld [vmem:[%s1978_s1 + $0x40] ss:$8 sps:$4 sm:$0xff]   ;;  %v1484_v10 = vld [vmem:[%s1978_s1 + $0x54] ss:$8 sps:$4 sm:$0xff]   ;;  %v1486_v11 = vld [vmem:[%s1978_s1 + $0x50] ss:$8 sps:$4 sm:$0xff]  }
   0x5   :  { %v1487_v12 = vld [vmem:[%s1978_s1 + $0x64] ss:$8 sps:$4 sm:$0xff]   ;;  %v1489_v14 = vld [vmem:[%s1978_s1 + $0x60] ss:$8 sps:$4 sm:$0xff]   ;;  %v1490_v16 = vld [vmem:[%s1978_s1 + $0x74] ss:$8 sps:$4 sm:$0xff]  }
   0x6   :  { %v1519_v13 = vld [vmem:[%s1979_s0 + $0x4] ss:$8 sps:$4 sm:$0xff]   ;;  %v1492_v17 = vld [vmem:[%s1978_s1 + $0x70] ss:$8 sps:$4 sm:$0xff]   ;;  %v1495_v19 = vld [vmem:[%s1978_s1 + $0x80] ss:$8 sps:$4 sm:$0xff]  }
   0x7   :  { %596 = vmatpush1.bf16.msra.mxu0 %v1474_v3  ;;  %1453 = vmatpush1.bf16.msra.mxu1 %v1474_v3  ;;  %v1522_v15 = vld [vmem:[%s1979_s0 + $0x104] ss:$8 sps:$4 sm:$0xff]   ;;  %v1496_v20 = vld [vmem:[%s1978_s1 + $0x94] ss:$8 sps:$4 sm:$0xff]   ;;  %v1498_v21 = vld [vmem:[%s1978_s1 + $0x90] ss:$8 sps:$4 sm:$0xff]  }
   0x8   :  { %597 = vmatprep.subr.bf16.mxu0 %v1475_v4  ;;  %1438 = vmatprep.subr.bf16.mxu1 %v1475_v4  ;;  %v1493_v18 = vld [vmem:[%s1978_s1 + $0x84] ss:$8 sps:$4 sm:$0xff]   ;;  %v1501_v23 = vld [vmem:[%s1978_s1 + $0xa0] ss:$8 sps:$4 sm:$0xff]   ;;  %v1502_v24 = vld [vmem:[%s1978_s1 + $0xb4] ss:$8 sps:$4 sm:$0xff]  }
   0x9   :  { %625 = vmatprep.mubr.bf16.mxu0 %v1519_v13  ;;  %785 = vmatprep.mubr.bf16.mxu1 %v1522_v15  ;;  %v1499_v22 = vld [vmem:[%s1978_s1 + $0xa4] ss:$8 sps:$4 sm:$0xff]   ;;  %v1504_v25 = vld [vmem:[%s1978_s1 + $0xb0] ss:$8 sps:$4 sm:$0xff]   ;;  %v1507_v27 = vld [vmem:[%s1978_s1 + $0xc0] ss:$8 sps:$4 sm:$0xff]  }
   0xa   :  { %v1505_v26 = vld [vmem:[%s1978_s1 + $0xc4] ss:$8 sps:$4 sm:$0xff]   ;;  %v1508_v28 = vld [vmem:[%s1978_s1 + $0xd4] ss:$8 sps:$4 sm:$0xff]   ;;  %v1510_v29 = vld [vmem:[%s1978_s1 + $0xd0] ss:$8 sps:$4 sm:$0xff]  }
   0xb   :  { %598 = vmatpush1.bf16.msra.mxu0 %v1477_v5  ;;  %1454 = vmatpush1.bf16.msra.mxu1 %v1477_v5  ;;  %v1511_v30 = vld [vmem:[%s1978_s1 + $0xe4] ss:$8 sps:$4 sm:$0xff]   ;;  %v1513_v31 = vld [vmem:[%s1978_s1 + $0xe0] ss:$8 sps:$4 sm:$0xff]   ;;  %v1514_v32 = vld [vmem:[%s1978_s1 + $0xf4] ss:$8 sps:$4 sm:$0xff]  }
   0xc   :  { %599 = vmatprep.subr.bf16.mxu0 %v1478_v6  ;;  %1439 = vmatprep.subr.bf16.mxu1 %v1478_v6  ;;  %v1516_v33 = vld [vmem:[%s1978_s1 + $0xf0] ss:$8 sps:$4 sm:$0xff]   ;;  %v1517_v34 = vld [vmem:[%s1979_s0] ss:$8 sps:$4 sm:$0xff]   ;;  %v1523_v36 = vld [vmem:[%s1979_s0 + $0x14] ss:$8 sps:$4 sm:$0xff]  }
   0xd   :  { %v1520_v35 = vld [vmem:[%s1979_s0 + $0x100] ss:$8 sps:$4 sm:$0xff]   ;;  %v1525_v37 = vld [vmem:[%s1979_s0 + $0x114] ss:$8 sps:$4 sm:$0xff]   ;;  %v1527_v38 = vld [vmem:[%s1979_s0 + $0x10] ss:$8 sps:$4 sm:$0xff]  }
   0xe   :  { %v1528_v39 = vld [vmem:[%s1979_s0 + $0x110] ss:$8 sps:$4 sm:$0xff]   ;;  %v1529_v40 = vld [vmem:[%s1979_s0 + $0x24] ss:$8 sps:$4 sm:$0xff]   ;;  %v1533_v42 = vld [vmem:[%s1979_s0 + $0x20] ss:$8 sps:$4 sm:$0xff]  }
   0xf   :  { %600 = vmatpush1.bf16.msra.mxu0 %v1480_v7  ;;  %1455 = vmatpush1.bf16.msra.mxu1 %v1480_v7  ;;  %v1531_v41 = vld [vmem:[%s1979_s0 + $0x124] ss:$8 sps:$4 sm:$0xff]   ;;  %v1534_v43 = vld [vmem:[%s1979_s0 + $0x120] ss:$8 sps:$4 sm:$0xff]   ;;  %v1535_v44 = vld [vmem:[%s1979_s0 + $0x34] ss:$8 sps:$4 sm:$0xff]  }
  0x10   :  { %601 = vmatprep.subr.bf16.mxu0 %v1481_v8  ;;  %1440 = vmatprep.subr.bf16.mxu1 %v1481_v8  ;;  %v1537_v45 = vld [vmem:[%s1979_s0 + $0x134] ss:$8 sps:$4 sm:$0xff]   ;;  %v1539_v46 = vld [vmem:[%s1979_s0 + $0x30] ss:$8 sps:$4 sm:$0xff]   ;;  %v1541_v48 = vld [vmem:[%s1979_s0 + $0x44] ss:$8 sps:$4 sm:$0xff]  }
  0x11   :  { %v1540_v47 = vld [vmem:[%s1979_s0 + $0x130] ss:$8 sps:$4 sm:$0xff]   ;;  %v1543_v49 = vld [vmem:[%s1979_s0 + $0x144] ss:$8 sps:$4 sm:$0xff]   ;;  %v1545_v50 = vld [vmem:[%s1979_s0 + $0x40] ss:$8 sps:$4 sm:$0xff]  }
  0x12   :  { %v1546_v51 = vld [vmem:[%s1979_s0 + $0x140] ss:$8 sps:$4 sm:$0xff]   ;;  %v1547_v52 = vld [vmem:[%s1979_s0 + $0x54] ss:$8 sps:$4 sm:$0xff]   ;;  %v1551_v54 = vld [vmem:[%s1979_s0 + $0x50] ss:$8 sps:$4 sm:$0xff]  }
  0x13   :  { %602 = vmatpush1.bf16.msra.mxu0 %v1483_v9  ;;  %1456 = vmatpush1.bf16.msra.mxu1 %v1483_v9  ;;  %v1549_v53 = vld [vmem:[%s1979_s0 + $0x154] ss:$8 sps:$4 sm:$0xff]   ;;  %v1552_v55 = vld [vmem:[%s1979_s0 + $0x150] ss:$8 sps:$4 sm:$0xff]   ;;  %v1553_v56 = vld [vmem:[%s1979_s0 + $0x64] ss:$8 sps:$4 sm:$0xff]  }
  0x14   :  { %603 = vmatprep.subr.bf16.mxu0 %v1484_v10  ;;  %1441 = vmatprep.subr.bf16.mxu1 %v1484_v10  ;;  %v1555_v57 = vld [vmem:[%s1979_s0 + $0x164] ss:$8 sps:$4 sm:$0xff]   ;;  %v1557_v58 = vld [vmem:[%s1979_s0 + $0x60] ss:$8 sps:$4 sm:$0xff]   ;;  %v1559_v60 = vld [vmem:[%s1979_s0 + $0x74] ss:$8 sps:$4 sm:$0xff]  }
  0x15   :  { %v1558_v59 = vld [vmem:[%s1979_s0 + $0x160] ss:$8 sps:$4 sm:$0xff]   ;;  %v1561_v61 = vld [vmem:[%s1979_s0 + $0x174] ss:$8 sps:$4 sm:$0xff]   ;;  %v1563_v62 = vld [vmem:[%s1979_s0 + $0x70] ss:$8 sps:$4 sm:$0xff]  }
  0x16   :  { %v1564_v63 = vld [vmem:[%s1979_s0 + $0x170] ss:$8 sps:$4 sm:$0xff]   ;;  %v1565_v0 = vld [vmem:[%s1979_s0 + $0x84] ss:$8 sps:$4 sm:$0xff]   ;;  %v1569_v2 = vld [vmem:[%s1979_s0 + $0x80] ss:$8 sps:$4 sm:$0xff]  }
  0x17   :  { %604 = vmatpush1.bf16.msra.mxu0 %v1486_v11  ;;  %1457 = vmatpush1.bf16.msra.mxu1 %v1486_v11  ;;  %v1567_v1 = vld [vmem:[%s1979_s0 + $0x184] ss:$8 sps:$4 sm:$0xff]   ;;  %v1570_v3 = vld [vmem:[%s1979_s0 + $0x180] ss:$8 sps:$4 sm:$0xff]   ;;  %v1571_v4 = vld [vmem:[%s1979_s0 + $0x94] ss:$8 sps:$4 sm:$0xff]  }
  0x18   :  { %605 = vmatprep.subr.bf16.mxu0 %v1487_v12  ;;  %1442 = vmatprep.subr.bf16.mxu1 %v1487_v12  ;;  %v1573_v5 = vld [vmem:[%s1979_s0 + $0x194] ss:$8 sps:$4 sm:$0xff]   ;;  %v1575_v6 = vld [vmem:[%s1979_s0 + $0x90] ss:$8 sps:$4 sm:$0xff]   ;;  %v1577_v8 = vld [vmem:[%s1979_s0 + $0xa4] ss:$8 sps:$4 sm:$0xff]  }
  0x19   :  { %v1576_v7 = vld [vmem:[%s1979_s0 + $0x190] ss:$8 sps:$4 sm:$0xff]   ;;  %v1579_v9 = vld [vmem:[%s1979_s0 + $0x1a4] ss:$8 sps:$4 sm:$0xff]   ;;  %v1581_v10 = vld [vmem:[%s1979_s0 + $0xa0] ss:$8 sps:$4 sm:$0xff]  }
  0x1a   :  { %v1582_v11 = vld [vmem:[%s1979_s0 + $0x1a0] ss:$8 sps:$4 sm:$0xff]   ;;  %v1583_v12 = vld [vmem:[%s1979_s0 + $0xb4] ss:$8 sps:$4 sm:$0xff]   ;;  %v1588_v15 = vld [vmem:[%s1979_s0 + $0x1b0] ss:$8 sps:$4 sm:$0xff]  }
  0x1b   :  { %606 = vmatpush1.bf16.msra.mxu0 %v1489_v14  ;;  %1458 = vmatpush1.bf16.msra.mxu1 %v1489_v14  ;;  %v1585_v13 = vld [vmem:[%s1979_s0 + $0x1b4] ss:$8 sps:$4 sm:$0xff]   ;;  %v1587_v14 = vld [vmem:[%s1979_s0 + $0xb0] ss:$8 sps:$4 sm:$0xff]   ;;  %vm1308_vm4 = vcmask 1045509   ;;  %vm1310_vm5 = vcmask 1046534  }
  0x1c   :  { %607 = vmatprep.subr.bf16.mxu0 %v1490_v16  ;;  %1443 = vmatprep.subr.bf16.mxu1 %v1490_v16  ;;  %v1589_v16 = vld [vmem:[%s1979_s0 + $0xc4] ss:$8 sps:$4 sm:$0xff]   ;;  %vm1312_vm6 = vcmask 1047559  }
  0x1f   :  { %608 = vmatpush1.bf16.msra.mxu0 %v1492_v17  ;;  %1459 = vmatpush1.bf16.msra.mxu1 %v1492_v17  ;;  %v1591_v17 = vld [vmem:[%s1979_s0 + $0x1c4] ss:$8 sps:$4 sm:$0xff]  }
  0x20   :  { %609 = vmatprep.subr.bf16.mxu0 %v1493_v18  ;;  %1444 = vmatprep.subr.bf16.mxu1 %v1493_v18  ;;  %v1593_v18 = vld [vmem:[%s1979_s0 + $0xc0] ss:$8 sps:$4 sm:$0xff]  }
  0x23   :  { %610 = vmatpush1.bf16.msra.mxu0 %v1495_v19  ;;  %1460 = vmatpush1.bf16.msra.mxu1 %v1495_v19  ;;  %v1594_v19 = vld [vmem:[%s1979_s0 + $0x1c0] ss:$8 sps:$4 sm:$0xff]  }
  0x24   :  { %611 = vmatprep.subr.bf16.mxu0 %v1496_v20  ;;  %1445 = vmatprep.subr.bf16.mxu1 %v1496_v20  ;;  %v1595_v20 = vld [vmem:[%s1979_s0 + $0xd4] ss:$8 sps:$4 sm:$0xff]  }
  0x27   :  { %612 = vmatpush1.bf16.msra.mxu0 %v1498_v21  ;;  %1461 = vmatpush1.bf16.msra.mxu1 %v1498_v21  ;;  %v1597_v21 = vld [vmem:[%s1979_s0 + $0x1d4] ss:$8 sps:$4 sm:$0xff]  }
  0x28   :  { %613 = vmatprep.subr.bf16.mxu0 %v1499_v22  ;;  %1446 = vmatprep.subr.bf16.mxu1 %v1499_v22  ;;  %v1599_v22 = vld [vmem:[%s1979_s0 + $0xd0] ss:$8 sps:$4 sm:$0xff]  }
  0x2b   :  { %614 = vmatpush1.bf16.msra.mxu0 %v1501_v23  ;;  %1462 = vmatpush1.bf16.msra.mxu1 %v1501_v23  ;;  %v1600_v23 = vld [vmem:[%s1979_s0 + $0x1d0] ss:$8 sps:$4 sm:$0xff]  }
  0x2c   :  { %615 = vmatprep.subr.bf16.mxu0 %v1502_v24  ;;  %1447 = vmatprep.subr.bf16.mxu1 %v1502_v24  ;;  %v1601_v24 = vld [vmem:[%s1979_s0 + $0xe4] ss:$8 sps:$4 sm:$0xff]  }
  0x2f   :  { %616 = vmatpush1.bf16.msra.mxu0 %v1504_v25  ;;  %1463 = vmatpush1.bf16.msra.mxu1 %v1504_v25  ;;  %v1603_v25 = vld [vmem:[%s1979_s0 + $0x1e4] ss:$8 sps:$4 sm:$0xff]  }
  0x30   :  { %617 = vmatprep.subr.bf16.mxu0 %v1505_v26  ;;  %1448 = vmatprep.subr.bf16.mxu1 %v1505_v26  ;;  %v1605_v26 = vld [vmem:[%s1979_s0 + $0xe0] ss:$8 sps:$4 sm:$0xff]  }
  0x33   :  { %618 = vmatpush1.bf16.msra.mxu0 %v1507_v27  ;;  %1464 = vmatpush1.bf16.msra.mxu1 %v1507_v27  ;;  %v1606_v27 = vld [vmem:[%s1979_s0 + $0x1e0] ss:$8 sps:$4 sm:$0xff]  }
  0x34   :  { %619 = vmatprep.subr.bf16.mxu0 %v1508_v28  ;;  %1449 = vmatprep.subr.bf16.mxu1 %v1508_v28  ;;  %v1607_v28 = vld [vmem:[%s1979_s0 + $0xf4] ss:$8 sps:$4 sm:$0xff]  }
  0x37   :  { %620 = vmatpush1.bf16.msra.mxu0 %v1510_v29  ;;  %1465 = vmatpush1.bf16.msra.mxu1 %v1510_v29  ;;  %v1609_v29 = vld [vmem:[%s1979_s0 + $0x1f4] ss:$8 sps:$4 sm:$0xff]  }
  0x38   :  { %621 = vmatprep.subr.bf16.mxu0 %v1511_v30  ;;  %1450 = vmatprep.subr.bf16.mxu1 %v1511_v30  ;;  %v1611_v30 = vld [vmem:[%s1979_s0 + $0xf0] ss:$8 sps:$4 sm:$0xff]  }
  0x3b   :  { %622 = vmatpush1.bf16.msra.mxu0 %v1513_v31  ;;  %1466 = vmatpush1.bf16.msra.mxu1 %v1513_v31  ;;  %v1612_v31 = vld [vmem:[%s1979_s0 + $0x1f0] ss:$8 sps:$4 sm:$0xff]  }
  0x3c   :  { %623 = vmatprep.subr.bf16.mxu0 %v1514_v32  ;;  %1451 = vmatprep.subr.bf16.mxu1 %v1514_v32 }
  0x3f   :  { %624 = vmatpush1.bf16.msra.mxu0 %v1516_v33  ;;  %1467 = vmatpush1.bf16.msra.mxu1 %v1516_v33 }
  0x42   :  { %626 = vmatmul.mubr.bf16.vlgmr.msra.gmra.mrb[0].mxu0 %v1517_v34  ;;  %786 = vmatmul.mubr.bf16.vlgmr.msra.gmra.mrb[0].mxu1 %v1520_v35 }
  0x43   :  { %635 = vmatprep.mubr.bf16.mxu0 %v1523_v36  ;;  %795 = vmatprep.mubr.bf16.mxu1 %v1525_v37 }
  0x4a   :  { %636 = vmatmul.mubr.bf16.gmra.mrb[4].mxu0 %v1527_v38  ;;  %796 = vmatmul.mubr.bf16.gmra.mrb[4].mxu1 %v1528_v39 }
  0x4b   :  { %645 = vmatprep.mubr.bf16.mxu0 %v1529_v40  ;;  %805 = vmatprep.mubr.bf16.mxu1 %v1531_v41 }
  0x52   :  { %646 = vmatmul.mubr.bf16.gmra.mrb[8].mxu0 %v1533_v42  ;;  %806 = vmatmul.mubr.bf16.gmra.mrb[8].mxu1 %v1534_v43 }
  0x53   :  { %655 = vmatprep.mubr.bf16.mxu0 %v1535_v44  ;;  %815 = vmatprep.mubr.bf16.mxu1 %v1537_v45 }
  0x5a   :  { %656 = vmatmul.mubr.bf16.gmra.mrb[12].mxu0 %v1539_v46  ;;  %816 = vmatmul.mubr.bf16.gmra.mrb[12].mxu1 %v1540_v47 }
  0x5b   :  { %665 = vmatprep.mubr.bf16.mxu0 %v1541_v48  ;;  %825 = vmatprep.mubr.bf16.mxu1 %v1543_v49 }
  0x62   :  { %666 = vmatmul.mubr.bf16.gmra.mrb[16].mxu0 %v1545_v50  ;;  %826 = vmatmul.mubr.bf16.gmra.mrb[16].mxu1 %v1546_v51 }
  0x63   :  { %675 = vmatprep.mubr.bf16.mxu0 %v1547_v52  ;;  %835 = vmatprep.mubr.bf16.mxu1 %v1549_v53 }
  0x6a   :  { %676 = vmatmul.mubr.bf16.gmra.mrb[20].mxu0 %v1551_v54  ;;  %836 = vmatmul.mubr.bf16.gmra.mrb[20].mxu1 %v1552_v55 }
  0x6b   :  { %685 = vmatprep.mubr.bf16.mxu0 %v1553_v56  ;;  %845 = vmatprep.mubr.bf16.mxu1 %v1555_v57 }
  0x72   :  { %686 = vmatmul.mubr.bf16.gmra.mrb[24].mxu0 %v1557_v58  ;;  %846 = vmatmul.mubr.bf16.gmra.mrb[24].mxu1 %v1558_v59 }
  0x73   :  { %695 = vmatprep.mubr.bf16.mxu0 %v1559_v60  ;;  %855 = vmatprep.mubr.bf16.mxu1 %v1561_v61 }
  0x7a   :  { %696 = vmatmul.mubr.bf16.gmra.mrb[28].mxu0 %v1563_v62  ;;  %856 = vmatmul.mubr.bf16.gmra.mrb[28].mxu1 %v1564_v63 }
  0x7b   :  { %705 = vmatprep.mubr.bf16.mxu0 %v1565_v0  ;;  %865 = vmatprep.mubr.bf16.mxu1 %v1567_v1 }
  0x82   :  { %706 = vmatmul.mubr.bf16.gmra.mrb[32].mxu0 %v1569_v2  ;;  %866 = vmatmul.mubr.bf16.gmra.mrb[32].mxu1 %v1570_v3 }
  0x83   :  { %715 = vmatprep.mubr.bf16.mxu0 %v1571_v4  ;;  %875 = vmatprep.mubr.bf16.mxu1 %v1573_v5 }
  0x8a   :  { %716 = vmatmul.mubr.bf16.gmra.mrb[36].mxu0 %v1575_v6  ;;  %876 = vmatmul.mubr.bf16.gmra.mrb[36].mxu1 %v1576_v7 }
  0x8b   :  { %725 = vmatprep.mubr.bf16.mxu0 %v1577_v8  ;;  %885 = vmatprep.mubr.bf16.mxu1 %v1579_v9 }
  0x92   :  { %726 = vmatmul.mubr.bf16.gmra.mrb[40].mxu0 %v1581_v10  ;;  %886 = vmatmul.mubr.bf16.gmra.mrb[40].mxu1 %v1582_v11 }
  0x93   :  { %735 = vmatprep.mubr.bf16.mxu0 %v1583_v12  ;;  %895 = vmatprep.mubr.bf16.mxu1 %v1585_v13 }
  0x9a   :  { %736 = vmatmul.mubr.bf16.gmra.mrb[44].mxu0 %v1587_v14  ;;  %896 = vmatmul.mubr.bf16.gmra.mrb[44].mxu1 %v1588_v15 }
  0x9b   :  { %745 = vmatprep.mubr.bf16.mxu0 %v1589_v16  ;;  %905 = vmatprep.mubr.bf16.mxu1 %v1591_v17 }
  0xa2   :  { %746 = vmatmul.mubr.bf16.gmra.mrb[48].mxu0 %v1593_v18  ;;  %906 = vmatmul.mubr.bf16.gmra.mrb[48].mxu1 %v1594_v19 }
  0xa3   :  { %755 = vmatprep.mubr.bf16.mxu0 %v1595_v20  ;;  %915 = vmatprep.mubr.bf16.mxu1 %v1597_v21 }
  0xaa   :  { %756 = vmatmul.mubr.bf16.gmra.mrb[52].mxu0 %v1599_v22  ;;  %916 = vmatmul.mubr.bf16.gmra.mrb[52].mxu1 %v1600_v23 }
  0xab   :  { %765 = vmatprep.mubr.bf16.mxu0 %v1601_v24  ;;  %925 = vmatprep.mubr.bf16.mxu1 %v1603_v25 }
  0xb2   :  { %766 = vmatmul.mubr.bf16.gmra.mrb[56].mxu0 %v1605_v26  ;;  %926 = vmatmul.mubr.bf16.gmra.mrb[56].mxu1 %v1606_v27 }
  0xb3   :  { %775 = vmatprep.mubr.bf16.mxu0 %v1607_v28  ;;  %935 = vmatprep.mubr.bf16.mxu1 %v1609_v29 }
  0xba   :  { %776 = vmatmul.mubr.bf16.gmra.mrb[60].mxu0 %v1611_v30  ;;  %936 = vmatmul.mubr.bf16.gmra.mrb[60].mxu1 %v1612_v31 }
 0x115   :  { %v627_v32 = vpop.f32.mrb[0].mxu0  ;;  %v787_v33 = vpop.f32.mrb[0].mxu1 }
 0x116   :  { %v629_v34 = vpop.f32.mrb[1].mxu0  ;;  %v1010_v35 = vmax.f32 %v787_v33, 0.0  ;;  %v789_v36 = vpop.f32.mrb[1].mxu1  ;;  %v946_v40 = vmax.f32 %v627_v32, 0.0 }
 0x117   :  { %v631_v37 = vpop.f32.mrb[2].mxu0  ;;  %v1011_v38 = vmax.f32 %v789_v36, 0.0  ;;  %v791_v39 = vpop.f32.mrb[2].mxu1  ;;  %v947_v45 = vmax.f32 %v629_v34, 0.0 }
 0x118   :  { %v948_v41 = vmax.f32 %v631_v37, 0.0  ;;  %v633_v42 = vpop.f32.mrb[3].mxu0  ;;  %v1012_v43 = vmax.f32 %v791_v39, 0.0  ;;  %v793_v44 = vpop.f32.mrb[3].mxu1 }
 0x119   :  { %v949_v46 = vmax.f32 %v633_v42, 0.0  ;;  %v1013_v47 = vmax.f32 %v793_v44, 0.0 }
 0x11a   :  { %v1076_v48 = vadd.f32 %v948_v41, %v946_v40  ;;  %v1180_v49 = vadd.f32 %v1012_v43, %v1010_v35 }
 0x11b   :  { %v1089_v50 = vadd.f32 %v949_v46, %v947_v45  ;;  %v1193_v51 = vadd.f32 %v1013_v47, %v1011_v38 }
 0x11d   :  { %v637_v52 = vpop.f32.mrb[4].mxu0  ;;  %v797_v53 = vpop.f32.mrb[4].mxu1 }
 0x11e   :  { %v950_v54 = vmax.f32 %v637_v52, 0.0  ;;  %v1014_v55 = vmax.f32 %v797_v53, 0.0  ;;  %v639_v56 = vpop.f32.mrb[5].mxu0  ;;  %v799_v57 = vpop.f32.mrb[5].mxu1 }
 0x11f   :  { %v951_v58 = vmax.f32 %v639_v56, 0.0  ;;  %v1015_v59 = vmax.f32 %v799_v57, 0.0  ;;  %v641_v60 = vpop.f32.mrb[6].mxu0  ;;  %v801_v61 = vpop.f32.mrb[6].mxu1 }
 0x120   :  { %v1077_v62 = vadd.f32 %v1076_v48, %v950_v54  ;;  %v1181_v63 = vadd.f32 %v1180_v49, %v1014_v55  ;;  %v952_v0 = vmax.f32 %v641_v60, 0.0  ;;  %v1016_v1 = vmax.f32 %v801_v61, 0.0  ;;  %v643_v2 = vpop.f32.mrb[7].mxu0  ;;  %v803_v3 = vpop.f32.mrb[7].mxu1 }
 0x121   :  { %v1090_v4 = vadd.f32 %v1089_v50, %v951_v58  ;;  %v1194_v5 = vadd.f32 %v1193_v51, %v1015_v59  ;;  %v953_v6 = vmax.f32 %v643_v2, 0.0  ;;  %v1017_v7 = vmax.f32 %v803_v3, 0.0 }
 0x122   :  { %v1078_v8 = vadd.f32 %v1077_v62, %v952_v0  ;;  %v1182_v9 = vadd.f32 %v1181_v63, %v1016_v1 }
 0x123   :  { %v1091_v10 = vadd.f32 %v1090_v4, %v953_v6  ;;  %v1195_v11 = vadd.f32 %v1194_v5, %v1017_v7 }
 0x125   :  { %v647_v12 = vpop.f32.mrb[8].mxu0  ;;  %v807_v13 = vpop.f32.mrb[8].mxu1 }
 0x126   :  { %v954_v14 = vmax.f32 %v647_v12, 0.0  ;;  %v1018_v15 = vmax.f32 %v807_v13, 0.0  ;;  %v649_v16 = vpop.f32.mrb[9].mxu0  ;;  %v809_v17 = vpop.f32.mrb[9].mxu1 }
 0x127   :  { %v955_v18 = vmax.f32 %v649_v16, 0.0  ;;  %v1019_v19 = vmax.f32 %v809_v17, 0.0  ;;  %v651_v20 = vpop.f32.mrb[10].mxu0  ;;  %v811_v21 = vpop.f32.mrb[10].mxu1 }
 0x128   :  { %v1079_v22 = vadd.f32 %v1078_v8, %v954_v14  ;;  %v1183_v23 = vadd.f32 %v1182_v9, %v1018_v15  ;;  %v956_v24 = vmax.f32 %v651_v20, 0.0  ;;  %v1020_v25 = vmax.f32 %v811_v21, 0.0  ;;  %v653_v26 = vpop.f32.mrb[11].mxu0  ;;  %v813_v27 = vpop.f32.mrb[11].mxu1 }
 0x129   :  { %v1092_v28 = vadd.f32 %v1091_v10, %v955_v18  ;;  %v1196_v29 = vadd.f32 %v1195_v11, %v1019_v19  ;;  %v957_v30 = vmax.f32 %v653_v26, 0.0  ;;  %v1021_v31 = vmax.f32 %v813_v27, 0.0 }
 0x12a   :  { %v1080_v32 = vadd.f32 %v1079_v22, %v956_v24  ;;  %v1184_v33 = vadd.f32 %v1183_v23, %v1020_v25 }
 0x12b   :  { %v1093_v34 = vadd.f32 %v1092_v28, %v957_v30  ;;  %v1197_v35 = vadd.f32 %v1196_v29, %v1021_v31 }
 0x12d   :  { %v657_v36 = vpop.f32.mrb[12].mxu0  ;;  %v817_v37 = vpop.f32.mrb[12].mxu1 }
 0x12e   :  { %v958_v38 = vmax.f32 %v657_v36, 0.0  ;;  %v1022_v39 = vmax.f32 %v817_v37, 0.0  ;;  %v659_v40 = vpop.f32.mrb[13].mxu0  ;;  %v819_v41 = vpop.f32.mrb[13].mxu1 }
 0x12f   :  { %v959_v42 = vmax.f32 %v659_v40, 0.0  ;;  %v1023_v43 = vmax.f32 %v819_v41, 0.0  ;;  %v661_v44 = vpop.f32.mrb[14].mxu0  ;;  %v821_v45 = vpop.f32.mrb[14].mxu1 }
 0x130   :  { %v1081_v46 = vadd.f32 %v1080_v32, %v958_v38  ;;  %v1185_v47 = vadd.f32 %v1184_v33, %v1022_v39  ;;  %v960_v48 = vmax.f32 %v661_v44, 0.0  ;;  %v1024_v49 = vmax.f32 %v821_v45, 0.0  ;;  %v663_v50 = vpop.f32.mrb[15].mxu0  ;;  %v823_v51 = vpop.f32.mrb[15].mxu1 }
 0x131   :  { %v1094_v52 = vadd.f32 %v1093_v34, %v959_v42  ;;  %v1198_v53 = vadd.f32 %v1197_v35, %v1023_v43  ;;  %v961_v54 = vmax.f32 %v663_v50, 0.0  ;;  %v1025_v55 = vmax.f32 %v823_v51, 0.0 }
 0x132   :  { %v1916_v56 = vadd.f32 %v1081_v46, %v960_v48  ;;  %v1918_v57 = vadd.f32 %v1185_v47, %v1024_v49 }
 0x133   :  { %v1920_v58 = vadd.f32 %v1094_v52, %v961_v54  ;;  %v1922_v59 = vadd.f32 %v1198_v53, %v1025_v55 }
 0x135   :  { %v667_v60 = vpop.f32.mrb[16].mxu0  ;;  %v827_v61 = vpop.f32.mrb[16].mxu1 }
 0x136   :  { %v669_v62 = vpop.f32.mrb[17].mxu0  ;;  %v1026_v63 = vmax.f32 %v827_v61, 0.0  ;;  %v829_v0 = vpop.f32.mrb[17].mxu1  ;;  %v962_v4 = vmax.f32 %v667_v60, 0.0 }
 0x137   :  { %v671_v1 = vpop.f32.mrb[18].mxu0  ;;  %v1027_v2 = vmax.f32 %v829_v0, 0.0  ;;  %v831_v3 = vpop.f32.mrb[18].mxu1  ;;  %v963_v9 = vmax.f32 %v669_v62, 0.0  ;;  %v1083_v0 = vrot.slane %v1916_v56, 4 }
 0x138   :  { %v964_v5 = vmax.f32 %v671_v1, 0.0  ;;  %v673_v6 = vpop.f32.mrb[19].mxu0  ;;  %v1028_v7 = vmax.f32 %v831_v3, 0.0  ;;  %v833_v8 = vpop.f32.mrb[19].mxu1  ;;  %v1096_v3 = vrot.slane %v1920_v58, 4 }
 0x139   :  { %v965_v10 = vmax.f32 %v673_v6, 0.0  ;;  %v1029_v11 = vmax.f32 %v833_v8, 0.0  ;;  %v1084_v8 = vadd.f32 %v1083_v0, %v1916_v56 }
 0x13a   :  { %v1102_v12 = vadd.f32 %v964_v5, %v962_v4  ;;  %v1206_v13 = vadd.f32 %v1028_v7, %v1026_v63 }
 0x13b   :  { %v1115_v14 = vadd.f32 %v965_v10, %v963_v9  ;;  %v1219_v15 = vadd.f32 %v1029_v11, %v1027_v2 }
 0x13d   :  { %v677_v16 = vpop.f32.mrb[20].mxu0  ;;  %v837_v17 = vpop.f32.mrb[20].mxu1 }
 0x13e   :  { %v966_v18 = vmax.f32 %v677_v16, 0.0  ;;  %v1030_v19 = vmax.f32 %v837_v17, 0.0  ;;  %v679_v20 = vpop.f32.mrb[21].mxu0  ;;  %v839_v21 = vpop.f32.mrb[21].mxu1 }
 0x13f   :  { %v967_v22 = vmax.f32 %v679_v20, 0.0  ;;  %v1031_v23 = vmax.f32 %v839_v21, 0.0  ;;  %v681_v24 = vpop.f32.mrb[22].mxu0  ;;  %v841_v25 = vpop.f32.mrb[22].mxu1 }
 0x140   :  { %v1103_v26 = vadd.f32 %v1102_v12, %v966_v18  ;;  %v1207_v27 = vadd.f32 %v1206_v13, %v1030_v19  ;;  %v968_v28 = vmax.f32 %v681_v24, 0.0  ;;  %v1032_v29 = vmax.f32 %v841_v25, 0.0  ;;  %v683_v30 = vpop.f32.mrb[23].mxu0  ;;  %v843_v31 = vpop.f32.mrb[23].mxu1 }
 0x141   :  { %v1116_v32 = vadd.f32 %v1115_v14, %v967_v22  ;;  %v1220_v33 = vadd.f32 %v1219_v15, %v1031_v23  ;;  %v969_v34 = vmax.f32 %v683_v30, 0.0  ;;  %v1033_v35 = vmax.f32 %v843_v31, 0.0 }
 0x142   :  { %v1104_v36 = vadd.f32 %v1103_v26, %v968_v28  ;;  %v1208_v37 = vadd.f32 %v1207_v27, %v1032_v29  ;;  %v1097_v13 = vadd.f32 %v1096_v3, %v1920_v58  ;;  %v1085_v27 = vrot.slane %v1084_v8, 2 }
 0x143   :  { %v1117_v38 = vadd.f32 %v1116_v32, %v969_v34  ;;  %v1221_v39 = vadd.f32 %v1220_v33, %v1033_v35 }
 0x144   :  { %v1098_v30 = vrot.slane %v1097_v13, 2 }
 0x145   :  { %v687_v40 = vpop.f32.mrb[24].mxu0  ;;  %v847_v41 = vpop.f32.mrb[24].mxu1 }
 0x146   :  { %v970_v42 = vmax.f32 %v687_v40, 0.0  ;;  %v1034_v43 = vmax.f32 %v847_v41, 0.0  ;;  %v689_v44 = vpop.f32.mrb[25].mxu0  ;;  %v849_v45 = vpop.f32.mrb[25].mxu1  ;;  %v1099_v41 = vadd.f32 %v1098_v30, %v1097_v13 }
 0x147   :  { %v971_v46 = vmax.f32 %v689_v44, 0.0  ;;  %v1035_v47 = vmax.f32 %v849_v45, 0.0  ;;  %v691_v48 = vpop.f32.mrb[26].mxu0  ;;  %v851_v49 = vpop.f32.mrb[26].mxu1 }
 0x148   :  { %v1105_v50 = vadd.f32 %v1104_v36, %v970_v42  ;;  %v1209_v51 = vadd.f32 %v1208_v37, %v1034_v43  ;;  %v972_v52 = vmax.f32 %v691_v48, 0.0  ;;  %v1036_v53 = vmax.f32 %v851_v49, 0.0  ;;  %v693_v54 = vpop.f32.mrb[27].mxu0  ;;  %v853_v55 = vpop.f32.mrb[27].mxu1 }
 0x149   :  { %v1118_v60 = vadd.f32 %v1117_v38, %v971_v46  ;;  %v1222_v61 = vadd.f32 %v1221_v39, %v1035_v47  ;;  %v973_v62 = vmax.f32 %v693_v54, 0.0  ;;  %v1037_v63 = vmax.f32 %v853_v55, 0.0 }
 0x14a   :  { %v1106_v1 = vadd.f32 %v1105_v50, %v972_v52  ;;  %v1210_v2 = vadd.f32 %v1209_v51, %v1036_v53  ;;  %v1086_v36 = vadd.f32 %v1085_v27, %v1084_v8  ;;  %v1100_v0 = vrot.slane %v1099_v41, 1 }
 0x14b   :  { %v1119_v4 = vadd.f32 %v1118_v60, %v973_v62  ;;  %v1223_v5 = vadd.f32 %v1222_v61, %v1037_v63 }
 0x14c   :  { %v1087_v60 = vrot.slane %v1086_v36, 1 }
 0x14d   :  { %v697_v6 = vpop.f32.mrb[28].mxu0  ;;  %v857_v7 = vpop.f32.mrb[28].mxu1 }
 0x14e   :  { %v974_v9 = vmax.f32 %v697_v6, 0.0  ;;  %v1038_v10 = vmax.f32 %v857_v7, 0.0  ;;  %v699_v11 = vpop.f32.mrb[29].mxu0  ;;  %v859_v12 = vpop.f32.mrb[29].mxu1  ;;  %v1088_v8 = vadd.f32 %v1087_v60, %v1086_v36 }
 0x14f   :  { %v975_v14 = vmax.f32 %v699_v11, 0.0  ;;  %v1039_v15 = vmax.f32 %v859_v12, 0.0  ;;  %v701_v16 = vpop.f32.mrb[30].mxu0  ;;  %v861_v17 = vpop.f32.mrb[30].mxu1 }
 0x150   :  { %v1107_v18 = vadd.f32 %v1106_v1, %v974_v9  ;;  %v1211_v19 = vadd.f32 %v1210_v2, %v1038_v10  ;;  %v976_v20 = vmax.f32 %v701_v16, 0.0  ;;  %v1040_v21 = vmax.f32 %v861_v17, 0.0  ;;  %v703_v22 = vpop.f32.mrb[31].mxu0  ;;  %v863_v23 = vpop.f32.mrb[31].mxu1 }
 0x151   :  { %v1120_v24 = vadd.f32 %v1119_v4, %v975_v14  ;;  %v1224_v25 = vadd.f32 %v1223_v5, %v1039_v15  ;;  %v977_v26 = vmax.f32 %v703_v22, 0.0  ;;  %v1041_v56 = vmax.f32 %v863_v23, 0.0 }
 0x152   :  { %v1108_v28 = vadd.f32 %v1107_v18, %v976_v20  ;;  %v1928_v29 = vadd.f32 %v1211_v19, %v1040_v21  ;;  %v1101_v14 = vadd.f32 %v1100_v0, %v1099_v41 }
 0x153   :  { %v1121_v58 = vadd.f32 %v1120_v24, %v977_v26  ;;  %v1930_v31 = vadd.f32 %v1224_v25, %v1041_v56 }
 0x154   :  { %v1109_v32 = vrot.slane %v1108_v28, 4 }
 0x155   :  { %v1122_v33 = vrot.slane %v1121_v58, 4  ;;  %v707_v34 = vpop.f32.mrb[32].mxu0  ;;  %v867_v35 = vpop.f32.mrb[32].mxu1 }
 0x156   :  { %v1110_v37 = vadd.f32 %v1109_v32, %v1108_v28  ;;  %v709_v38 = vpop.f32.mrb[33].mxu0  ;;  %v1042_v39 = vmax.f32 %v867_v35, 0.0  ;;  %v869_v40 = vpop.f32.mrb[33].mxu1  ;;  %v978_v47 = vmax.f32 %v707_v34, 0.0 }
 0x157   :  { %v1123_v42 = vadd.f32 %v1122_v33, %v1121_v58  ;;  %v711_v43 = vpop.f32.mrb[34].mxu0  ;;  %v1043_v44 = vmax.f32 %v869_v40, 0.0  ;;  %v871_v45 = vpop.f32.mrb[34].mxu1  ;;  %v979_v53 = vmax.f32 %v709_v38, 0.0 }
 0x158   :  { %v1111_v46 = vrot.slane %v1110_v37, 2  ;;  %v980_v48 = vmax.f32 %v711_v43, 0.0  ;;  %v713_v49 = vpop.f32.mrb[35].mxu0  ;;  %v1044_v50 = vmax.f32 %v871_v45, 0.0  ;;  %v873_v51 = vpop.f32.mrb[35].mxu1 }
 0x159   :  { %v1124_v52 = vrot.slane %v1123_v42, 2  ;;  %v981_v54 = vmax.f32 %v713_v49, 0.0  ;;  %v1045_v55 = vmax.f32 %v873_v51, 0.0 }
 0x15a   :  { %v1112_v61 = vadd.f32 %v1111_v46, %v1110_v37  ;;  %v1128_v62 = vadd.f32 %v980_v48, %v978_v47  ;;  %v1232_v63 = vadd.f32 %v1044_v50, %v1042_v39 }
 0x15b   :  { %v1125_v1 = vadd.f32 %v1124_v52, %v1123_v42  ;;  %v1141_v2 = vadd.f32 %v981_v54, %v979_v53  ;;  %v1245_v3 = vadd.f32 %v1045_v55, %v1043_v44 }
 0x15c   :  { %v1113_v4 = vrot.slane %v1112_v61, 1 }
 0x15d   :  { %v1126_v5 = vrot.slane %v1125_v1, 1  ;;  %v717_v6 = vpop.f32.mrb[36].mxu0  ;;  %v877_v7 = vpop.f32.mrb[36].mxu1 }
 0x15e   :  { %v1114_v9 = vadd.f32 %v1113_v4, %v1112_v61  ;;  %v982_v10 = vmax.f32 %v717_v6, 0.0  ;;  %v1046_v11 = vmax.f32 %v877_v7, 0.0  ;;  %v719_v12 = vpop.f32.mrb[37].mxu0  ;;  %v879_v13 = vpop.f32.mrb[37].mxu1 }
 0x15f   :  { %v1127_v15 = vadd.f32 %v1126_v5, %v1125_v1  ;;  %v983_v16 = vmax.f32 %v719_v12, 0.0  ;;  %v1047_v17 = vmax.f32 %v879_v13, 0.0  ;;  %v721_v18 = vpop.f32.mrb[38].mxu0  ;;  %v881_v19 = vpop.f32.mrb[38].mxu1 }
 0x160   :  { %v1933_v20 = vsel %vm1300_vm0, %v1114_v9, %v1088_v8  ;;  %v1129_v21 = vadd.f32 %v1128_v62, %v982_v10  ;;  %v1233_v22 = vadd.f32 %v1232_v63, %v1046_v11  ;;  %v984_v23 = vmax.f32 %v721_v18, 0.0  ;;  %v723_v24 = vpop.f32.mrb[39].mxu0  ;;  %v883_v25 = vpop.f32.mrb[39].mxu1 }
 0x161   :  { %v1936_v26 = vsel %vm1300_vm0, %v1127_v15, %v1101_v14  ;;  %v1142_v56 = vadd.f32 %v1141_v2, %v983_v16  ;;  %v1246_v27 = vadd.f32 %v1245_v3, %v1047_v17  ;;  %v1048_v28 = vmax.f32 %v881_v19, 0.0 }
 0x162   :  { %v1130_v30 = vadd.f32 %v1129_v21, %v984_v23  ;;  %v985_v58 = vmax.f32 %v723_v24, 0.0  ;;  %v1049_v32 = vmax.f32 %v883_v25, 0.0 }
 0x163   :  { %v1234_v33 = vadd.f32 %v1233_v22, %v1048_v28 }
 0x164   :  { %v1143_v34 = vadd.f32 %v1142_v56, %v985_v58  ;;  %v1247_v35 = vadd.f32 %v1246_v27, %v1049_v32 }
 0x165   :  { %v727_v36 = vpop.f32.mrb[40].mxu0  ;;  %v887_v37 = vpop.f32.mrb[40].mxu1 }
 0x166   :  { %v986_v38 = vmax.f32 %v727_v36, 0.0  ;;  %v1050_v39 = vmax.f32 %v887_v37, 0.0  ;;  %v729_v40 = vpop.f32.mrb[41].mxu0  ;;  %v889_v41 = vpop.f32.mrb[41].mxu1 }
 0x167   :  { %v987_v42 = vmax.f32 %v729_v40, 0.0  ;;  %v1051_v43 = vmax.f32 %v889_v41, 0.0  ;;  %v731_v44 = vpop.f32.mrb[42].mxu0  ;;  %v891_v45 = vpop.f32.mrb[42].mxu1 }
 0x168   :  { %v1131_v46 = vadd.f32 %v1130_v30, %v986_v38  ;;  %v1235_v47 = vadd.f32 %v1234_v33, %v1050_v39  ;;  %v988_v48 = vmax.f32 %v731_v44, 0.0  ;;  %v1052_v49 = vmax.f32 %v891_v45, 0.0  ;;  %v733_v50 = vpop.f32.mrb[43].mxu0  ;;  %v893_v51 = vpop.f32.mrb[43].mxu1 }
 0x169   :  { %v1144_v52 = vadd.f32 %v1143_v34, %v987_v42  ;;  %v1248_v53 = vadd.f32 %v1247_v35, %v1051_v43  ;;  %v989_v54 = vmax.f32 %v733_v50, 0.0  ;;  %v1053_v55 = vmax.f32 %v893_v51, 0.0 }
 0x16a   :  { %v1132_v60 = vadd.f32 %v1131_v46, %v988_v48  ;;  %v1236_v61 = vadd.f32 %v1235_v47, %v1052_v49 }
 0x16b   :  { %v1145_v62 = vadd.f32 %v1144_v52, %v989_v54  ;;  %v1249_v63 = vadd.f32 %v1248_v53, %v1053_v55 }
 0x16d   :  { %v737_v0 = vpop.f32.mrb[44].mxu0  ;;  %v897_v1 = vpop.f32.mrb[44].mxu1 }
 0x16e   :  { %v990_v2 = vmax.f32 %v737_v0, 0.0  ;;  %v1054_v3 = vmax.f32 %v897_v1, 0.0  ;;  %v739_v4 = vpop.f32.mrb[45].mxu0  ;;  %v899_v5 = vpop.f32.mrb[45].mxu1 }
 0x16f   :  { %v991_v6 = vmax.f32 %v739_v4, 0.0  ;;  %v1055_v7 = vmax.f32 %v899_v5, 0.0  ;;  %v741_v8 = vpop.f32.mrb[46].mxu0  ;;  %v901_v9 = vpop.f32.mrb[46].mxu1 }
 0x170   :  { %v1133_v10 = vadd.f32 %v1132_v60, %v990_v2  ;;  %v1237_v11 = vadd.f32 %v1236_v61, %v1054_v3  ;;  %v992_v12 = vmax.f32 %v741_v8, 0.0  ;;  %v1056_v13 = vmax.f32 %v901_v9, 0.0  ;;  %v743_v14 = vpop.f32.mrb[47].mxu0  ;;  %v903_v15 = vpop.f32.mrb[47].mxu1 }
 0x171   :  { %v1146_v16 = vadd.f32 %v1145_v62, %v991_v6  ;;  %v1250_v17 = vadd.f32 %v1249_v63, %v1055_v7  ;;  %v993_v18 = vmax.f32 %v743_v14, 0.0  ;;  %v1057_v19 = vmax.f32 %v903_v15, 0.0 }
 0x172   :  { %v1134_v21 = vadd.f32 %v1133_v10, %v992_v12  ;;  %v1938_v22 = vadd.f32 %v1237_v11, %v1056_v13 }
 0x173   :  { %v1147_v23 = vadd.f32 %v1146_v16, %v993_v18  ;;  %v1940_v24 = vadd.f32 %v1250_v17, %v1057_v19 }
 0x174   :  { %v1135_v25 = vrot.slane %v1134_v21, 4 }
 0x175   :  { %v1148_v56 = vrot.slane %v1147_v23, 4  ;;  %v747_v27 = vpop.f32.mrb[48].mxu0  ;;  %v907_v28 = vpop.f32.mrb[48].mxu1 }
 0x176   :  { %v1136_v30 = vadd.f32 %v1135_v25, %v1134_v21  ;;  %v749_v58 = vpop.f32.mrb[49].mxu0  ;;  %v1058_v32 = vmax.f32 %v907_v28, 0.0  ;;  %v909_v33 = vpop.f32.mrb[49].mxu1  ;;  %v994_v39 = vmax.f32 %v747_v27, 0.0 }
 0x177   :  { %v1149_v34 = vadd.f32 %v1148_v56, %v1147_v23  ;;  %v751_v35 = vpop.f32.mrb[50].mxu0  ;;  %v1059_v36 = vmax.f32 %v909_v33, 0.0  ;;  %v911_v37 = vpop.f32.mrb[50].mxu1  ;;  %v995_v45 = vmax.f32 %v749_v58, 0.0  ;;  %v1187_v33 = vrot.slane %v1918_v57, 4 }
 0x178   :  { %v1137_v38 = vrot.slane %v1136_v30, 2  ;;  %v996_v40 = vmax.f32 %v751_v35, 0.0  ;;  %v753_v41 = vpop.f32.mrb[51].mxu0  ;;  %v1060_v42 = vmax.f32 %v911_v37, 0.0  ;;  %v913_v43 = vpop.f32.mrb[51].mxu1 }
 0x179   :  { %v1150_v44 = vrot.slane %v1149_v34, 2  ;;  %v997_v46 = vmax.f32 %v753_v41, 0.0  ;;  %v1061_v47 = vmax.f32 %v913_v43, 0.0 }
 0x17a   :  { %v1138_v48 = vadd.f32 %v1137_v38, %v1136_v30  ;;  %v1154_v49 = vadd.f32 %v996_v40, %v994_v39  ;;  %v1258_v50 = vadd.f32 %v1060_v42, %v1058_v32 }
 0x17b   :  { %v1151_v51 = vadd.f32 %v1150_v44, %v1149_v34  ;;  %v1167_v52 = vadd.f32 %v997_v46, %v995_v45  ;;  %v1271_v53 = vadd.f32 %v1061_v47, %v1059_v36 }
 0x17c   :  { %v1139_v54 = vrot.slane %v1138_v48, 1 }
 0x17d   :  { %v1152_v55 = vrot.slane %v1151_v51, 1  ;;  %v757_v60 = vpop.f32.mrb[52].mxu0  ;;  %v917_v61 = vpop.f32.mrb[52].mxu1 }
 0x17e   :  { %v1140_v62 = vadd.f32 %v1139_v54, %v1138_v48  ;;  %v998_v63 = vmax.f32 %v757_v60, 0.0  ;;  %v1062_v0 = vmax.f32 %v917_v61, 0.0  ;;  %v759_v1 = vpop.f32.mrb[53].mxu0  ;;  %v919_v2 = vpop.f32.mrb[53].mxu1  ;;  %v1213_v48 = vrot.slane %v1928_v29, 4 }
 0x17f   :  { %v1153_v3 = vadd.f32 %v1152_v55, %v1151_v51  ;;  %v999_v4 = vmax.f32 %v759_v1, 0.0  ;;  %v1063_v5 = vmax.f32 %v919_v2, 0.0  ;;  %v761_v6 = vpop.f32.mrb[54].mxu0  ;;  %v921_v7 = vpop.f32.mrb[54].mxu1  ;;  %v1226_v51 = vrot.slane %v1930_v31, 4 }
 0x180   :  { %v1944_v8 = vsel %vm1302_vm1, %v1140_v62, %v1933_v20  ;;  %v1155_v9 = vadd.f32 %v1154_v49, %v998_v63  ;;  %v1259_v10 = vadd.f32 %v1258_v50, %v1062_v0  ;;  %v1000_v11 = vmax.f32 %v761_v6, 0.0  ;;  %v763_v12 = vpop.f32.mrb[55].mxu0  ;;  %v923_v13 = vpop.f32.mrb[55].mxu1 }
 0x181   :  { %v1948_v14 = vsel %vm1302_vm1, %v1153_v3, %v1936_v26  ;;  %v1168_v15 = vadd.f32 %v1167_v52, %v999_v4  ;;  %v1272_v16 = vadd.f32 %v1271_v53, %v1063_v5  ;;  %v1064_v17 = vmax.f32 %v921_v7, 0.0 }
 0x182   :  { %v1156_v18 = vadd.f32 %v1155_v9, %v1000_v11  ;;  %v1001_v19 = vmax.f32 %v763_v12, 0.0  ;;  %v1065_v21 = vmax.f32 %v923_v13, 0.0  ;;  %v1200_v26 = vrot.slane %v1922_v59, 4 }
 0x183   :  { %v1260_v23 = vadd.f32 %v1259_v10, %v1064_v17  ;;  %v1239_v52 = vrot.slane %v1938_v22, 4  ;;  %v1188_v55 = vadd.f32 %v1187_v33, %v1918_v57  ;;  %v1214_v63 = vadd.f32 %v1213_v48, %v1928_v29 }
 0x184   :  { %v1169_v25 = vadd.f32 %v1168_v15, %v1001_v19  ;;  %v1273_v56 = vadd.f32 %v1272_v16, %v1065_v21  ;;  %v1201_v60 = vadd.f32 %v1200_v26, %v1922_v59  ;;  %v1252_v0 = vrot.slane %v1940_v24, 4 }
 0x185   :  { %v767_v20 = vpop.f32.mrb[56].mxu0  ;;  %v927_v27 = vpop.f32.mrb[56].mxu1  ;;  %v1227_v5 = vadd.f32 %v1226_v51, %v1930_v31  ;;  %v1240_v6 = vadd.f32 %v1239_v52, %v1938_v22 }
 0x186   :  { %v1002_v28 = vmax.f32 %v767_v20, 0.0  ;;  %v1066_v30 = vmax.f32 %v927_v27, 0.0  ;;  %v769_v58 = vpop.f32.mrb[57].mxu0  ;;  %v929_v32 = vpop.f32.mrb[57].mxu1  ;;  %v1253_v21 = vadd.f32 %v1252_v0, %v1940_v24  ;;  %v1202_v20 = vrot.slane %v1201_v60, 2 }
 0x187   :  { %v1003_v34 = vmax.f32 %v769_v58, 0.0  ;;  %v1067_v35 = vmax.f32 %v929_v32, 0.0  ;;  %v771_v36 = vpop.f32.mrb[58].mxu0  ;;  %v931_v37 = vpop.f32.mrb[58].mxu1  ;;  %v1215_v27 = vrot.slane %v1214_v63, 2  ;;  %v1228_v58 = vrot.slane %v1227_v5, 2 }
 0x188   :  { %v1157_v38 = vadd.f32 %v1156_v18, %v1002_v28  ;;  %v1261_v39 = vadd.f32 %v1260_v23, %v1066_v30  ;;  %v1004_v40 = vmax.f32 %v771_v36, 0.0  ;;  %v1068_v41 = vmax.f32 %v931_v37, 0.0  ;;  %v773_v42 = vpop.f32.mrb[59].mxu0  ;;  %v933_v43 = vpop.f32.mrb[59].mxu1 }
 0x189   :  { %v1170_v44 = vadd.f32 %v1169_v25, %v1003_v34  ;;  %v1274_v45 = vadd.f32 %v1273_v56, %v1067_v35  ;;  %v1005_v46 = vmax.f32 %v773_v42, 0.0  ;;  %v1069_v47 = vmax.f32 %v933_v43, 0.0 }
 0x18a   :  { %v1158_v49 = vadd.f32 %v1157_v38, %v1004_v40  ;;  %v1262_v50 = vadd.f32 %v1261_v39, %v1068_v41  ;;  %v1189_v25 = vrot.slane %v1188_v55, 2  ;;  %v1241_v32 = vrot.slane %v1240_v6, 2 }
 0x18b   :  { %v1171_v53 = vadd.f32 %v1170_v44, %v1005_v46  ;;  %v1275_v54 = vadd.f32 %v1274_v45, %v1069_v47  ;;  %v1254_v34 = vrot.slane %v1253_v21, 2  ;;  %v1203_v24 = vadd.f32 %v1202_v20, %v1201_v60 }
 0x18c   :  { %v1190_v37 = vadd.f32 %v1189_v25, %v1188_v55  ;;  %v1216_v40 = vadd.f32 %v1215_v27, %v1214_v63  ;;  %v1229_v43 = vadd.f32 %v1228_v58, %v1227_v5  ;;  %v1242_v44 = vadd.f32 %v1241_v32, %v1240_v6 }
 0x18d   :  { %v777_v61 = vpop.f32.mrb[60].mxu0  ;;  %v937_v62 = vpop.f32.mrb[60].mxu1  ;;  %v1255_v47 = vadd.f32 %v1254_v34, %v1253_v21 }
 0x18e   :  { %v1006_v1 = vmax.f32 %v777_v61, 0.0  ;;  %v1070_v2 = vmax.f32 %v937_v62, 0.0  ;;  %v779_v3 = vpop.f32.mrb[61].mxu0  ;;  %v939_v4 = vpop.f32.mrb[61].mxu1  ;;  %v1230_v61 = vrot.slane %v1229_v43, 1  ;;  %v1243_v60 = vrot.slane %v1242_v44, 1 }
 0x18f   :  { %v1007_v7 = vmax.f32 %v779_v3, 0.0  ;;  %v1071_v9 = vmax.f32 %v939_v4, 0.0  ;;  %v781_v10 = vpop.f32.mrb[62].mxu0  ;;  %v941_v57 = vpop.f32.mrb[62].mxu1  ;;  %v1256_v63 = vrot.slane %v1255_v47, 1 }
 0x190   :  { %v1159_v11 = vadd.f32 %v1158_v49, %v1006_v1  ;;  %v1263_v59 = vadd.f32 %v1262_v50, %v1070_v2  ;;  %v1008_v12 = vmax.f32 %v781_v10, 0.0  ;;  %v1072_v13 = vmax.f32 %v941_v57, 0.0  ;;  %v783_v15 = vpop.f32.mrb[63].mxu0  ;;  %v943_v29 = vpop.f32.mrb[63].mxu1 }
 0x191   :  { %v1172_v16 = vadd.f32 %v1171_v53, %v1007_v7  ;;  %v1276_v17 = vadd.f32 %v1275_v54, %v1071_v9  ;;  %v1009_v18 = vmax.f32 %v783_v15, 0.0  ;;  %v1073_v19 = vmax.f32 %v943_v29, 0.0 }
 0x192   :  { %v1160_v23 = vadd.f32 %v1159_v11, %v1008_v12  ;;  %v1264_v31 = vadd.f32 %v1263_v59, %v1072_v13  ;;  %v1191_v50 = vrot.slane %v1190_v37, 1  ;;  %v1204_v53 = vrot.slane %v1203_v24, 1 }
 0x193   :  { %v1173_v22 = vadd.f32 %v1172_v16, %v1009_v18  ;;  %v1277_v56 = vadd.f32 %v1276_v17, %v1073_v19  ;;  %v1217_v54 = vrot.slane %v1216_v40, 1  ;;  %v1231_v9 = vadd.f32 %v1230_v61, %v1229_v43 }
 0x194   :  { %v1161_v28 = vrot.slane %v1160_v23, 4  ;;  %v1265_v30 = vrot.slane %v1264_v31, 4  ;;  %v1192_v2 = vadd.f32 %v1191_v50, %v1190_v37  ;;  %v1205_v5 = vadd.f32 %v1204_v53, %v1203_v24 }
 0x195   :  { %v1174_v33 = vrot.slane %v1173_v22, 4  ;;  %v1278_v26 = vrot.slane %v1277_v56, 4  ;;  %v1218_v6 = vadd.f32 %v1217_v54, %v1216_v40  ;;  %v1244_v10 = vadd.f32 %v1243_v60, %v1242_v44 }
 0x196   :  { %v1162_v35 = vadd.f32 %v1161_v28, %v1160_v23  ;;  %v1266_v36 = vadd.f32 %v1265_v30, %v1264_v31  ;;  %v1257_v59 = vadd.f32 %v1256_v63, %v1255_v47 }
 0x197   :  { %v1175_v38 = vadd.f32 %v1174_v33, %v1173_v22  ;;  %v1279_v39 = vadd.f32 %v1278_v26, %v1277_v56 }
 0x198   :  { %v1163_v41 = vrot.slane %v1162_v35, 2  ;;  %v1267_v42 = vrot.slane %v1266_v36, 2 }
 0x199   :  { %v1176_v45 = vrot.slane %v1175_v38, 2  ;;  %v1280_v46 = vrot.slane %v1279_v39, 2 }
 0x19a   :  { %v1164_v48 = vadd.f32 %v1163_v41, %v1162_v35  ;;  %v1268_v49 = vadd.f32 %v1267_v42, %v1266_v36 }
 0x19b   :  { %v1177_v51 = vadd.f32 %v1176_v45, %v1175_v38  ;;  %v1281_v52 = vadd.f32 %v1280_v46, %v1279_v39 }
 0x19c   :  { %v1165_v55 = vrot.slane %v1164_v48, 1  ;;  %v1269_v1 = vrot.slane %v1268_v49, 1 }
 0x19d   :  { %v1178_v62 = vrot.slane %v1177_v51, 1  ;;  %v1282_v4 = vrot.slane %v1281_v52, 1 }
 0x19e   :  { %v1166_v0 = vadd.f32 %v1165_v55, %v1164_v48  ;;  %v1270_v12 = vadd.f32 %v1269_v1, %v1268_v49 }
 0x19f   :  { %v1179_v3 = vadd.f32 %v1178_v62, %v1177_v51  ;;  %v1283_v16 = vadd.f32 %v1282_v4, %v1281_v52 }
 0x1a0   :  { %v1305_v7 = vsel %vm1304_vm2, %v1166_v0, %v1944_v8 }
 0x1a1   :  { %v1307_v57 = vsel %vm1306_vm3, %v1192_v2, %v1305_v7  ;;  %v1316_v11 = vsel %vm1304_vm2, %v1179_v3, %v1948_v14 }
 0x1a2   :  { %v1309_v13 = vsel %vm1308_vm4, %v1218_v6, %v1307_v57  ;;  %v1317_v15 = vsel %vm1306_vm3, %v1205_v5, %v1316_v11 }
 0x1a3   :  { %v1311_v29 = vsel %vm1310_vm5, %v1244_v10, %v1309_v13  ;;  %v1318_v17 = vsel %vm1308_vm4, %v1231_v9, %v1317_v15 }
 0x1a4   :  { %v1313_v8 = vsel %vm1312_vm6, %v1270_v12, %v1311_v29  ;;  %v1319_v18 = vsel %vm1310_vm5, %v1257_v59, %v1318_v17 }
 0x1a5   :  { %v1320_v19 = vsel %vm1312_vm6, %v1283_v16, %v1319_v18  ;;  %v1332_v21 = vmul.f32 0.015625, %v1313_v8 }
 0x1a6   :  { %v1333_v23 = vmul.f32 0.015625, %v1320_v19 }
 0x1a7   :  { %1334 = vst [vmem:[%s1980_s2] sm:$0xff] %v1332_v21 }
 0x1a8   :  { %1335 = vst [vmem:[%s1980_s2 + $0x8] sm:$0xff] %v1333_v23 }

// kernel: image_encoder_forward.3
= control target key start
LH: loop header
LB: loop body
LE: loop exit
PB: predicated region body
PF: predicated region fallthrough
CT: control target
= control target key end

     0   :  { %s8322_s1 = inlined_call_operand.vmem [shape: bf16[256,4864], index: 1, kind: input, shape index: {}]   ;;  %s8323_s0 = inlined_call_operand.vmem [shape: f32[8,256], index: 0, kind: input, shape index: {}]   ;;  %s8324_s2 = inlined_call_operand.vmem [shape: f32[1,4864], index: 2, kind: input, shape index: {}]   ;;  %s8325_s3 = inlined_call_operand.vmem [shape: f32[8,4864], index: 3, kind: output, shape index: {}]  }
   0x1   :  { %v5295_v0 = vld [vmem:[%s8322_s1 + $0x4] ss:$152 sps:$4 sm:$0xff]   ;;  %v5297_v1 = vld [vmem:[%s8322_s1] ss:$152 sps:$4 sm:$0xff]   ;;  %v5298_v2 = vld [vmem:[%s8322_s1 + $0x134] ss:$152 sps:$4 sm:$0xff]  }
   0x2   :  { %3866 = vmatprep.subr.bf16.mxu0 %v5295_v0  ;;  %v5300_v3 = vld [vmem:[%s8322_s1 + $0x130] ss:$152 sps:$4 sm:$0xff]   ;;  %v5301_v4 = vld [vmem:[%s8322_s1 + $0x264] ss:$152 sps:$4 sm:$0xff]   ;;  %v5303_v5 = vld [vmem:[%s8322_s1 + $0x260] ss:$152 sps:$4 sm:$0xff]  }
   0x3   :  { %3867 = vmatpush1.bf16.msra.mxu0 %v5297_v1  ;;  %v5304_v6 = vld [vmem:[%s8322_s1 + $0x394] ss:$152 sps:$4 sm:$0xff]   ;;  %v5306_v7 = vld [vmem:[%s8322_s1 + $0x390] ss:$152 sps:$4 sm:$0xff]   ;;  %v5307_v8 = vld [vmem:[%s8322_s1 + $0x4c4] ss:$152 sps:$4 sm:$0xff]  }
   0x4   :  { %3868 = vmatprep.subr.bf16.mxu0 %v5298_v2  ;;  %v5309_v9 = vld [vmem:[%s8322_s1 + $0x4c0] ss:$152 sps:$4 sm:$0xff]   ;;  %v5310_v10 = vld [vmem:[%s8322_s1 + $0x5f4] ss:$152 sps:$4 sm:$0xff]   ;;  %v5312_v11 = vld [vmem:[%s8322_s1 + $0x5f0] ss:$152 sps:$4 sm:$0xff]  }
   0x5   :  { %v5313_v12 = vld [vmem:[%s8322_s1 + $0x724] ss:$152 sps:$4 sm:$0xff]   ;;  %v5345_v14 = vld [vmem:[%s8322_s1 + $0x8] ss:$152 sps:$4 sm:$0xff]   ;;  %v5316_v18 = vld [vmem:[%s8322_s1 + $0x854] ss:$152 sps:$4 sm:$0xff]  }
   0x6   :  { %v5343_v13 = vld [vmem:[%s8322_s1 + $0xc] ss:$152 sps:$4 sm:$0xff]   ;;  %v5315_v16 = vld [vmem:[%s8322_s1 + $0x720] ss:$152 sps:$4 sm:$0xff]   ;;  %v5349_v19 = vld [vmem:[%s8322_s1 + $0x13c] ss:$152 sps:$4 sm:$0xff]  }
   0x7   :  { %3869 = vmatpush1.bf16.msra.mxu0 %v5300_v3  ;;  %v15_v15 = vld [vmem:[%s8323_s0 + $0x8] sm:$0xff]  ;;  %3907 = vmatprep.subr.bf16.mxu1 %v5343_v13  ;;  %v5351_v20 = vld [vmem:[%s8322_s1 + $0x138] ss:$152 sps:$4 sm:$0xff]   ;;  %v5319_v22 = vld [vmem:[%s8322_s1 + $0x984] ss:$152 sps:$4 sm:$0xff]  }
   0x8   :  { %3870 = vmatprep.subr.bf16.mxu0 %v5301_v4  ;;  %v6278_v17 = vpack.c.bf16 %v15_v15, %v15_v15  ;;  %3908 = vmatpush1.bf16.msra.mxu1 %v5345_v14  ;;  %v5318_v21 = vld [vmem:[%s8322_s1 + $0x850] ss:$152 sps:$4 sm:$0xff]   ;;  %v5355_v23 = vld [vmem:[%s8322_s1 + $0x26c] ss:$152 sps:$4 sm:$0xff]   ;;  %v5361_v25 = vld [vmem:[%s8322_s1 + $0x39c] ss:$152 sps:$4 sm:$0xff]  }
   0x9   :  { %3909 = vmatprep.subr.bf16.mxu1 %v5349_v19  ;;  %v5357_v24 = vld [vmem:[%s8322_s1 + $0x268] ss:$152 sps:$4 sm:$0xff]   ;;  %v5322_v27 = vld [vmem:[%s8322_s1 + $0xab4] ss:$152 sps:$4 sm:$0xff]   ;;  %v5363_v28 = vld [vmem:[%s8322_s1 + $0x398] ss:$152 sps:$4 sm:$0xff]  }
   0xa   :  { %3898 = vmatprep.mubr.bf16.mxu0 %v6278_v17  ;;  %3939 = vmatprep.mubr.bf16.mxu1 %v6278_v17  ;;  %v5321_v26 = vld [vmem:[%s8322_s1 + $0x980] ss:$152 sps:$4 sm:$0xff]   ;;  %v5367_v29 = vld [vmem:[%s8322_s1 + $0x4cc] ss:$152 sps:$4 sm:$0xff]   ;;  %v5324_v30 = vld [vmem:[%s8322_s1 + $0xab0] ss:$152 sps:$4 sm:$0xff]  }
   0xb   :  { %3871 = vmatpush1.bf16.msra.mxu0 %v5303_v5  ;;  %v5325_v31 = vld [vmem:[%s8322_s1 + $0xbe4] ss:$152 sps:$4 sm:$0xff]   ;;  %v5369_v32 = vld [vmem:[%s8322_s1 + $0x4c8] ss:$152 sps:$4 sm:$0xff]   ;;  %v5328_v35 = vld [vmem:[%s8322_s1 + $0xd14] ss:$152 sps:$4 sm:$0xff]  }
   0xc   :  { %3872 = vmatprep.subr.bf16.mxu0 %v5304_v6  ;;  %3910 = vmatpush1.bf16.msra.mxu1 %v5351_v20  ;;  %v5373_v33 = vld [vmem:[%s8322_s1 + $0x5fc] ss:$152 sps:$4 sm:$0xff]   ;;  %v5327_v34 = vld [vmem:[%s8322_s1 + $0xbe0] ss:$152 sps:$4 sm:$0xff]   ;;  %v5379_v37 = vld [vmem:[%s8322_s1 + $0x72c] ss:$152 sps:$4 sm:$0xff]  }
   0xd   :  { %3911 = vmatprep.subr.bf16.mxu1 %v5355_v23  ;;  %v5375_v36 = vld [vmem:[%s8322_s1 + $0x5f8] ss:$152 sps:$4 sm:$0xff]   ;;  %v5331_v39 = vld [vmem:[%s8322_s1 + $0xe44] ss:$152 sps:$4 sm:$0xff]   ;;  %v5381_v40 = vld [vmem:[%s8322_s1 + $0x728] ss:$152 sps:$4 sm:$0xff]  }
   0xe   :  { %v5330_v38 = vld [vmem:[%s8322_s1 + $0xd10] ss:$152 sps:$4 sm:$0xff]   ;;  %v5385_v41 = vld [vmem:[%s8322_s1 + $0x85c] ss:$152 sps:$4 sm:$0xff]   ;;  %v5333_v42 = vld [vmem:[%s8322_s1 + $0xe40] ss:$152 sps:$4 sm:$0xff]  }
   0xf   :  { %3873 = vmatpush1.bf16.msra.mxu0 %v5306_v7  ;;  %v5334_v43 = vld [vmem:[%s8322_s1 + $0xf74] ss:$152 sps:$4 sm:$0xff]   ;;  %v5387_v44 = vld [vmem:[%s8322_s1 + $0x858] ss:$152 sps:$4 sm:$0xff]   ;;  %v5337_v47 = vld [vmem:[%s8322_s1 + $0x10a4] ss:$152 sps:$4 sm:$0xff]  }
  0x10   :  { %3874 = vmatprep.subr.bf16.mxu0 %v5307_v8  ;;  %3912 = vmatpush1.bf16.msra.mxu1 %v5357_v24  ;;  %v5391_v45 = vld [vmem:[%s8322_s1 + $0x98c] ss:$152 sps:$4 sm:$0xff]   ;;  %v5336_v46 = vld [vmem:[%s8322_s1 + $0xf70] ss:$152 sps:$4 sm:$0xff]   ;;  %v5397_v49 = vld [vmem:[%s8322_s1 + $0xabc] ss:$152 sps:$4 sm:$0xff]  }
  0x11   :  { %3913 = vmatprep.subr.bf16.mxu1 %v5361_v25  ;;  %v5393_v48 = vld [vmem:[%s8322_s1 + $0x988] ss:$152 sps:$4 sm:$0xff]   ;;  %v5340_v51 = vld [vmem:[%s8322_s1 + $0x11d4] ss:$152 sps:$4 sm:$0xff]   ;;  %v5399_v53 = vld [vmem:[%s8322_s1 + $0xab8] ss:$152 sps:$4 sm:$0xff]  }
  0x12   :  { %v5339_v50 = vld [vmem:[%s8322_s1 + $0x10a0] ss:$152 sps:$4 sm:$0xff]   ;;  %v5342_v52 = vld [vmem:[%s8322_s1 + $0x11d0] ss:$152 sps:$4 sm:$0xff]   ;;  %v5403_v54 = vld [vmem:[%s8322_s1 + $0xbec] ss:$152 sps:$4 sm:$0xff]  }
  0x13   :  { %3875 = vmatpush1.bf16.msra.mxu0 %v5309_v9  ;;  %v14_v55 = vld [vmem:[%s8323_s0] sm:$0xff]  ;;  %v5348_v56 = vld [vmem:[%s8322_s1 + $0x14] ss:$152 sps:$4 sm:$0xff]   ;;  %v5346_v60 = vld [vmem:[%s8322_s1 + $0x10] ss:$152 sps:$4 sm:$0xff]  }
  0x14   :  { %3876 = vmatprep.subr.bf16.mxu0 %v5310_v10  ;;  %3914 = vmatpush1.bf16.msra.mxu1 %v5363_v28  ;;  %v5405_v57 = vld [vmem:[%s8322_s1 + $0xbe8] ss:$152 sps:$4 sm:$0xff]   ;;  %v6402_v58 = vpack.c.bf16 %v14_v55, %v14_v55  ;;  %v5409_v59 = vld [vmem:[%s8322_s1 + $0xd1c] ss:$152 sps:$4 sm:$0xff]   ;;  %v5411_v62 = vld [vmem:[%s8322_s1 + $0xd18] ss:$152 sps:$4 sm:$0xff]  }
  0x15   :  { %3915 = vmatprep.subr.bf16.mxu1 %v5367_v29  ;;  %v5354_v61 = vld [vmem:[%s8322_s1 + $0x144] ss:$152 sps:$4 sm:$0xff]   ;;  %v5352_v0 = vld [vmem:[%s8322_s1 + $0x140] ss:$152 sps:$4 sm:$0xff]   ;;  %v5360_v1 = vld [vmem:[%s8322_s1 + $0x274] ss:$152 sps:$4 sm:$0xff]  }
  0x16   :  { %v5415_v63 = vld [vmem:[%s8322_s1 + $0xe4c] ss:$152 sps:$4 sm:$0xff]   ;;  %v5417_v2 = vld [vmem:[%s8322_s1 + $0xe48] ss:$152 sps:$4 sm:$0xff]   ;;  %v5421_v3 = vld [vmem:[%s8322_s1 + $0xf7c] ss:$152 sps:$4 sm:$0xff]  }
  0x17   :  { %3877 = vmatpush1.bf16.msra.mxu0 %v5312_v11  ;;  %v5358_v4 = vld [vmem:[%s8322_s1 + $0x270] ss:$152 sps:$4 sm:$0xff]   ;;  %v5366_v5 = vld [vmem:[%s8322_s1 + $0x3a4] ss:$152 sps:$4 sm:$0xff]   ;;  %v5364_v8 = vld [vmem:[%s8322_s1 + $0x3a0] ss:$152 sps:$4 sm:$0xff]  }
  0x18   :  { %3878 = vmatprep.subr.bf16.mxu0 %v5313_v12  ;;  %3916 = vmatpush1.bf16.msra.mxu1 %v5369_v32  ;;  %v5423_v6 = vld [vmem:[%s8322_s1 + $0xf78] ss:$152 sps:$4 sm:$0xff]   ;;  %v5427_v7 = vld [vmem:[%s8322_s1 + $0x10ac] ss:$152 sps:$4 sm:$0xff]   ;;  %v5429_v10 = vld [vmem:[%s8322_s1 + $0x10a8] ss:$152 sps:$4 sm:$0xff]  }
  0x19   :  { %3917 = vmatprep.subr.bf16.mxu1 %v5373_v33  ;;  %v5372_v9 = vld [vmem:[%s8322_s1 + $0x4d4] ss:$152 sps:$4 sm:$0xff]   ;;  %v5370_v12 = vld [vmem:[%s8322_s1 + $0x4d0] ss:$152 sps:$4 sm:$0xff]   ;;  %v5378_v13 = vld [vmem:[%s8322_s1 + $0x604] ss:$152 sps:$4 sm:$0xff]  }
  0x1a   :  { %v5433_v11 = vld [vmem:[%s8322_s1 + $0x11dc] ss:$152 sps:$4 sm:$0xff]   ;;  %v5435_v14 = vld [vmem:[%s8322_s1 + $0x11d8] ss:$152 sps:$4 sm:$0xff]   ;;  %v5447_v20 = vld [vmem:[%s8322_s1 + $0x14c] ss:$152 sps:$4 sm:$0xff]  }
  0x1b   :  { %3879 = vmatpush1.bf16.msra.mxu0 %v5315_v16  ;;  %v5441_v15 = vld [vmem:[%s8322_s1 + $0x1c] ss:$152 sps:$4 sm:$0xff]   ;;  %v5376_v16 = vld [vmem:[%s8322_s1 + $0x600] ss:$152 sps:$4 sm:$0xff]   ;;  %v5459_v28 = vld [vmem:[%s8322_s1 + $0x3ac] ss:$152 sps:$4 sm:$0xff]  }
  0x1c   :  { %3880 = vmatprep.subr.bf16.mxu0 %v5316_v18  ;;  %3918 = vmatpush1.bf16.msra.mxu1 %v5375_v36  ;;  %v5384_v18 = vld [vmem:[%s8322_s1 + $0x734] ss:$152 sps:$4 sm:$0xff]   ;;  %v5439_v19 = vld [vmem:[%s8322_s1 + $0x18] ss:$152 sps:$4 sm:$0xff]   ;;  %v5445_v23 = vld [vmem:[%s8322_s1 + $0x148] ss:$152 sps:$4 sm:$0xff]  }
  0x1d   :  { %3919 = vmatprep.subr.bf16.mxu1 %v5379_v37  ;;  %v5453_v24 = vld [vmem:[%s8322_s1 + $0x27c] ss:$152 sps:$4 sm:$0xff]   ;;  %v5388_v25 = vld [vmem:[%s8322_s1 + $0x860] ss:$152 sps:$4 sm:$0xff]   ;;  %v5394_v29 = vld [vmem:[%s8322_s1 + $0x990] ss:$152 sps:$4 sm:$0xff]  }
  0x1e   :  { %v5465_v32 = vld [vmem:[%s8322_s1 + $0x4dc] ss:$152 sps:$4 sm:$0xff]   ;;  %v5400_v33 = vld [vmem:[%s8322_s1 + $0xac0] ss:$152 sps:$4 sm:$0xff]   ;;  %v5471_v36 = vld [vmem:[%s8322_s1 + $0x60c] ss:$152 sps:$4 sm:$0xff]  }
  0x1f   :  { %3881 = vmatpush1.bf16.msra.mxu0 %v5318_v21  ;;  %v5382_v21 = vld [vmem:[%s8322_s1 + $0x730] ss:$152 sps:$4 sm:$0xff]  }
  0x20   :  { %3882 = vmatprep.subr.bf16.mxu0 %v5319_v22  ;;  %3920 = vmatpush1.bf16.msra.mxu1 %v5381_v40  ;;  %v5390_v22 = vld [vmem:[%s8322_s1 + $0x864] ss:$152 sps:$4 sm:$0xff]   ;;  %v5406_v37 = vld [vmem:[%s8322_s1 + $0xbf0] ss:$152 sps:$4 sm:$0xff]  }
  0x21   :  { %3921 = vmatprep.subr.bf16.mxu1 %v5385_v41  ;;  %v5477_v40 = vld [vmem:[%s8322_s1 + $0x73c] ss:$152 sps:$4 sm:$0xff]   ;;  %v5412_v41 = vld [vmem:[%s8322_s1 + $0xd20] ss:$152 sps:$4 sm:$0xff]  }
  0x22   :  { %v5493_v55 = vld [vmem:[%s8322_s1 + $0xac8] ss:$152 sps:$4 sm:$0xff]  }
  0x23   :  { %3883 = vmatpush1.bf16.msra.mxu0 %v5321_v26  ;;  %v5396_v26 = vld [vmem:[%s8322_s1 + $0x994] ss:$152 sps:$4 sm:$0xff]  }
  0x24   :  { %3884 = vmatprep.subr.bf16.mxu0 %v5322_v27  ;;  %3922 = vmatpush1.bf16.msra.mxu1 %v5387_v44  ;;  %v5451_v27 = vld [vmem:[%s8322_s1 + $0x278] ss:$152 sps:$4 sm:$0xff]   ;;  %v5483_v44 = vld [vmem:[%s8322_s1 + $0x86c] ss:$152 sps:$4 sm:$0xff]  }
  0x25   :  { %3923 = vmatprep.subr.bf16.mxu1 %v5391_v45  ;;  %v5418_v45 = vld [vmem:[%s8322_s1 + $0xe50] ss:$152 sps:$4 sm:$0xff]  }
  0x27   :  { %3885 = vmatpush1.bf16.msra.mxu0 %v5324_v30  ;;  %v5402_v30 = vld [vmem:[%s8322_s1 + $0xac4] ss:$152 sps:$4 sm:$0xff]  }
  0x28   :  { %3886 = vmatprep.subr.bf16.mxu0 %v5325_v31  ;;  %3924 = vmatpush1.bf16.msra.mxu1 %v5393_v48  ;;  %v5457_v31 = vld [vmem:[%s8322_s1 + $0x3a8] ss:$152 sps:$4 sm:$0xff]   ;;  %v5489_v48 = vld [vmem:[%s8322_s1 + $0x99c] ss:$152 sps:$4 sm:$0xff]  }
  0x29   :  { %3925 = vmatprep.subr.bf16.mxu1 %v5397_v49  ;;  %v5424_v49 = vld [vmem:[%s8322_s1 + $0xf80] ss:$152 sps:$4 sm:$0xff]  }
  0x2b   :  { %3887 = vmatpush1.bf16.msra.mxu0 %v5327_v34  ;;  %v5408_v34 = vld [vmem:[%s8322_s1 + $0xbf4] ss:$152 sps:$4 sm:$0xff]  }
  0x2c   :  { %3888 = vmatprep.subr.bf16.mxu0 %v5328_v35  ;;  %3926 = vmatpush1.bf16.msra.mxu1 %v5399_v53  ;;  %v5463_v35 = vld [vmem:[%s8322_s1 + $0x4d8] ss:$152 sps:$4 sm:$0xff]  }
  0x2d   :  { %3927 = vmatprep.subr.bf16.mxu1 %v5403_v54  ;;  %v5430_v53 = vld [vmem:[%s8322_s1 + $0x10b0] ss:$152 sps:$4 sm:$0xff]   ;;  %v5438_v54 = vld [vmem:[%s8322_s1 + $0x11e4] ss:$152 sps:$4 sm:$0xff]  }
  0x2f   :  { %3889 = vmatpush1.bf16.msra.mxu0 %v5330_v38  ;;  %v5414_v38 = vld [vmem:[%s8322_s1 + $0xd24] ss:$152 sps:$4 sm:$0xff]  }
  0x30   :  { %3890 = vmatprep.subr.bf16.mxu0 %v5331_v39  ;;  %3928 = vmatpush1.bf16.msra.mxu1 %v5405_v57  ;;  %v5469_v39 = vld [vmem:[%s8322_s1 + $0x608] ss:$152 sps:$4 sm:$0xff]  }
  0x31   :  { %3929 = vmatprep.subr.bf16.mxu1 %v5409_v59  ;;  %v5436_v57 = vld [vmem:[%s8322_s1 + $0x11e0] ss:$152 sps:$4 sm:$0xff]   ;;  %v5444_v59 = vld [vmem:[%s8322_s1 + $0x24] ss:$152 sps:$4 sm:$0xff]  }
  0x33   :  { %3891 = vmatpush1.bf16.msra.mxu0 %v5333_v42  ;;  %v5420_v42 = vld [vmem:[%s8322_s1 + $0xe54] ss:$152 sps:$4 sm:$0xff]  }
  0x34   :  { %3892 = vmatprep.subr.bf16.mxu0 %v5334_v43  ;;  %3930 = vmatpush1.bf16.msra.mxu1 %v5411_v62  ;;  %v5475_v43 = vld [vmem:[%s8322_s1 + $0x738] ss:$152 sps:$4 sm:$0xff]  }
  0x35   :  { %3931 = vmatprep.subr.bf16.mxu1 %v5415_v63  ;;  %v5442_v62 = vld [vmem:[%s8322_s1 + $0x20] ss:$152 sps:$4 sm:$0xff]   ;;  %v5450_v63 = vld [vmem:[%s8322_s1 + $0x154] ss:$152 sps:$4 sm:$0xff]  }
  0x37   :  { %3893 = vmatpush1.bf16.msra.mxu0 %v5336_v46  ;;  %v5426_v46 = vld [vmem:[%s8322_s1 + $0xf84] ss:$152 sps:$4 sm:$0xff]  }
  0x38   :  { %3894 = vmatprep.subr.bf16.mxu0 %v5337_v47  ;;  %3932 = vmatpush1.bf16.msra.mxu1 %v5417_v2  ;;  %v5481_v47 = vld [vmem:[%s8322_s1 + $0x868] ss:$152 sps:$4 sm:$0xff]  }
  0x39   :  { %3933 = vmatprep.subr.bf16.mxu1 %v5421_v3  ;;  %v5448_v2 = vld [vmem:[%s8322_s1 + $0x150] ss:$152 sps:$4 sm:$0xff]   ;;  %v5456_v3 = vld [vmem:[%s8322_s1 + $0x284] ss:$152 sps:$4 sm:$0xff]  }
  0x3b   :  { %3895 = vmatpush1.bf16.msra.mxu0 %v5339_v50  ;;  %v5432_v50 = vld [vmem:[%s8322_s1 + $0x10b4] ss:$152 sps:$4 sm:$0xff]  }
  0x3c   :  { %3896 = vmatprep.subr.bf16.mxu0 %v5340_v51  ;;  %3934 = vmatpush1.bf16.msra.mxu1 %v5423_v6  ;;  %v5487_v51 = vld [vmem:[%s8322_s1 + $0x998] ss:$152 sps:$4 sm:$0xff]  }
  0x3d   :  { %3935 = vmatprep.subr.bf16.mxu1 %v5427_v7  ;;  %v5454_v6 = vld [vmem:[%s8322_s1 + $0x280] ss:$152 sps:$4 sm:$0xff]   ;;  %v5462_v7 = vld [vmem:[%s8322_s1 + $0x3b4] ss:$152 sps:$4 sm:$0xff]  }
  0x3f   :  { %3897 = vmatpush1.bf16.msra.mxu0 %v5342_v52  ;;  %v5495_v52 = vld [vmem:[%s8322_s1 + $0xacc] ss:$152 sps:$4 sm:$0xff]  }
  0x40   :  { %3948 = vmatprep.subr.bf16.mxu0 %v5348_v56  ;;  %3936 = vmatpush1.bf16.msra.mxu1 %v5429_v10  ;;  %v5501_v56 = vld [vmem:[%s8322_s1 + $0xbfc] ss:$152 sps:$4 sm:$0xff]   ;;  %v5460_v10 = vld [vmem:[%s8322_s1 + $0x3b0] ss:$152 sps:$4 sm:$0xff]  }
  0x41   :  { %3937 = vmatprep.subr.bf16.mxu1 %v5433_v11  ;;  %v5468_v11 = vld [vmem:[%s8322_s1 + $0x4e4] ss:$152 sps:$4 sm:$0xff]  }
  0x42   :  { %3899 = vmatmul.mubr.bf16.vlgmr.msra.gmra.mrb[0].mxu0 %v6402_v58 }
  0x43   :  { %3949 = vmatpush1.bf16.msra.mxu0 %v5346_v60  ;;  %3980 = vmatprep.mubr.bf16.mxu0 %v6278_v17  ;;  %v5499_v60 = vld [vmem:[%s8322_s1 + $0xbf8] ss:$152 sps:$4 sm:$0xff]  }
  0x44   :  { %3950 = vmatprep.subr.bf16.mxu0 %v5354_v61  ;;  %3938 = vmatpush1.bf16.msra.mxu1 %v5435_v14  ;;  %v5507_v61 = vld [vmem:[%s8322_s1 + $0xd2c] ss:$152 sps:$4 sm:$0xff]   ;;  %v5466_v14 = vld [vmem:[%s8322_s1 + $0x4e0] ss:$152 sps:$4 sm:$0xff]  }
  0x45   :  { %3989 = vmatprep.subr.bf16.mxu1 %v5441_v15  ;;  %v5474_v15 = vld [vmem:[%s8322_s1 + $0x614] ss:$152 sps:$4 sm:$0xff]  }
  0x47   :  { %3951 = vmatpush1.bf16.msra.mxu0 %v5352_v0  ;;  %3940 = vmatmul.mubr.bf16.vlgmr.msra.gmra.mrb[0].mxu1 %v6402_v58  ;;  %v5505_v0 = vld [vmem:[%s8322_s1 + $0xd28] ss:$152 sps:$4 sm:$0xff]  }
  0x48   :  { %3952 = vmatprep.subr.bf16.mxu0 %v5360_v1  ;;  %3990 = vmatpush1.bf16.msra.mxu1 %v5439_v19  ;;  %v5513_v1 = vld [vmem:[%s8322_s1 + $0xe5c] ss:$152 sps:$4 sm:$0xff]   ;;  %v5472_v19 = vld [vmem:[%s8322_s1 + $0x610] ss:$152 sps:$4 sm:$0xff]  }
  0x49   :  { %4021 = vmatprep.mubr.bf16.mxu1 %v6278_v17  ;;  %3991 = vmatprep.subr.bf16.mxu1 %v5447_v20  ;;  %v5480_v20 = vld [vmem:[%s8322_s1 + $0x744] ss:$152 sps:$4 sm:$0xff]  }
  0x4b   :  { %3953 = vmatpush1.bf16.msra.mxu0 %v5358_v4  ;;  %v5511_v4 = vld [vmem:[%s8322_s1 + $0xe58] ss:$152 sps:$4 sm:$0xff]  }
  0x4c   :  { %3954 = vmatprep.subr.bf16.mxu0 %v5366_v5  ;;  %3992 = vmatpush1.bf16.msra.mxu1 %v5445_v23  ;;  %v5519_v5 = vld [vmem:[%s8322_s1 + $0xf8c] ss:$152 sps:$4 sm:$0xff]   ;;  %v5478_v23 = vld [vmem:[%s8322_s1 + $0x740] ss:$152 sps:$4 sm:$0xff]  }
  0x4d   :  { %3993 = vmatprep.subr.bf16.mxu1 %v5453_v24  ;;  %v5486_v24 = vld [vmem:[%s8322_s1 + $0x874] ss:$152 sps:$4 sm:$0xff]  }
  0x4f   :  { %3955 = vmatpush1.bf16.msra.mxu0 %v5364_v8  ;;  %v5517_v8 = vld [vmem:[%s8322_s1 + $0xf88] ss:$152 sps:$4 sm:$0xff]  }
  0x50   :  { %3956 = vmatprep.subr.bf16.mxu0 %v5372_v9  ;;  %3994 = vmatpush1.bf16.msra.mxu1 %v5451_v27  ;;  %v5525_v9 = vld [vmem:[%s8322_s1 + $0x10bc] ss:$152 sps:$4 sm:$0xff]   ;;  %v5484_v27 = vld [vmem:[%s8322_s1 + $0x870] ss:$152 sps:$4 sm:$0xff]  }
  0x51   :  { %3995 = vmatprep.subr.bf16.mxu1 %v5459_v28  ;;  %v5492_v28 = vld [vmem:[%s8322_s1 + $0x9a4] ss:$152 sps:$4 sm:$0xff]  }
  0x53   :  { %3957 = vmatpush1.bf16.msra.mxu0 %v5370_v12  ;;  %v5523_v12 = vld [vmem:[%s8322_s1 + $0x10b8] ss:$152 sps:$4 sm:$0xff]  }
  0x54   :  { %3958 = vmatprep.subr.bf16.mxu0 %v5378_v13  ;;  %3996 = vmatpush1.bf16.msra.mxu1 %v5457_v31  ;;  %v5531_v13 = vld [vmem:[%s8322_s1 + $0x11ec] ss:$152 sps:$4 sm:$0xff]   ;;  %v5490_v31 = vld [vmem:[%s8322_s1 + $0x9a0] ss:$152 sps:$4 sm:$0xff]  }
  0x55   :  { %3997 = vmatprep.subr.bf16.mxu1 %v5465_v32  ;;  %v5498_v32 = vld [vmem:[%s8322_s1 + $0xad4] ss:$152 sps:$4 sm:$0xff]  }
  0x57   :  { %3959 = vmatpush1.bf16.msra.mxu0 %v5376_v16  ;;  %v5529_v16 = vld [vmem:[%s8322_s1 + $0x11e8] ss:$152 sps:$4 sm:$0xff]  }
  0x58   :  { %3960 = vmatprep.subr.bf16.mxu0 %v5384_v18  ;;  %3998 = vmatpush1.bf16.msra.mxu1 %v5463_v35  ;;  %v5537_v18 = vld [vmem:[%s8322_s1 + $0x2c] ss:$152 sps:$4 sm:$0xff]   ;;  %v5496_v35 = vld [vmem:[%s8322_s1 + $0xad0] ss:$152 sps:$4 sm:$0xff]  }
  0x59   :  { %3999 = vmatprep.subr.bf16.mxu1 %v5471_v36  ;;  %v5504_v36 = vld [vmem:[%s8322_s1 + $0xc04] ss:$152 sps:$4 sm:$0xff]  }
  0x5b   :  { %3961 = vmatpush1.bf16.msra.mxu0 %v5382_v21  ;;  %v5535_v21 = vld [vmem:[%s8322_s1 + $0x28] ss:$152 sps:$4 sm:$0xff]  }
  0x5c   :  { %3962 = vmatprep.subr.bf16.mxu0 %v5390_v22  ;;  %4000 = vmatpush1.bf16.msra.mxu1 %v5469_v39  ;;  %v5543_v22 = vld [vmem:[%s8322_s1 + $0x15c] ss:$152 sps:$4 sm:$0xff]   ;;  %v5502_v39 = vld [vmem:[%s8322_s1 + $0xc00] ss:$152 sps:$4 sm:$0xff]  }
  0x5d   :  { %4001 = vmatprep.subr.bf16.mxu1 %v5477_v40  ;;  %v5510_v40 = vld [vmem:[%s8322_s1 + $0xd34] ss:$152 sps:$4 sm:$0xff]  }
  0x5f   :  { %3963 = vmatpush1.bf16.msra.mxu0 %v5388_v25  ;;  %v5541_v25 = vld [vmem:[%s8322_s1 + $0x158] ss:$152 sps:$4 sm:$0xff]  }
  0x60   :  { %3964 = vmatprep.subr.bf16.mxu0 %v5396_v26  ;;  %4002 = vmatpush1.bf16.msra.mxu1 %v5475_v43  ;;  %v5549_v26 = vld [vmem:[%s8322_s1 + $0x28c] ss:$152 sps:$4 sm:$0xff]   ;;  %v5508_v43 = vld [vmem:[%s8322_s1 + $0xd30] ss:$152 sps:$4 sm:$0xff]  }
  0x61   :  { %4003 = vmatprep.subr.bf16.mxu1 %v5483_v44  ;;  %v5516_v44 = vld [vmem:[%s8322_s1 + $0xe64] ss:$152 sps:$4 sm:$0xff]  }
  0x63   :  { %3965 = vmatpush1.bf16.msra.mxu0 %v5394_v29  ;;  %v5547_v29 = vld [vmem:[%s8322_s1 + $0x288] ss:$152 sps:$4 sm:$0xff]  }
  0x64   :  { %3966 = vmatprep.subr.bf16.mxu0 %v5402_v30  ;;  %4004 = vmatpush1.bf16.msra.mxu1 %v5481_v47  ;;  %v5555_v30 = vld [vmem:[%s8322_s1 + $0x3bc] ss:$152 sps:$4 sm:$0xff]   ;;  %v5514_v47 = vld [vmem:[%s8322_s1 + $0xe60] ss:$152 sps:$4 sm:$0xff]  }
  0x65   :  { %4005 = vmatprep.subr.bf16.mxu1 %v5489_v48  ;;  %v5522_v48 = vld [vmem:[%s8322_s1 + $0xf94] ss:$152 sps:$4 sm:$0xff]  }
  0x67   :  { %3967 = vmatpush1.bf16.msra.mxu0 %v5400_v33  ;;  %v5553_v33 = vld [vmem:[%s8322_s1 + $0x3b8] ss:$152 sps:$4 sm:$0xff]  }
  0x68   :  { %3968 = vmatprep.subr.bf16.mxu0 %v5408_v34  ;;  %4006 = vmatpush1.bf16.msra.mxu1 %v5487_v51  ;;  %v5561_v34 = vld [vmem:[%s8322_s1 + $0x4ec] ss:$152 sps:$4 sm:$0xff]   ;;  %v5520_v51 = vld [vmem:[%s8322_s1 + $0xf90] ss:$152 sps:$4 sm:$0xff]  }
  0x69   :  { %4007 = vmatprep.subr.bf16.mxu1 %v5495_v52  ;;  %v5528_v52 = vld [vmem:[%s8322_s1 + $0x10c4] ss:$152 sps:$4 sm:$0xff]  }
  0x6b   :  { %3969 = vmatpush1.bf16.msra.mxu0 %v5406_v37  ;;  %v5559_v37 = vld [vmem:[%s8322_s1 + $0x4e8] ss:$152 sps:$4 sm:$0xff]  }
  0x6c   :  { %3970 = vmatprep.subr.bf16.mxu0 %v5414_v38  ;;  %4008 = vmatpush1.bf16.msra.mxu1 %v5493_v55  ;;  %v5567_v38 = vld [vmem:[%s8322_s1 + $0x61c] ss:$152 sps:$4 sm:$0xff]   ;;  %v5526_v55 = vld [vmem:[%s8322_s1 + $0x10c0] ss:$152 sps:$4 sm:$0xff]  }
  0x6d   :  { %4009 = vmatprep.subr.bf16.mxu1 %v5501_v56  ;;  %v5534_v56 = vld [vmem:[%s8322_s1 + $0x11f4] ss:$152 sps:$4 sm:$0xff]  }
  0x6f   :  { %3971 = vmatpush1.bf16.msra.mxu0 %v5412_v41  ;;  %v5565_v41 = vld [vmem:[%s8322_s1 + $0x618] ss:$152 sps:$4 sm:$0xff]  }
  0x70   :  { %3972 = vmatprep.subr.bf16.mxu0 %v5420_v42  ;;  %4010 = vmatpush1.bf16.msra.mxu1 %v5499_v60  ;;  %v5573_v42 = vld [vmem:[%s8322_s1 + $0x74c] ss:$152 sps:$4 sm:$0xff]   ;;  %v5532_v60 = vld [vmem:[%s8322_s1 + $0x11f0] ss:$152 sps:$4 sm:$0xff]  }
  0x71   :  { %4011 = vmatprep.subr.bf16.mxu1 %v5507_v61  ;;  %v5540_v61 = vld [vmem:[%s8322_s1 + $0x34] ss:$152 sps:$4 sm:$0xff]  }
  0x73   :  { %3973 = vmatpush1.bf16.msra.mxu0 %v5418_v45  ;;  %v5571_v45 = vld [vmem:[%s8322_s1 + $0x748] ss:$152 sps:$4 sm:$0xff]  }
  0x74   :  { %3974 = vmatprep.subr.bf16.mxu0 %v5426_v46  ;;  %4012 = vmatpush1.bf16.msra.mxu1 %v5505_v0  ;;  %v5579_v46 = vld [vmem:[%s8322_s1 + $0x87c] ss:$152 sps:$4 sm:$0xff]   ;;  %v5538_v0 = vld [vmem:[%s8322_s1 + $0x30] ss:$152 sps:$4 sm:$0xff]  }
  0x75   :  { %4013 = vmatprep.subr.bf16.mxu1 %v5513_v1  ;;  %v5546_v1 = vld [vmem:[%s8322_s1 + $0x164] ss:$152 sps:$4 sm:$0xff]  }
  0x77   :  { %3975 = vmatpush1.bf16.msra.mxu0 %v5424_v49  ;;  %v5577_v49 = vld [vmem:[%s8322_s1 + $0x878] ss:$152 sps:$4 sm:$0xff]  }
  0x78   :  { %3976 = vmatprep.subr.bf16.mxu0 %v5432_v50  ;;  %4014 = vmatpush1.bf16.msra.mxu1 %v5511_v4  ;;  %v5585_v50 = vld [vmem:[%s8322_s1 + $0x9ac] ss:$152 sps:$4 sm:$0xff]   ;;  %v5544_v4 = vld [vmem:[%s8322_s1 + $0x160] ss:$152 sps:$4 sm:$0xff]  }
  0x79   :  { %4015 = vmatprep.subr.bf16.mxu1 %v5519_v5  ;;  %v5552_v5 = vld [vmem:[%s8322_s1 + $0x294] ss:$152 sps:$4 sm:$0xff]  }
  0x7b   :  { %3977 = vmatpush1.bf16.msra.mxu0 %v5430_v53  ;;  %v5583_v53 = vld [vmem:[%s8322_s1 + $0x9a8] ss:$152 sps:$4 sm:$0xff]  }
  0x7c   :  { %3978 = vmatprep.subr.bf16.mxu0 %v5438_v54  ;;  %4016 = vmatpush1.bf16.msra.mxu1 %v5517_v8  ;;  %v5591_v54 = vld [vmem:[%s8322_s1 + $0xadc] ss:$152 sps:$4 sm:$0xff]   ;;  %v5550_v8 = vld [vmem:[%s8322_s1 + $0x290] ss:$152 sps:$4 sm:$0xff]  }
  0x7d   :  { %4017 = vmatprep.subr.bf16.mxu1 %v5525_v9  ;;  %v5558_v9 = vld [vmem:[%s8322_s1 + $0x3c4] ss:$152 sps:$4 sm:$0xff]  }
  0x7f   :  { %3979 = vmatpush1.bf16.msra.mxu0 %v5436_v57  ;;  %v5589_v57 = vld [vmem:[%s8322_s1 + $0xad8] ss:$152 sps:$4 sm:$0xff]  }
  0x80   :  { %4030 = vmatprep.subr.bf16.mxu0 %v5444_v59  ;;  %4018 = vmatpush1.bf16.msra.mxu1 %v5523_v12  ;;  %v5597_v59 = vld [vmem:[%s8322_s1 + $0xc0c] ss:$152 sps:$4 sm:$0xff]   ;;  %v5556_v12 = vld [vmem:[%s8322_s1 + $0x3c0] ss:$152 sps:$4 sm:$0xff]  }
  0x81   :  { %4019 = vmatprep.subr.bf16.mxu1 %v5531_v13  ;;  %v5564_v13 = vld [vmem:[%s8322_s1 + $0x4f4] ss:$152 sps:$4 sm:$0xff]  }
  0x82   :  { %3981 = vmatmul.mubr.bf16.vlgmr.msra.gmra.mrb[4].mxu0 %v6402_v58 }
  0x83   :  { %4031 = vmatpush1.bf16.msra.mxu0 %v5442_v62  ;;  %4062 = vmatprep.mubr.bf16.mxu0 %v6278_v17  ;;  %v5595_v62 = vld [vmem:[%s8322_s1 + $0xc08] ss:$152 sps:$4 sm:$0xff]  }
  0x84   :  { %4032 = vmatprep.subr.bf16.mxu0 %v5450_v63  ;;  %4020 = vmatpush1.bf16.msra.mxu1 %v5529_v16  ;;  %v5603_v63 = vld [vmem:[%s8322_s1 + $0xd3c] ss:$152 sps:$4 sm:$0xff]   ;;  %v5562_v16 = vld [vmem:[%s8322_s1 + $0x4f0] ss:$152 sps:$4 sm:$0xff]  }
  0x85   :  { %4071 = vmatprep.subr.bf16.mxu1 %v5537_v18  ;;  %v5570_v18 = vld [vmem:[%s8322_s1 + $0x624] ss:$152 sps:$4 sm:$0xff]  }
  0x87   :  { %4033 = vmatpush1.bf16.msra.mxu0 %v5448_v2  ;;  %4022 = vmatmul.mubr.bf16.vlgmr.msra.gmra.mrb[4].mxu1 %v6402_v58  ;;  %v5601_v2 = vld [vmem:[%s8322_s1 + $0xd38] ss:$152 sps:$4 sm:$0xff]  }
  0x88   :  { %4034 = vmatprep.subr.bf16.mxu0 %v5456_v3  ;;  %4072 = vmatpush1.bf16.msra.mxu1 %v5535_v21  ;;  %v5609_v3 = vld [vmem:[%s8322_s1 + $0xe6c] ss:$152 sps:$4 sm:$0xff]   ;;  %v5568_v21 = vld [vmem:[%s8322_s1 + $0x620] ss:$152 sps:$4 sm:$0xff]  }
  0x89   :  { %4103 = vmatprep.mubr.bf16.mxu1 %v6278_v17  ;;  %4073 = vmatprep.subr.bf16.mxu1 %v5543_v22  ;;  %v5576_v22 = vld [vmem:[%s8322_s1 + $0x754] ss:$152 sps:$4 sm:$0xff]  }
  0x8b   :  { %4035 = vmatpush1.bf16.msra.mxu0 %v5454_v6  ;;  %v5607_v6 = vld [vmem:[%s8322_s1 + $0xe68] ss:$152 sps:$4 sm:$0xff]  }
  0x8c   :  { %4036 = vmatprep.subr.bf16.mxu0 %v5462_v7  ;;  %4074 = vmatpush1.bf16.msra.mxu1 %v5541_v25  ;;  %v5615_v7 = vld [vmem:[%s8322_s1 + $0xf9c] ss:$152 sps:$4 sm:$0xff]   ;;  %v5639_v25 = vld [vmem:[%s8322_s1 + $0x16c] ss:$152 sps:$4 sm:$0xff]  }
  0x8d   :  { %4075 = vmatprep.subr.bf16.mxu1 %v5549_v26  ;;  %v5582_v26 = vld [vmem:[%s8322_s1 + $0x884] ss:$152 sps:$4 sm:$0xff]  }
  0x8f   :  { %4037 = vmatpush1.bf16.msra.mxu0 %v5460_v10  ;;  %v5613_v10 = vld [vmem:[%s8322_s1 + $0xf98] ss:$152 sps:$4 sm:$0xff]  }
  0x90   :  { %4038 = vmatprep.subr.bf16.mxu0 %v5468_v11  ;;  %4076 = vmatpush1.bf16.msra.mxu1 %v5547_v29  ;;  %v5621_v11 = vld [vmem:[%s8322_s1 + $0x10cc] ss:$152 sps:$4 sm:$0xff]   ;;  %v5580_v29 = vld [vmem:[%s8322_s1 + $0x880] ss:$152 sps:$4 sm:$0xff]  }
  0x91   :  { %4077 = vmatprep.subr.bf16.mxu1 %v5555_v30  ;;  %v5588_v30 = vld [vmem:[%s8322_s1 + $0x9b4] ss:$152 sps:$4 sm:$0xff]  }
  0x93   :  { %4039 = vmatpush1.bf16.msra.mxu0 %v5466_v14  ;;  %v5619_v14 = vld [vmem:[%s8322_s1 + $0x10c8] ss:$152 sps:$4 sm:$0xff]  }
  0x94   :  { %4040 = vmatprep.subr.bf16.mxu0 %v5474_v15  ;;  %4078 = vmatpush1.bf16.msra.mxu1 %v5553_v33  ;;  %v5627_v15 = vld [vmem:[%s8322_s1 + $0x11fc] ss:$152 sps:$4 sm:$0xff]   ;;  %v5586_v33 = vld [vmem:[%s8322_s1 + $0x9b0] ss:$152 sps:$4 sm:$0xff]  }
  0x95   :  { %4079 = vmatprep.subr.bf16.mxu1 %v5561_v34  ;;  %v5594_v34 = vld [vmem:[%s8322_s1 + $0xae4] ss:$152 sps:$4 sm:$0xff]  }
  0x97   :  { %4041 = vmatpush1.bf16.msra.mxu0 %v5472_v19  ;;  %v5625_v19 = vld [vmem:[%s8322_s1 + $0x11f8] ss:$152 sps:$4 sm:$0xff]  }
  0x98   :  { %4042 = vmatprep.subr.bf16.mxu0 %v5480_v20  ;;  %4080 = vmatpush1.bf16.msra.mxu1 %v5559_v37  ;;  %v5633_v20 = vld [vmem:[%s8322_s1 + $0x3c] ss:$152 sps:$4 sm:$0xff]   ;;  %v5592_v37 = vld [vmem:[%s8322_s1 + $0xae0] ss:$152 sps:$4 sm:$0xff]  }
  0x99   :  { %4081 = vmatprep.subr.bf16.mxu1 %v5567_v38  ;;  %v5600_v38 = vld [vmem:[%s8322_s1 + $0xc14] ss:$152 sps:$4 sm:$0xff]  }
  0x9b   :  { %4043 = vmatpush1.bf16.msra.mxu0 %v5478_v23  ;;  %v5574_v23 = vld [vmem:[%s8322_s1 + $0x750] ss:$152 sps:$4 sm:$0xff]  }
  0x9c   :  { %4044 = vmatprep.subr.bf16.mxu0 %v5486_v24  ;;  %4082 = vmatpush1.bf16.msra.mxu1 %v5565_v41  ;;  %v5631_v24 = vld [vmem:[%s8322_s1 + $0x38] ss:$152 sps:$4 sm:$0xff]  }
  0x9d   :  { %4083 = vmatprep.subr.bf16.mxu1 %v5573_v42  ;;  %v5598_v41 = vld [vmem:[%s8322_s1 + $0xc10] ss:$152 sps:$4 sm:$0xff]   ;;  %v5606_v42 = vld [vmem:[%s8322_s1 + $0xd44] ss:$152 sps:$4 sm:$0xff]  }
  0x9f   :  { %4045 = vmatpush1.bf16.msra.mxu0 %v5484_v27  ;;  %v5637_v27 = vld [vmem:[%s8322_s1 + $0x168] ss:$152 sps:$4 sm:$0xff]  }
  0xa0   :  { %4046 = vmatprep.subr.bf16.mxu0 %v5492_v28  ;;  %4084 = vmatpush1.bf16.msra.mxu1 %v5571_v45  ;;  %v5645_v28 = vld [vmem:[%s8322_s1 + $0x29c] ss:$152 sps:$4 sm:$0xff]   ;;  %v5604_v45 = vld [vmem:[%s8322_s1 + $0xd40] ss:$152 sps:$4 sm:$0xff]  }
  0xa1   :  { %4085 = vmatprep.subr.bf16.mxu1 %v5579_v46  ;;  %v5612_v46 = vld [vmem:[%s8322_s1 + $0xe74] ss:$152 sps:$4 sm:$0xff]  }
  0xa3   :  { %4047 = vmatpush1.bf16.msra.mxu0 %v5490_v31  ;;  %v5643_v31 = vld [vmem:[%s8322_s1 + $0x298] ss:$152 sps:$4 sm:$0xff]  }
  0xa4   :  { %4048 = vmatprep.subr.bf16.mxu0 %v5498_v32  ;;  %4086 = vmatpush1.bf16.msra.mxu1 %v5577_v49  ;;  %v5651_v32 = vld [vmem:[%s8322_s1 + $0x3cc] ss:$152 sps:$4 sm:$0xff]   ;;  %v5610_v49 = vld [vmem:[%s8322_s1 + $0xe70] ss:$152 sps:$4 sm:$0xff]  }
  0xa5   :  { %4087 = vmatprep.subr.bf16.mxu1 %v5585_v50  ;;  %v5618_v50 = vld [vmem:[%s8322_s1 + $0xfa4] ss:$152 sps:$4 sm:$0xff]  }
  0xa7   :  { %4049 = vmatpush1.bf16.msra.mxu0 %v5496_v35  ;;  %v5649_v35 = vld [vmem:[%s8322_s1 + $0x3c8] ss:$152 sps:$4 sm:$0xff]  }
  0xa8   :  { %4050 = vmatprep.subr.bf16.mxu0 %v5504_v36  ;;  %4088 = vmatpush1.bf16.msra.mxu1 %v5583_v53  ;;  %v5657_v36 = vld [vmem:[%s8322_s1 + $0x4fc] ss:$152 sps:$4 sm:$0xff]   ;;  %v5616_v53 = vld [vmem:[%s8322_s1 + $0xfa0] ss:$152 sps:$4 sm:$0xff]  }
  0xa9   :  { %4089 = vmatprep.subr.bf16.mxu1 %v5591_v54  ;;  %v5624_v54 = vld [vmem:[%s8322_s1 + $0x10d4] ss:$152 sps:$4 sm:$0xff]  }
  0xab   :  { %4051 = vmatpush1.bf16.msra.mxu0 %v5502_v39  ;;  %v5655_v39 = vld [vmem:[%s8322_s1 + $0x4f8] ss:$152 sps:$4 sm:$0xff]  }
  0xac   :  { %4052 = vmatprep.subr.bf16.mxu0 %v5510_v40  ;;  %4090 = vmatpush1.bf16.msra.mxu1 %v5589_v57  ;;  %v5663_v40 = vld [vmem:[%s8322_s1 + $0x62c] ss:$152 sps:$4 sm:$0xff]   ;;  %v5622_v57 = vld [vmem:[%s8322_s1 + $0x10d0] ss:$152 sps:$4 sm:$0xff]  }
  0xad   :  { %4091 = vmatprep.subr.bf16.mxu1 %v5597_v59  ;;  %v5630_v59 = vld [vmem:[%s8322_s1 + $0x1204] ss:$152 sps:$4 sm:$0xff]  }
  0xaf   :  { %4053 = vmatpush1.bf16.msra.mxu0 %v5508_v43  ;;  %v5661_v43 = vld [vmem:[%s8322_s1 + $0x628] ss:$152 sps:$4 sm:$0xff]  }
  0xb0   :  { %4054 = vmatprep.subr.bf16.mxu0 %v5516_v44  ;;  %4092 = vmatpush1.bf16.msra.mxu1 %v5595_v62  ;;  %v5669_v44 = vld [vmem:[%s8322_s1 + $0x75c] ss:$152 sps:$4 sm:$0xff]   ;;  %v5628_v62 = vld [vmem:[%s8322_s1 + $0x1200] ss:$152 sps:$4 sm:$0xff]  }
  0xb1   :  { %4093 = vmatprep.subr.bf16.mxu1 %v5603_v63  ;;  %v5636_v63 = vld [vmem:[%s8322_s1 + $0x44] ss:$152 sps:$4 sm:$0xff]  }
  0xb3   :  { %4055 = vmatpush1.bf16.msra.mxu0 %v5514_v47  ;;  %v5667_v47 = vld [vmem:[%s8322_s1 + $0x758] ss:$152 sps:$4 sm:$0xff]  }
  0xb4   :  { %4056 = vmatprep.subr.bf16.mxu0 %v5522_v48  ;;  %4094 = vmatpush1.bf16.msra.mxu1 %v5601_v2  ;;  %v5675_v48 = vld [vmem:[%s8322_s1 + $0x88c] ss:$152 sps:$4 sm:$0xff]  }
  0xb5   :  { %4095 = vmatprep.subr.bf16.mxu1 %v5609_v3  ;;  %v5699_v2 = vld [vmem:[%s8322_s1 + $0xd4c] ss:$152 sps:$4 sm:$0xff]  }
  0xb6   :  { %v5642_v3 = vld [vmem:[%s8322_s1 + $0x174] ss:$152 sps:$4 sm:$0xff]  }
  0xb7   :  { %4057 = vmatpush1.bf16.msra.mxu0 %v5520_v51  ;;  %v5673_v51 = vld [vmem:[%s8322_s1 + $0x888] ss:$152 sps:$4 sm:$0xff]  }
  0xb8   :  { %4058 = vmatprep.subr.bf16.mxu0 %v5528_v52  ;;  %4096 = vmatpush1.bf16.msra.mxu1 %v5607_v6  ;;  %v5681_v52 = vld [vmem:[%s8322_s1 + $0x9bc] ss:$152 sps:$4 sm:$0xff]   ;;  %v5640_v6 = vld [vmem:[%s8322_s1 + $0x170] ss:$152 sps:$4 sm:$0xff]  }
  0xb9   :  { %4097 = vmatprep.subr.bf16.mxu1 %v5615_v7  ;;  %v5648_v7 = vld [vmem:[%s8322_s1 + $0x2a4] ss:$152 sps:$4 sm:$0xff]  }
  0xbb   :  { %4059 = vmatpush1.bf16.msra.mxu0 %v5526_v55  ;;  %v5679_v55 = vld [vmem:[%s8322_s1 + $0x9b8] ss:$152 sps:$4 sm:$0xff]  }
  0xbc   :  { %4060 = vmatprep.subr.bf16.mxu0 %v5534_v56  ;;  %4098 = vmatpush1.bf16.msra.mxu1 %v5613_v10  ;;  %v5687_v56 = vld [vmem:[%s8322_s1 + $0xaec] ss:$152 sps:$4 sm:$0xff]   ;;  %v636_v10 = vlaneseq }
  0xbd   :  { %4099 = vmatprep.subr.bf16.mxu1 %v5621_v11  ;;  %v5646_v11 = vld [vmem:[%s8322_s1 + $0x2a0] ss:$152 sps:$4 sm:$0xff]  }
  0xbf   :  { %4061 = vmatpush1.bf16.msra.mxu0 %v5532_v60  ;;  %v5685_v60 = vld [vmem:[%s8322_s1 + $0xae8] ss:$152 sps:$4 sm:$0xff]  }
  0xc0   :  { %4112 = vmatprep.subr.bf16.mxu0 %v5540_v61  ;;  %4100 = vmatpush1.bf16.msra.mxu1 %v5619_v14  ;;  %v5693_v61 = vld [vmem:[%s8322_s1 + $0xc1c] ss:$152 sps:$4 sm:$0xff]  }
  0xc1   :  { %4101 = vmatprep.subr.bf16.mxu1 %v5627_v15  ;;  %v5717_v14 = vld [vmem:[%s8322_s1 + $0x10dc] ss:$152 sps:$4 sm:$0xff]   ;;  %v7033_v15 = vshrl.u32 %v636_v10, 7 }
  0xc2   :  { %4063 = vmatmul.mubr.bf16.vlgmr.msra.gmra.mrb[8].mxu0 %v6402_v58 }
  0xc3   :  { %4113 = vmatpush1.bf16.msra.mxu0 %v5538_v0  ;;  %4144 = vmatprep.mubr.bf16.mxu0 %v6278_v17  ;;  %v5634_v0 = vld [vmem:[%s8322_s1 + $0x40] ss:$152 sps:$4 sm:$0xff]  }
  0xc4   :  { %4114 = vmatprep.subr.bf16.mxu0 %v5546_v1  ;;  %4102 = vmatpush1.bf16.msra.mxu1 %v5625_v19  ;;  %v5691_v1 = vld [vmem:[%s8322_s1 + $0xc18] ss:$152 sps:$4 sm:$0xff]  }
  0xc5   :  { %4153 = vmatprep.subr.bf16.mxu1 %v5633_v20  ;;  %v5715_v19 = vld [vmem:[%s8322_s1 + $0x10d8] ss:$152 sps:$4 sm:$0xff]   ;;  %v5723_v20 = vld [vmem:[%s8322_s1 + $0x120c] ss:$152 sps:$4 sm:$0xff]  }
  0xc7   :  { %4115 = vmatpush1.bf16.msra.mxu0 %v5544_v4  ;;  %4104 = vmatmul.mubr.bf16.vlgmr.msra.gmra.mrb[8].mxu1 %v6402_v58  ;;  %v5697_v4 = vld [vmem:[%s8322_s1 + $0xd48] ss:$152 sps:$4 sm:$0xff]  }
  0xc8   :  { %4116 = vmatprep.subr.bf16.mxu0 %v5552_v5  ;;  %4154 = vmatpush1.bf16.msra.mxu1 %v5631_v24  ;;  %v5705_v5 = vld [vmem:[%s8322_s1 + $0xe7c] ss:$152 sps:$4 sm:$0xff]   ;;  %v7059_v24 = vsub.s32 1, %v7033_v15 }
  0xc9   :  { %4185 = vmatprep.mubr.bf16.mxu1 %v6278_v17  ;;  %4155 = vmatprep.subr.bf16.mxu1 %v5639_v25  ;;  %v5666_v25 = vld [vmem:[%s8322_s1 + $0x634] ss:$152 sps:$4 sm:$0xff]  }
  0xcb   :  { %4117 = vmatpush1.bf16.msra.mxu0 %v5550_v8  ;;  %v5703_v8 = vld [vmem:[%s8322_s1 + $0xe78] ss:$152 sps:$4 sm:$0xff]  }
  0xcc   :  { %4118 = vmatprep.subr.bf16.mxu0 %v5558_v9  ;;  %4156 = vmatpush1.bf16.msra.mxu1 %v5637_v27  ;;  %v5711_v9 = vld [vmem:[%s8322_s1 + $0xfac] ss:$152 sps:$4 sm:$0xff]  }
  0xcd   :  { %4157 = vmatprep.subr.bf16.mxu1 %v5645_v28  ;;  %v5729_v27 = vld [vmem:[%s8322_s1 + $0x4c] ss:$152 sps:$4 sm:$0xff]  }
  0xcf   :  { %4119 = vmatpush1.bf16.msra.mxu0 %v5556_v12  ;;  %v5654_v12 = vld [vmem:[%s8322_s1 + $0x3d4] ss:$152 sps:$4 sm:$0xff]  }
  0xd0   :  { %4120 = vmatprep.subr.bf16.mxu0 %v5564_v13  ;;  %4158 = vmatpush1.bf16.msra.mxu1 %v5643_v31  ;;  %v5709_v13 = vld [vmem:[%s8322_s1 + $0xfa8] ss:$152 sps:$4 sm:$0xff]   ;;  %v5672_v31 = vld [vmem:[%s8322_s1 + $0x764] ss:$152 sps:$4 sm:$0xff]  }
  0xd1   :  { %4159 = vmatprep.subr.bf16.mxu1 %v5651_v32 }
  0xd3   :  { %4121 = vmatpush1.bf16.msra.mxu0 %v5562_v16  ;;  %v5652_v16 = vld [vmem:[%s8322_s1 + $0x3d0] ss:$152 sps:$4 sm:$0xff]  }
  0xd4   :  { %4122 = vmatprep.subr.bf16.mxu0 %v5570_v18  ;;  %4160 = vmatpush1.bf16.msra.mxu1 %v5649_v35  ;;  %v5660_v18 = vld [vmem:[%s8322_s1 + $0x504] ss:$152 sps:$4 sm:$0xff]  }
  0xd5   :  { %4161 = vmatprep.subr.bf16.mxu1 %v5657_v36 }
  0xd7   :  { %4123 = vmatpush1.bf16.msra.mxu0 %v5568_v21  ;;  %v5658_v21 = vld [vmem:[%s8322_s1 + $0x500] ss:$152 sps:$4 sm:$0xff]  }
  0xd8   :  { %4124 = vmatprep.subr.bf16.mxu0 %v5576_v22  ;;  %4162 = vmatpush1.bf16.msra.mxu1 %v5655_v39  ;;  %v7051_v22 = vsub.s32 0, %v7033_v15 }
  0xd9   :  { %4163 = vmatprep.subr.bf16.mxu1 %v5663_v40 }
  0xdb   :  { %4125 = vmatpush1.bf16.msra.mxu0 %v5574_v23  ;;  %v7056_v23 = vld [vmem:[%s8324_s2] sm:$0xff] }
  0xdc   :  { %4126 = vmatprep.subr.bf16.mxu0 %v5582_v26  ;;  %4164 = vmatpush1.bf16.msra.mxu1 %v5661_v43  ;;  %v5721_v26 = vld [vmem:[%s8322_s1 + $0x1208] ss:$152 sps:$4 sm:$0xff]   ;;  %v639_v28 = vrot.slane %v7056_v23, %v7051_v22  ;;  %v5741_v43 = vld [vmem:[%s8322_s1 + $0x2ac] ss:$152 sps:$4 sm:$0xff]  }
  0xdd   :  { %4165 = vmatprep.subr.bf16.mxu1 %v5669_v44  ;;  %v5676_v44 = vld [vmem:[%s8322_s1 + $0x890] ss:$152 sps:$4 sm:$0xff]  }
  0xdf   :  { %4127 = vmatpush1.bf16.msra.mxu0 %v5580_v29  ;;  %v643_v29 = vrot.slane %v7056_v23, %v7059_v24 }
  0xe0   :  { %4128 = vmatprep.subr.bf16.mxu0 %v5588_v30  ;;  %4166 = vmatpush1.bf16.msra.mxu1 %v5667_v47  ;;  %v5664_v30 = vld [vmem:[%s8322_s1 + $0x630] ss:$152 sps:$4 sm:$0xff]   ;;  %v5747_v47 = vld [vmem:[%s8322_s1 + $0x3dc] ss:$152 sps:$4 sm:$0xff]  }
  0xe1   :  { %4167 = vmatprep.subr.bf16.mxu1 %v5675_v48  ;;  %v5682_v48 = vld [vmem:[%s8322_s1 + $0x9c0] ss:$152 sps:$4 sm:$0xff]  }
  0xe3   :  { %4129 = vmatpush1.bf16.msra.mxu0 %v5586_v33  ;;  %v5670_v33 = vld [vmem:[%s8322_s1 + $0x760] ss:$152 sps:$4 sm:$0xff]  }
  0xe4   :  { %4130 = vmatprep.subr.bf16.mxu0 %v5594_v34  ;;  %4168 = vmatpush1.bf16.msra.mxu1 %v5673_v51  ;;  %v5727_v34 = vld [vmem:[%s8322_s1 + $0x48] ss:$152 sps:$4 sm:$0xff]   ;;  %v5753_v51 = vld [vmem:[%s8322_s1 + $0x50c] ss:$152 sps:$4 sm:$0xff]  }
  0xe5   :  { %4169 = vmatprep.subr.bf16.mxu1 %v5681_v52  ;;  %v5688_v52 = vld [vmem:[%s8322_s1 + $0xaf0] ss:$152 sps:$4 sm:$0xff]  }
  0xe7   :  { %4131 = vmatpush1.bf16.msra.mxu0 %v5592_v37  ;;  %v5735_v37 = vld [vmem:[%s8322_s1 + $0x17c] ss:$152 sps:$4 sm:$0xff]  }
  0xe8   :  { %4132 = vmatprep.subr.bf16.mxu0 %v5600_v38  ;;  %4170 = vmatpush1.bf16.msra.mxu1 %v5679_v55  ;;  %v7140_v55 = vsub.s32 2, %v7033_v15 }
  0xe9   :  { %4171 = vmatprep.subr.bf16.mxu1 %v5687_v56  ;;  %v5759_v56 = vld [vmem:[%s8322_s1 + $0x63c] ss:$152 sps:$4 sm:$0xff]  }
  0xeb   :  { %4133 = vmatpush1.bf16.msra.mxu0 %v5598_v41  ;;  %v5678_v41 = vld [vmem:[%s8322_s1 + $0x894] ss:$152 sps:$4 sm:$0xff]  }
  0xec   :  { %4134 = vmatprep.subr.bf16.mxu0 %v5606_v42  ;;  %4172 = vmatpush1.bf16.msra.mxu1 %v5685_v60  ;;  %v5733_v42 = vld [vmem:[%s8322_s1 + $0x178] ss:$152 sps:$4 sm:$0xff]   ;;  %v5702_v60 = vld [vmem:[%s8322_s1 + $0xd54] ss:$152 sps:$4 sm:$0xff]  }
  0xed   :  { %4173 = vmatprep.subr.bf16.mxu1 %v5693_v61  ;;  %v647_v61 = vrot.slane %v7056_v23, %v7140_v55 }
  0xef   :  { %4135 = vmatpush1.bf16.msra.mxu0 %v5604_v45  ;;  %v5684_v45 = vld [vmem:[%s8322_s1 + $0x9c4] ss:$152 sps:$4 sm:$0xff]  }
  0xf0   :  { %4136 = vmatprep.subr.bf16.mxu0 %v5612_v46  ;;  %4174 = vmatpush1.bf16.msra.mxu1 %v5691_v1  ;;  %v5739_v46 = vld [vmem:[%s8322_s1 + $0x2a8] ss:$152 sps:$4 sm:$0xff]  }
  0xf1   :  { %4175 = vmatprep.subr.bf16.mxu1 %v5699_v2  ;;  %v5700_v1 = vld [vmem:[%s8322_s1 + $0xd50] ss:$152 sps:$4 sm:$0xff]   ;;  %v5708_v2 = vld [vmem:[%s8322_s1 + $0xe84] ss:$152 sps:$4 sm:$0xff]  }
  0xf3   :  { %4137 = vmatpush1.bf16.msra.mxu0 %v5610_v49  ;;  %v5690_v49 = vld [vmem:[%s8322_s1 + $0xaf4] ss:$152 sps:$4 sm:$0xff]  }
  0xf4   :  { %4138 = vmatprep.subr.bf16.mxu0 %v5618_v50  ;;  %4176 = vmatpush1.bf16.msra.mxu1 %v5697_v4  ;;  %v5745_v50 = vld [vmem:[%s8322_s1 + $0x3d8] ss:$152 sps:$4 sm:$0xff]  }
  0xf5   :  { %4177 = vmatprep.subr.bf16.mxu1 %v5705_v5 }
  0xf7   :  { %4139 = vmatpush1.bf16.msra.mxu0 %v5616_v53  ;;  %v5696_v53 = vld [vmem:[%s8322_s1 + $0xc24] ss:$152 sps:$4 sm:$0xff]  }
  0xf8   :  { %4140 = vmatprep.subr.bf16.mxu0 %v5624_v54  ;;  %4178 = vmatpush1.bf16.msra.mxu1 %v5703_v8  ;;  %v5751_v54 = vld [vmem:[%s8322_s1 + $0x508] ss:$152 sps:$4 sm:$0xff]  }
  0xf9   :  { %4179 = vmatprep.subr.bf16.mxu1 %v5711_v9 }
  0xfb   :  { %4141 = vmatpush1.bf16.msra.mxu0 %v5622_v57  ;;  %v7146_v57 = vsub.s32 3, %v7033_v15 }
  0xfc   :  { %4142 = vmatprep.subr.bf16.mxu0 %v5630_v59  ;;  %4180 = vmatpush1.bf16.msra.mxu1 %v5709_v13  ;;  %v5694_v59 = vld [vmem:[%s8322_s1 + $0xc20] ss:$152 sps:$4 sm:$0xff]  }
  0xfd   :  { %4181 = vmatprep.subr.bf16.mxu1 %v5717_v14  ;;  %v5769_v13 = vld [vmem:[%s8322_s1 + $0x898] ss:$152 sps:$4 sm:$0xff]   ;;  %v5777_v14 = vld [vmem:[%s8322_s1 + $0x9cc] ss:$152 sps:$4 sm:$0xff]  }
  0xff   :  { %4143 = vmatpush1.bf16.msra.mxu0 %v5628_v62  ;;  %v5757_v62 = vld [vmem:[%s8322_s1 + $0x638] ss:$152 sps:$4 sm:$0xff]  }
 0x100   :  { %4194 = vmatprep.subr.bf16.mxu0 %v5636_v63  ;;  %4182 = vmatpush1.bf16.msra.mxu1 %v5715_v19  ;;  %v5765_v63 = vld [vmem:[%s8322_s1 + $0x76c] ss:$152 sps:$4 sm:$0xff]   ;;  %v5775_v19 = vld [vmem:[%s8322_s1 + $0x9c8] ss:$152 sps:$4 sm:$0xff]  }
 0x101   :  { %4183 = vmatprep.subr.bf16.mxu1 %v5723_v20  ;;  %v5783_v20 = vld [vmem:[%s8322_s1 + $0xafc] ss:$152 sps:$4 sm:$0xff]  }
 0x102   :  { %4145 = vmatmul.mubr.bf16.vlgmr.msra.gmra.mrb[12].mxu0 %v6402_v58 }
 0x103   :  { %4195 = vmatpush1.bf16.msra.mxu0 %v5634_v0  ;;  %4226 = vmatprep.mubr.bf16.mxu0 %v6278_v17  ;;  %v651_v0 = vrot.slane %v7056_v23, %v7146_v57 }
 0x104   :  { %4196 = vmatprep.subr.bf16.mxu0 %v5642_v3  ;;  %4184 = vmatpush1.bf16.msra.mxu1 %v5721_v26  ;;  %v5781_v26 = vld [vmem:[%s8322_s1 + $0xaf8] ss:$152 sps:$4 sm:$0xff]  }
 0x105   :  { %4235 = vmatprep.subr.bf16.mxu1 %v5729_v27  ;;  %v5789_v27 = vld [vmem:[%s8322_s1 + $0xc2c] ss:$152 sps:$4 sm:$0xff]  }
 0x107   :  { %4197 = vmatpush1.bf16.msra.mxu0 %v5640_v6  ;;  %4186 = vmatmul.mubr.bf16.vlgmr.msra.gmra.mrb[12].mxu1 %v6402_v58  ;;  %v5763_v6 = vld [vmem:[%s8322_s1 + $0x768] ss:$152 sps:$4 sm:$0xff]  }
 0x108   :  { %4198 = vmatprep.subr.bf16.mxu0 %v5648_v7  ;;  %4236 = vmatpush1.bf16.msra.mxu1 %v5727_v34  ;;  %v5771_v7 = vld [vmem:[%s8322_s1 + $0x89c] ss:$152 sps:$4 sm:$0xff]   ;;  %v5793_v34 = vld [vmem:[%s8322_s1 + $0xd58] ss:$152 sps:$4 sm:$0xff]  }
 0x109   :  { %4267 = vmatprep.mubr.bf16.mxu1 %v6278_v17  ;;  %4237 = vmatprep.subr.bf16.mxu1 %v5735_v37  ;;  %v5744_v37 = vld [vmem:[%s8322_s1 + $0x2b4] ss:$152 sps:$4 sm:$0xff]  }
 0x10b   :  { %4199 = vmatpush1.bf16.msra.mxu0 %v5646_v11  ;;  %v5706_v11 = vld [vmem:[%s8322_s1 + $0xe80] ss:$152 sps:$4 sm:$0xff]  }
 0x10c   :  { %4200 = vmatprep.subr.bf16.mxu0 %v5654_v12  ;;  %4238 = vmatpush1.bf16.msra.mxu1 %v5733_v42  ;;  %v5714_v12 = vld [vmem:[%s8322_s1 + $0xfb4] ss:$152 sps:$4 sm:$0xff]   ;;  %v5805_v42 = vld [vmem:[%s8322_s1 + $0xfb8] ss:$152 sps:$4 sm:$0xff]  }
 0x10d   :  { %4239 = vmatprep.subr.bf16.mxu1 %v5741_v43  ;;  %v5813_v43 = vld [vmem:[%s8322_s1 + $0x10ec] ss:$152 sps:$4 sm:$0xff]  }
 0x10f   :  { %4201 = vmatpush1.bf16.msra.mxu0 %v5652_v16  ;;  %v5712_v16 = vld [vmem:[%s8322_s1 + $0xfb0] ss:$152 sps:$4 sm:$0xff]  }
 0x110   :  { %4202 = vmatprep.subr.bf16.mxu0 %v5660_v18  ;;  %4240 = vmatpush1.bf16.msra.mxu1 %v5739_v46  ;;  %v5720_v18 = vld [vmem:[%s8322_s1 + $0x10e4] ss:$152 sps:$4 sm:$0xff]   ;;  %v5811_v46 = vld [vmem:[%s8322_s1 + $0x10e8] ss:$152 sps:$4 sm:$0xff]  }
 0x111   :  { %4241 = vmatprep.subr.bf16.mxu1 %v5747_v47  ;;  %v5819_v47 = vld [vmem:[%s8322_s1 + $0x121c] ss:$152 sps:$4 sm:$0xff]  }
 0x113   :  { %4203 = vmatpush1.bf16.msra.mxu0 %v5658_v21  ;;  %v5718_v21 = vld [vmem:[%s8322_s1 + $0x10e0] ss:$152 sps:$4 sm:$0xff]  }
 0x114   :  { %4204 = vmatprep.subr.bf16.mxu0 %v5666_v25  ;;  %4242 = vmatpush1.bf16.msra.mxu1 %v5745_v50  ;;  %v5726_v25 = vld [vmem:[%s8322_s1 + $0x1214] ss:$152 sps:$4 sm:$0xff]   ;;  %v7287_v50 = vsub.s32 5, %v7033_v15 }
 0x115   :  { %v3900_v32 = vpop.f32.mrb[0].mxu0  ;;  %4243 = vmatprep.subr.bf16.mxu1 %v5753_v51  ;;  %v5762_v51 = vld [vmem:[%s8322_s1 + $0x644] ss:$152 sps:$4 sm:$0xff]  }
 0x116   :  { %v3901_v35 = vadd.f32 %v3900_v32, %v639_v28  ;;  %v3902_v36 = vpop.f32.mrb[1].mxu0  ;;  %v5724_v28 = vld [vmem:[%s8322_s1 + $0x1210] ss:$152 sps:$4 sm:$0xff]   ;;  %v5795_v32 = vld [vmem:[%s8322_s1 + $0xd5c] ss:$152 sps:$4 sm:$0xff]  }
 0x117   :  { %v3903_v38 = vadd.f32 %v3902_v36, %v643_v29  ;;  %v3904_v39 = vpop.f32.mrb[2].mxu0  ;;  %4205 = vmatpush1.bf16.msra.mxu0 %v5664_v30  ;;  %v5732_v29 = vld [vmem:[%s8322_s1 + $0x54] ss:$152 sps:$4 sm:$0xff]   ;;  %v5730_v30 = vld [vmem:[%s8322_s1 + $0x50] ss:$152 sps:$4 sm:$0xff]  }
 0x118   :  { %4645 = vst [vmem:[%s8325_s3] sm:$0xff] %v3901_v35  ;;  %v3905_v40 = vpop.f32.mrb[3].mxu0  ;;  %4206 = vmatprep.subr.bf16.mxu0 %v5672_v31  ;;  %4244 = vmatpush1.bf16.msra.mxu1 %v5751_v54  ;;  %v5787_v31 = vld [vmem:[%s8322_s1 + $0xc28] ss:$152 sps:$4 sm:$0xff]   ;;  %v5801_v35 = vld [vmem:[%s8322_s1 + $0xe8c] ss:$152 sps:$4 sm:$0xff]  }
 0x119   :  { %4646 = vst [vmem:[%s8325_s3 + $0x8] sm:$0xff] %v3903_v38  ;;  %4245 = vmatprep.subr.bf16.mxu1 %v5759_v56  ;;  %v5736_v36 = vld [vmem:[%s8322_s1 + $0x180] ss:$152 sps:$4 sm:$0xff]   ;;  %v5807_v39 = vld [vmem:[%s8322_s1 + $0xfbc] ss:$152 sps:$4 sm:$0xff]  }
 0x11a   :  { %v3941_v3 = vpop.f32.mrb[0].mxu1  ;;  %v5799_v38 = vld [vmem:[%s8322_s1 + $0xe88] ss:$152 sps:$4 sm:$0xff]  }
 0x11b   :  { %4207 = vmatpush1.bf16.msra.mxu0 %v5670_v33  ;;  %v3942_v4 = vadd.f32 %v3941_v3, %v647_v61  ;;  %v3943_v5 = vpop.f32.mrb[1].mxu1  ;;  %v5738_v33 = vld [vmem:[%s8322_s1 + $0x184] ss:$152 sps:$4 sm:$0xff]   ;;  %v5742_v40 = vld [vmem:[%s8322_s1 + $0x2b0] ss:$152 sps:$4 sm:$0xff]  }
 0x11c   :  { %4208 = vmatprep.subr.bf16.mxu0 %v5678_v41  ;;  %v3944_v8 = vadd.f32 %v3943_v5, %v651_v0  ;;  %4246 = vmatpush1.bf16.msra.mxu1 %v5757_v62  ;;  %v3945_v9 = vpop.f32.mrb[2].mxu1  ;;  %v5750_v41 = vld [vmem:[%s8322_s1 + $0x3e4] ss:$152 sps:$4 sm:$0xff]   ;;  %v5760_v54 = vld [vmem:[%s8322_s1 + $0x640] ss:$152 sps:$4 sm:$0xff]  }
 0x11d   :  { %4647 = vst [vmem:[%s8325_s3 + $0x10] sm:$0xff] %v3942_v4  ;;  %v3946_v10 = vpop.f32.mrb[3].mxu1  ;;  %4247 = vmatprep.subr.bf16.mxu1 %v5765_v63  ;;  %v5766_v62 = vld [vmem:[%s8322_s1 + $0x770] ss:$152 sps:$4 sm:$0xff]   ;;  %v5772_v9 = vld [vmem:[%s8322_s1 + $0x8a0] ss:$152 sps:$4 sm:$0xff]  }
 0x11e   :  { %4648 = vst [vmem:[%s8325_s3 + $0x18] sm:$0xff] %v3944_v8  ;;  %v5823_v63 = vld [vmem:[%s8322_s1 + $0x58] ss:$152 sps:$4 sm:$0xff]   ;;  %v5837_v8 = vld [vmem:[%s8322_s1 + $0x2bc] ss:$152 sps:$4 sm:$0xff]  }
 0x11f   :  { %4209 = vmatpush1.bf16.msra.mxu0 %v5676_v44  ;;  %v5748_v44 = vld [vmem:[%s8322_s1 + $0x3e0] ss:$152 sps:$4 sm:$0xff]   ;;  %v5780_v10 = vld [vmem:[%s8322_s1 + $0x9d4] ss:$152 sps:$4 sm:$0xff]  }
 0x120   :  { %4210 = vmatprep.subr.bf16.mxu0 %v5684_v45  ;;  %4248 = vmatpush1.bf16.msra.mxu1 %v5763_v6  ;;  %v5756_v45 = vld [vmem:[%s8322_s1 + $0x514] ss:$152 sps:$4 sm:$0xff]   ;;  %v5774_v6 = vld [vmem:[%s8322_s1 + $0x8a4] ss:$152 sps:$4 sm:$0xff]  }
 0x121   :  { %4249 = vmatprep.subr.bf16.mxu1 %v5771_v7  ;;  %v5829_v7 = vld [vmem:[%s8322_s1 + $0x188] ss:$152 sps:$4 sm:$0xff]  }
 0x123   :  { %4211 = vmatpush1.bf16.msra.mxu0 %v5682_v48  ;;  %v7281_v48 = vsub.s32 4, %v7033_v15 }
 0x124   :  { %4212 = vmatprep.subr.bf16.mxu0 %v5690_v49  ;;  %4250 = vmatpush1.bf16.msra.mxu1 %v5769_v13  ;;  %v5754_v49 = vld [vmem:[%s8322_s1 + $0x510] ss:$152 sps:$4 sm:$0xff]  }
 0x125   :  { %4251 = vmatprep.subr.bf16.mxu1 %v5777_v14  ;;  %v655_v56 = vrot.slane %v7056_v23, %v7281_v48  ;;  %v5778_v13 = vld [vmem:[%s8322_s1 + $0x9d0] ss:$152 sps:$4 sm:$0xff]   ;;  %v5786_v14 = vld [vmem:[%s8322_s1 + $0xb04] ss:$152 sps:$4 sm:$0xff]  }
 0x127   :  { %4213 = vmatpush1.bf16.msra.mxu0 %v5688_v52  ;;  %v5817_v52 = vld [vmem:[%s8322_s1 + $0x1218] ss:$152 sps:$4 sm:$0xff]  }
 0x128   :  { %4214 = vmatprep.subr.bf16.mxu0 %v5696_v53  ;;  %4252 = vmatpush1.bf16.msra.mxu1 %v5775_v19  ;;  %v5825_v53 = vld [vmem:[%s8322_s1 + $0x5c] ss:$152 sps:$4 sm:$0xff]   ;;  %v5784_v19 = vld [vmem:[%s8322_s1 + $0xb00] ss:$152 sps:$4 sm:$0xff]  }
 0x129   :  { %4253 = vmatprep.subr.bf16.mxu1 %v5783_v20  ;;  %v5792_v20 = vld [vmem:[%s8322_s1 + $0xc34] ss:$152 sps:$4 sm:$0xff]  }
 0x12b   :  { %4215 = vmatpush1.bf16.msra.mxu0 %v5694_v59  ;;  %v659_v59 = vrot.slane %v7056_v23, %v7287_v50 }
 0x12c   :  { %4216 = vmatprep.subr.bf16.mxu0 %v5702_v60  ;;  %4254 = vmatpush1.bf16.msra.mxu1 %v5781_v26  ;;  %v5768_v60 = vld [vmem:[%s8322_s1 + $0x774] ss:$152 sps:$4 sm:$0xff]   ;;  %v7371_v26 = vsub.s32 7, %v7033_v15 }
 0x12d   :  { %4255 = vmatprep.subr.bf16.mxu1 %v5789_v27  ;;  %v5855_v27 = vld [vmem:[%s8322_s1 + $0x64c] ss:$152 sps:$4 sm:$0xff]  }
 0x12f   :  { %4217 = vmatpush1.bf16.msra.mxu0 %v5700_v1 }
 0x130   :  { %4218 = vmatprep.subr.bf16.mxu0 %v5708_v2  ;;  %4256 = vmatpush1.bf16.msra.mxu1 %v5787_v31  ;;  %v5831_v2 = vld [vmem:[%s8322_s1 + $0x18c] ss:$152 sps:$4 sm:$0xff]   ;;  %v667_v31 = vrot.slane %v7056_v23, %v7371_v26 }
 0x131   :  { %4257 = vmatprep.subr.bf16.mxu1 %v5795_v32  ;;  %v5861_v32 = vld [vmem:[%s8322_s1 + $0x77c] ss:$152 sps:$4 sm:$0xff]  }
 0x133   :  { %4219 = vmatpush1.bf16.msra.mxu0 %v5706_v11  ;;  %v5835_v11 = vld [vmem:[%s8322_s1 + $0x2b8] ss:$152 sps:$4 sm:$0xff]  }
 0x134   :  { %4220 = vmatprep.subr.bf16.mxu0 %v5714_v12  ;;  %4258 = vmatpush1.bf16.msra.mxu1 %v5793_v34  ;;  %v5843_v12 = vld [vmem:[%s8322_s1 + $0x3ec] ss:$152 sps:$4 sm:$0xff]  }
 0x135   :  { %4259 = vmatprep.subr.bf16.mxu1 %v5801_v35  ;;  %v5804_v35 = vld [vmem:[%s8322_s1 + $0xe94] ss:$152 sps:$4 sm:$0xff]  }
 0x137   :  { %4221 = vmatpush1.bf16.msra.mxu0 %v5712_v16  ;;  %v5841_v16 = vld [vmem:[%s8322_s1 + $0x3e8] ss:$152 sps:$4 sm:$0xff]  }
 0x138   :  { %4222 = vmatprep.subr.bf16.mxu0 %v5720_v18  ;;  %4260 = vmatpush1.bf16.msra.mxu1 %v5799_v38  ;;  %v5849_v18 = vld [vmem:[%s8322_s1 + $0x51c] ss:$152 sps:$4 sm:$0xff]  }
 0x139   :  { %4261 = vmatprep.subr.bf16.mxu1 %v5807_v39  ;;  %v5859_v39 = vld [vmem:[%s8322_s1 + $0x778] ss:$152 sps:$4 sm:$0xff]  }
 0x13b   :  { %4223 = vmatpush1.bf16.msra.mxu0 %v5718_v21  ;;  %v7365_v21 = vsub.s32 6, %v7033_v15  ;;  %v5853_v15 = vld [vmem:[%s8322_s1 + $0x648] ss:$152 sps:$4 sm:$0xff]  }
 0x13c   :  { %4224 = vmatprep.subr.bf16.mxu0 %v5726_v25  ;;  %4262 = vmatpush1.bf16.msra.mxu1 %v5805_v42  ;;  %v5847_v25 = vld [vmem:[%s8322_s1 + $0x518] ss:$152 sps:$4 sm:$0xff]  }
 0x13d   :  { %4263 = vmatprep.subr.bf16.mxu1 %v5813_v43  ;;  %v5802_v42 = vld [vmem:[%s8322_s1 + $0xe90] ss:$152 sps:$4 sm:$0xff]   ;;  %v5810_v43 = vld [vmem:[%s8322_s1 + $0xfc4] ss:$152 sps:$4 sm:$0xff]  }
 0x13f   :  { %4225 = vmatpush1.bf16.msra.mxu0 %v5724_v28  ;;  %v5790_v28 = vld [vmem:[%s8322_s1 + $0xc30] ss:$152 sps:$4 sm:$0xff]  }
 0x140   :  { %4276 = vmatprep.subr.bf16.mxu0 %v5732_v29  ;;  %4264 = vmatpush1.bf16.msra.mxu1 %v5811_v46  ;;  %v5798_v29 = vld [vmem:[%s8322_s1 + $0xd64] ss:$152 sps:$4 sm:$0xff]   ;;  %v5808_v46 = vld [vmem:[%s8322_s1 + $0xfc0] ss:$152 sps:$4 sm:$0xff]  }
 0x141   :  { %4265 = vmatprep.subr.bf16.mxu1 %v5819_v47  ;;  %v5816_v47 = vld [vmem:[%s8322_s1 + $0x10f4] ss:$152 sps:$4 sm:$0xff]  }
 0x142   :  { %4227 = vmatmul.mubr.bf16.vlgmr.msra.gmra.mrb[16].mxu0 %v6402_v58 }
 0x143   :  { %4277 = vmatpush1.bf16.msra.mxu0 %v5730_v30  ;;  %4308 = vmatprep.mubr.bf16.mxu0 %v6278_v17  ;;  %v663_v30 = vrot.slane %v7056_v23, %v7365_v21 }
 0x144   :  { %4278 = vmatprep.subr.bf16.mxu0 %v5738_v33  ;;  %4266 = vmatpush1.bf16.msra.mxu1 %v5817_v52  ;;  %v5796_v33 = vld [vmem:[%s8322_s1 + $0xd60] ss:$152 sps:$4 sm:$0xff]   ;;  %v5814_v52 = vld [vmem:[%s8322_s1 + $0x10f0] ss:$152 sps:$4 sm:$0xff]  }
 0x145   :  { %4317 = vmatprep.subr.bf16.mxu1 %v5825_v53  ;;  %v5822_v53 = vld [vmem:[%s8322_s1 + $0x1224] ss:$152 sps:$4 sm:$0xff]  }
 0x147   :  { %4279 = vmatpush1.bf16.msra.mxu0 %v5736_v36  ;;  %4268 = vmatmul.mubr.bf16.vlgmr.msra.gmra.mrb[16].mxu1 %v6402_v58 }
 0x148   :  { %4280 = vmatprep.subr.bf16.mxu0 %v5744_v37  ;;  %4318 = vmatpush1.bf16.msra.mxu1 %v5823_v63  ;;  %v5826_v63 = vld [vmem:[%s8322_s1 + $0x60] ss:$152 sps:$4 sm:$0xff]  }
 0x149   :  { %4349 = vmatprep.mubr.bf16.mxu1 %v6278_v17  ;;  %4319 = vmatprep.subr.bf16.mxu1 %v5831_v2  ;;  %v5897_v2 = vld [vmem:[%s8322_s1 + $0xe9c] ss:$152 sps:$4 sm:$0xff]  }
 0x14b   :  { %4281 = vmatpush1.bf16.msra.mxu0 %v5742_v40 }
 0x14c   :  { %4282 = vmatprep.subr.bf16.mxu0 %v5750_v41  ;;  %4320 = vmatpush1.bf16.msra.mxu1 %v5829_v7  ;;  %v5867_v41 = vld [vmem:[%s8322_s1 + $0x8ac] ss:$152 sps:$4 sm:$0xff]   ;;  %v5838_v7 = vld [vmem:[%s8322_s1 + $0x2c0] ss:$152 sps:$4 sm:$0xff]  }
 0x14d   :  { %4321 = vmatprep.subr.bf16.mxu1 %v5837_v8  ;;  %v5846_v8 = vld [vmem:[%s8322_s1 + $0x3f4] ss:$152 sps:$4 sm:$0xff]  }
 0x14f   :  { %4283 = vmatpush1.bf16.msra.mxu0 %v5748_v44  ;;  %v5865_v44 = vld [vmem:[%s8322_s1 + $0x8a8] ss:$152 sps:$4 sm:$0xff]  }
 0x150   :  { %4284 = vmatprep.subr.bf16.mxu0 %v5756_v45  ;;  %4322 = vmatpush1.bf16.msra.mxu1 %v5835_v11  ;;  %v5873_v45 = vld [vmem:[%s8322_s1 + $0x9dc] ss:$152 sps:$4 sm:$0xff]   ;;  %v5844_v11 = vld [vmem:[%s8322_s1 + $0x3f0] ss:$152 sps:$4 sm:$0xff]  }
 0x151   :  { %4323 = vmatprep.subr.bf16.mxu1 %v5843_v12  ;;  %v5852_v12 = vld [vmem:[%s8322_s1 + $0x524] ss:$152 sps:$4 sm:$0xff]  }
 0x153   :  { %4285 = vmatpush1.bf16.msra.mxu0 %v5754_v49  ;;  %v5871_v49 = vld [vmem:[%s8322_s1 + $0x9d8] ss:$152 sps:$4 sm:$0xff]  }
 0x154   :  { %4286 = vmatprep.subr.bf16.mxu0 %v5762_v51  ;;  %4324 = vmatpush1.bf16.msra.mxu1 %v5841_v16  ;;  %v5879_v51 = vld [vmem:[%s8322_s1 + $0xb0c] ss:$152 sps:$4 sm:$0xff]   ;;  %v5850_v16 = vld [vmem:[%s8322_s1 + $0x520] ss:$152 sps:$4 sm:$0xff]  }
 0x155   :  { %v3982_v61 = vpop.f32.mrb[4].mxu0  ;;  %4325 = vmatprep.subr.bf16.mxu1 %v5849_v18  ;;  %v7514_v18 = vld [vmem:[%s8324_s2 + $0x8] sm:$0xff] }
 0x156   :  { %v3983_v0 = vadd.f32 %v3982_v61, %v655_v56  ;;  %v3984_v1 = vpop.f32.mrb[5].mxu0  ;;  %v5885_v56 = vld [vmem:[%s8322_s1 + $0xc3c] ss:$152 sps:$4 sm:$0xff]   ;;  %v5883_v61 = vld [vmem:[%s8322_s1 + $0xc38] ss:$152 sps:$4 sm:$0xff]  }
 0x157   :  { %v3985_v3 = vadd.f32 %v3984_v1, %v659_v59  ;;  %v3986_v4 = vpop.f32.mrb[6].mxu0  ;;  %4287 = vmatpush1.bf16.msra.mxu0 %v5760_v54  ;;  %v5877_v54 = vld [vmem:[%s8322_s1 + $0xb08] ss:$152 sps:$4 sm:$0xff]  }
 0x158   :  { %4649 = vst [vmem:[%s8325_s3 + $0x20] sm:$0xff] %v3983_v0  ;;  %v3987_v5 = vpop.f32.mrb[7].mxu0  ;;  %4288 = vmatprep.subr.bf16.mxu0 %v5768_v60  ;;  %4326 = vmatpush1.bf16.msra.mxu1 %v5847_v25  ;;  %v5820_v59 = vld [vmem:[%s8322_s1 + $0x1220] ss:$152 sps:$4 sm:$0xff]   ;;  %v5828_v60 = vld [vmem:[%s8322_s1 + $0x64] ss:$152 sps:$4 sm:$0xff]   ;;  %v671_v25 = vrot.slane %v7514_v18, %v7051_v22 }
 0x159   :  { %4650 = vst [vmem:[%s8325_s3 + $0x28] sm:$0xff] %v3985_v3  ;;  %4327 = vmatprep.subr.bf16.mxu1 %v5855_v27  ;;  %v5834_v0 = vld [vmem:[%s8322_s1 + $0x194] ss:$152 sps:$4 sm:$0xff]   ;;  %v5889_v1 = vld [vmem:[%s8322_s1 + $0xd68] ss:$152 sps:$4 sm:$0xff]  }
 0x15a   :  { %v4023_v34 = vpop.f32.mrb[4].mxu1  ;;  %v5832_v3 = vld [vmem:[%s8322_s1 + $0x190] ss:$152 sps:$4 sm:$0xff]   ;;  %v5840_v4 = vld [vmem:[%s8322_s1 + $0x2c4] ss:$152 sps:$4 sm:$0xff]  }
 0x15b   :  { %4289 = vmatpush1.bf16.msra.mxu0 %v5766_v62  ;;  %v4024_v36 = vadd.f32 %v4023_v34, %v663_v30  ;;  %v4025_v37 = vpop.f32.mrb[5].mxu1  ;;  %v5891_v62 = vld [vmem:[%s8322_s1 + $0xd6c] ss:$152 sps:$4 sm:$0xff]   ;;  %v5895_v5 = vld [vmem:[%s8322_s1 + $0xe98] ss:$152 sps:$4 sm:$0xff]  }
 0x15c   :  { %4290 = vmatprep.subr.bf16.mxu0 %v5774_v6  ;;  %v4026_v38 = vadd.f32 %v4025_v37, %v667_v31  ;;  %4328 = vmatpush1.bf16.msra.mxu1 %v5853_v15  ;;  %v4027_v23 = vpop.f32.mrb[6].mxu1  ;;  %v5903_v6 = vld [vmem:[%s8322_s1 + $0xfcc] ss:$152 sps:$4 sm:$0xff]   ;;  %v5919_v31 = vld [vmem:[%s8322_s1 + $0x68] ss:$152 sps:$4 sm:$0xff]  }
 0x15d   :  { %4651 = vst [vmem:[%s8325_s3 + $0x30] sm:$0xff] %v4024_v36  ;;  %v4028_v40 = vpop.f32.mrb[7].mxu1  ;;  %4329 = vmatprep.subr.bf16.mxu1 %v5861_v32  ;;  %v5921_v27 = vld [vmem:[%s8322_s1 + $0x6c] ss:$152 sps:$4 sm:$0xff]   ;;  %v5927_v34 = vld [vmem:[%s8322_s1 + $0x19c] ss:$152 sps:$4 sm:$0xff]  }
 0x15e   :  { %4652 = vst [vmem:[%s8325_s3 + $0x38] sm:$0xff] %v4026_v38  ;;  %v5864_v30 = vld [vmem:[%s8322_s1 + $0x784] ss:$152 sps:$4 sm:$0xff]   ;;  %v5862_v37 = vld [vmem:[%s8322_s1 + $0x780] ss:$152 sps:$4 sm:$0xff]  }
 0x15f   :  { %4291 = vmatpush1.bf16.msra.mxu0 %v5772_v9  ;;  %v5901_v9 = vld [vmem:[%s8322_s1 + $0xfc8] ss:$152 sps:$4 sm:$0xff]   ;;  %v5870_v23 = vld [vmem:[%s8322_s1 + $0x8b4] ss:$152 sps:$4 sm:$0xff]  }
 0x160   :  { %4292 = vmatprep.subr.bf16.mxu0 %v5780_v10  ;;  %4330 = vmatpush1.bf16.msra.mxu1 %v5859_v39  ;;  %v5909_v10 = vld [vmem:[%s8322_s1 + $0x10fc] ss:$152 sps:$4 sm:$0xff]   ;;  %v5925_v39 = vld [vmem:[%s8322_s1 + $0x198] ss:$152 sps:$4 sm:$0xff]   ;;  %v5933_v40 = vld [vmem:[%s8322_s1 + $0x2cc] ss:$152 sps:$4 sm:$0xff]  }
 0x161   :  { %4331 = vmatprep.subr.bf16.mxu1 %v5867_v41  ;;  %v5868_v41 = vld [vmem:[%s8322_s1 + $0x8b0] ss:$152 sps:$4 sm:$0xff]  }
 0x163   :  { %4293 = vmatpush1.bf16.msra.mxu0 %v5778_v13  ;;  %v5907_v13 = vld [vmem:[%s8322_s1 + $0x10f8] ss:$152 sps:$4 sm:$0xff]  }
 0x164   :  { %4294 = vmatprep.subr.bf16.mxu0 %v5786_v14  ;;  %4332 = vmatpush1.bf16.msra.mxu1 %v5865_v44  ;;  %v5915_v14 = vld [vmem:[%s8322_s1 + $0x122c] ss:$152 sps:$4 sm:$0xff]   ;;  %v5939_v44 = vld [vmem:[%s8322_s1 + $0x3fc] ss:$152 sps:$4 sm:$0xff]  }
 0x165   :  { %4333 = vmatprep.subr.bf16.mxu1 %v5873_v45  ;;  %v5874_v45 = vld [vmem:[%s8322_s1 + $0x9e0] ss:$152 sps:$4 sm:$0xff]  }
 0x167   :  { %4295 = vmatpush1.bf16.msra.mxu0 %v5784_v19  ;;  %v5858_v19 = vld [vmem:[%s8322_s1 + $0x654] ss:$152 sps:$4 sm:$0xff]  }
 0x168   :  { %4296 = vmatprep.subr.bf16.mxu0 %v5792_v20  ;;  %4334 = vmatpush1.bf16.msra.mxu1 %v5871_v49  ;;  %v5913_v20 = vld [vmem:[%s8322_s1 + $0x1228] ss:$152 sps:$4 sm:$0xff]   ;;  %v5945_v49 = vld [vmem:[%s8322_s1 + $0x52c] ss:$152 sps:$4 sm:$0xff]  }
 0x169   :  { %4335 = vmatprep.subr.bf16.mxu1 %v5879_v51  ;;  %v5880_v51 = vld [vmem:[%s8322_s1 + $0xb10] ss:$152 sps:$4 sm:$0xff]  }
 0x16b   :  { %4297 = vmatpush1.bf16.msra.mxu0 %v5790_v28  ;;  %v675_v28 = vrot.slane %v7514_v18, %v7059_v24 }
 0x16c   :  { %4298 = vmatprep.subr.bf16.mxu0 %v5798_v29  ;;  %4336 = vmatpush1.bf16.msra.mxu1 %v5877_v54  ;;  %v5856_v29 = vld [vmem:[%s8322_s1 + $0x650] ss:$152 sps:$4 sm:$0xff]   ;;  %v5951_v54 = vld [vmem:[%s8322_s1 + $0x65c] ss:$152 sps:$4 sm:$0xff]  }
 0x16d   :  { %4337 = vmatprep.subr.bf16.mxu1 %v5885_v56  ;;  %v5886_v56 = vld [vmem:[%s8322_s1 + $0xc40] ss:$152 sps:$4 sm:$0xff]  }
 0x16f   :  { %4299 = vmatpush1.bf16.msra.mxu0 %v5796_v33 }
 0x170   :  { %4300 = vmatprep.subr.bf16.mxu0 %v5804_v35  ;;  %4338 = vmatpush1.bf16.msra.mxu1 %v5883_v61  ;;  %v5949_v61 = vld [vmem:[%s8322_s1 + $0x658] ss:$152 sps:$4 sm:$0xff]  }
 0x171   :  { %4339 = vmatprep.subr.bf16.mxu1 %v5891_v62  ;;  %v683_v62 = vrot.slane %v7514_v18, %v7146_v57 }
 0x173   :  { %4301 = vmatpush1.bf16.msra.mxu0 %v5802_v42  ;;  %v5876_v42 = vld [vmem:[%s8322_s1 + $0x9e4] ss:$152 sps:$4 sm:$0xff]  }
 0x174   :  { %4302 = vmatprep.subr.bf16.mxu0 %v5810_v43  ;;  %4340 = vmatpush1.bf16.msra.mxu1 %v5889_v1  ;;  %v5931_v43 = vld [vmem:[%s8322_s1 + $0x2c8] ss:$152 sps:$4 sm:$0xff]  }
 0x175   :  { %4341 = vmatprep.subr.bf16.mxu1 %v5897_v2  ;;  %v5900_v2 = vld [vmem:[%s8322_s1 + $0xea4] ss:$152 sps:$4 sm:$0xff]  }
 0x177   :  { %4303 = vmatpush1.bf16.msra.mxu0 %v5808_v46  ;;  %v5882_v46 = vld [vmem:[%s8322_s1 + $0xb14] ss:$152 sps:$4 sm:$0xff]  }
 0x178   :  { %4304 = vmatprep.subr.bf16.mxu0 %v5816_v47  ;;  %4342 = vmatpush1.bf16.msra.mxu1 %v5895_v5  ;;  %v5937_v47 = vld [vmem:[%s8322_s1 + $0x3f8] ss:$152 sps:$4 sm:$0xff]  }
 0x179   :  { %4343 = vmatprep.subr.bf16.mxu1 %v5903_v6 }
 0x17b   :  { %4305 = vmatpush1.bf16.msra.mxu0 %v5814_v52  ;;  %v5888_v52 = vld [vmem:[%s8322_s1 + $0xc44] ss:$152 sps:$4 sm:$0xff]  }
 0x17c   :  { %4306 = vmatprep.subr.bf16.mxu0 %v5822_v53  ;;  %4344 = vmatpush1.bf16.msra.mxu1 %v5901_v9  ;;  %v5943_v53 = vld [vmem:[%s8322_s1 + $0x528] ss:$152 sps:$4 sm:$0xff]   ;;  %v5963_v9 = vld [vmem:[%s8322_s1 + $0x8bc] ss:$152 sps:$4 sm:$0xff]  }
 0x17d   :  { %4345 = vmatprep.subr.bf16.mxu1 %v5909_v10  ;;  %v5898_v10 = vld [vmem:[%s8322_s1 + $0xea0] ss:$152 sps:$4 sm:$0xff]  }
 0x17f   :  { %4307 = vmatpush1.bf16.msra.mxu0 %v5820_v59  ;;  %v5894_v59 = vld [vmem:[%s8322_s1 + $0xd74] ss:$152 sps:$4 sm:$0xff]  }
 0x180   :  { %4358 = vmatprep.subr.bf16.mxu0 %v5828_v60  ;;  %4346 = vmatpush1.bf16.msra.mxu1 %v5907_v13  ;;  %v679_v60 = vrot.slane %v7514_v18, %v7140_v55  ;;  %v5969_v13 = vld [vmem:[%s8322_s1 + $0x9ec] ss:$152 sps:$4 sm:$0xff]  }
 0x181   :  { %4347 = vmatprep.subr.bf16.mxu1 %v5915_v14  ;;  %v5904_v14 = vld [vmem:[%s8322_s1 + $0xfd0] ss:$152 sps:$4 sm:$0xff]  }
 0x182   :  { %4309 = vmatmul.mubr.bf16.vlgmr.msra.gmra.mrb[20].mxu0 %v6402_v58 }
 0x183   :  { %4359 = vmatpush1.bf16.msra.mxu0 %v5826_v63  ;;  %4390 = vmatprep.mubr.bf16.mxu0 %v6278_v17  ;;  %v5957_v63 = vld [vmem:[%s8322_s1 + $0x78c] ss:$152 sps:$4 sm:$0xff]  }
 0x184   :  { %4360 = vmatprep.subr.bf16.mxu0 %v5834_v0  ;;  %4348 = vmatpush1.bf16.msra.mxu1 %v5913_v20  ;;  %v5892_v0 = vld [vmem:[%s8322_s1 + $0xd70] ss:$152 sps:$4 sm:$0xff]   ;;  %v5975_v20 = vld [vmem:[%s8322_s1 + $0xb1c] ss:$152 sps:$4 sm:$0xff]  }
 0x185   :  { %4399 = vmatprep.subr.bf16.mxu1 %v5921_v27  ;;  %v5918_v27 = vld [vmem:[%s8322_s1 + $0x1234] ss:$152 sps:$4 sm:$0xff]  }
 0x187   :  { %4361 = vmatpush1.bf16.msra.mxu0 %v5832_v3  ;;  %4350 = vmatmul.mubr.bf16.vlgmr.msra.gmra.mrb[20].mxu1 %v6402_v58 }
 0x188   :  { %4362 = vmatprep.subr.bf16.mxu0 %v5840_v4  ;;  %4400 = vmatpush1.bf16.msra.mxu1 %v5919_v31  ;;  %v5979_v31 = vld [vmem:[%s8322_s1 + $0xc48] ss:$152 sps:$4 sm:$0xff]  }
 0x189   :  { %4431 = vmatprep.mubr.bf16.mxu1 %v6278_v17  ;;  %4401 = vmatprep.subr.bf16.mxu1 %v5927_v34  ;;  %v5930_v34 = vld [vmem:[%s8322_s1 + $0x1a4] ss:$152 sps:$4 sm:$0xff]  }
 0x18b   :  { %4363 = vmatpush1.bf16.msra.mxu0 %v5838_v7  ;;  %v5955_v7 = vld [vmem:[%s8322_s1 + $0x788] ss:$152 sps:$4 sm:$0xff]  }
 0x18c   :  { %4364 = vmatprep.subr.bf16.mxu0 %v5846_v8  ;;  %4402 = vmatpush1.bf16.msra.mxu1 %v5925_v39  ;;  %v5999_v39 = vld [vmem:[%s8322_s1 + $0xfdc] ss:$152 sps:$4 sm:$0xff]  }
 0x18d   :  { %4403 = vmatprep.subr.bf16.mxu1 %v5933_v40  ;;  %v5934_v40 = vld [vmem:[%s8322_s1 + $0x2d0] ss:$152 sps:$4 sm:$0xff]  }
 0x18f   :  { %4365 = vmatpush1.bf16.msra.mxu0 %v5844_v11  ;;  %v5906_v11 = vld [vmem:[%s8322_s1 + $0xfd4] ss:$152 sps:$4 sm:$0xff]  }
 0x190   :  { %4366 = vmatprep.subr.bf16.mxu0 %v5852_v12  ;;  %4404 = vmatpush1.bf16.msra.mxu1 %v5931_v43  ;;  %v5961_v12 = vld [vmem:[%s8322_s1 + $0x8b8] ss:$152 sps:$4 sm:$0xff]   ;;  %v6005_v43 = vld [vmem:[%s8322_s1 + $0x110c] ss:$152 sps:$4 sm:$0xff]  }
 0x191   :  { %4405 = vmatprep.subr.bf16.mxu1 %v5939_v44  ;;  %v5940_v44 = vld [vmem:[%s8322_s1 + $0x400] ss:$152 sps:$4 sm:$0xff]  }
 0x193   :  { %4367 = vmatpush1.bf16.msra.mxu0 %v5850_v16  ;;  %v5912_v16 = vld [vmem:[%s8322_s1 + $0x1104] ss:$152 sps:$4 sm:$0xff]  }
 0x194   :  { %4368 = vmatprep.subr.bf16.mxu0 %v5858_v19  ;;  %4406 = vmatpush1.bf16.msra.mxu1 %v5937_v47  ;;  %v5967_v19 = vld [vmem:[%s8322_s1 + $0x9e8] ss:$152 sps:$4 sm:$0xff]   ;;  %v6011_v47 = vld [vmem:[%s8322_s1 + $0x123c] ss:$152 sps:$4 sm:$0xff]  }
 0x195   :  { %v4064_v15 = vpop.f32.mrb[8].mxu0  ;;  %4407 = vmatprep.subr.bf16.mxu1 %v5945_v49  ;;  %v5946_v49 = vld [vmem:[%s8322_s1 + $0x530] ss:$152 sps:$4 sm:$0xff]  }
 0x196   :  { %v4065_v32 = vadd.f32 %v4064_v15, %v671_v25  ;;  %v4066_v33 = vpop.f32.mrb[9].mxu0  ;;  %v5910_v25 = vld [vmem:[%s8322_s1 + $0x1100] ss:$152 sps:$4 sm:$0xff]   ;;  %v5924_v15 = vld [vmem:[%s8322_s1 + $0x74] ss:$152 sps:$4 sm:$0xff]  }
 0x197   :  { %v4067_v35 = vadd.f32 %v4066_v33, %v675_v28  ;;  %v4068_v36 = vpop.f32.mrb[10].mxu0  ;;  %4369 = vmatpush1.bf16.msra.mxu0 %v5856_v29  ;;  %v5973_v28 = vld [vmem:[%s8322_s1 + $0xb18] ss:$152 sps:$4 sm:$0xff]   ;;  %v5981_v29 = vld [vmem:[%s8322_s1 + $0xc4c] ss:$152 sps:$4 sm:$0xff]  }
 0x198   :  { %4653 = vst [vmem:[%s8325_s3 + $0x40] sm:$0xff] %v4065_v32  ;;  %v4069_v38 = vpop.f32.mrb[11].mxu0  ;;  %4370 = vmatprep.subr.bf16.mxu0 %v5864_v30  ;;  %4408 = vmatpush1.bf16.msra.mxu1 %v5943_v53  ;;  %v5916_v30 = vld [vmem:[%s8322_s1 + $0x1230] ss:$152 sps:$4 sm:$0xff]   ;;  %v5987_v32 = vld [vmem:[%s8322_s1 + $0xd7c] ss:$152 sps:$4 sm:$0xff]   ;;  %v687_v53 = vrot.slane %v7514_v18, %v7281_v48 }
 0x199   :  { %4654 = vst [vmem:[%s8325_s3 + $0x48] sm:$0xff] %v4067_v35  ;;  %4409 = vmatprep.subr.bf16.mxu1 %v5951_v54  ;;  %v5922_v33 = vld [vmem:[%s8322_s1 + $0x70] ss:$152 sps:$4 sm:$0xff]   ;;  %v5993_v36 = vld [vmem:[%s8322_s1 + $0xeac] ss:$152 sps:$4 sm:$0xff]  }
 0x19a   :  { %v4105_v1 = vpop.f32.mrb[8].mxu1  ;;  %v5985_v35 = vld [vmem:[%s8322_s1 + $0xd78] ss:$152 sps:$4 sm:$0xff]   ;;  %v5936_v38 = vld [vmem:[%s8322_s1 + $0x2d4] ss:$152 sps:$4 sm:$0xff]  }
 0x19b   :  { %4371 = vmatpush1.bf16.msra.mxu0 %v5862_v37  ;;  %v4106_v3 = vadd.f32 %v4105_v1, %v679_v60  ;;  %v4107_v4 = vpop.f32.mrb[9].mxu1  ;;  %v5928_v37 = vld [vmem:[%s8322_s1 + $0x1a0] ss:$152 sps:$4 sm:$0xff]   ;;  %v6017_v54 = vld [vmem:[%s8322_s1 + $0x7c] ss:$152 sps:$4 sm:$0xff]  }
 0x19c   :  { %4372 = vmatprep.subr.bf16.mxu0 %v5870_v23  ;;  %v4108_v5 = vadd.f32 %v4107_v4, %v683_v62  ;;  %4410 = vmatpush1.bf16.msra.mxu1 %v5949_v61  ;;  %v4109_v6 = vpop.f32.mrb[10].mxu1  ;;  %v5991_v23 = vld [vmem:[%s8322_s1 + $0xea8] ss:$152 sps:$4 sm:$0xff]   ;;  %v5960_v60 = vld [vmem:[%s8322_s1 + $0x794] ss:$152 sps:$4 sm:$0xff]  }
 0x19d   :  { %4655 = vst [vmem:[%s8325_s3 + $0x50] sm:$0xff] %v4106_v3  ;;  %v4110_v8 = vpop.f32.mrb[11].mxu1  ;;  %4411 = vmatprep.subr.bf16.mxu1 %v5957_v63  ;;  %v6015_v62 = vld [vmem:[%s8322_s1 + $0x78] ss:$152 sps:$4 sm:$0xff]   ;;  %v6023_v1 = vld [vmem:[%s8322_s1 + $0x1ac] ss:$152 sps:$4 sm:$0xff]  }
 0x19e   :  { %4656 = vst [vmem:[%s8325_s3 + $0x58] sm:$0xff] %v4108_v5  ;;  %v5958_v4 = vld [vmem:[%s8322_s1 + $0x790] ss:$152 sps:$4 sm:$0xff]   ;;  %v5966_v6 = vld [vmem:[%s8322_s1 + $0x8c4] ss:$152 sps:$4 sm:$0xff]  }
 0x19f   :  { %4373 = vmatpush1.bf16.msra.mxu0 %v5868_v41  ;;  %v5942_v41 = vld [vmem:[%s8322_s1 + $0x404] ss:$152 sps:$4 sm:$0xff]  }
 0x1a0   :  { %4374 = vmatprep.subr.bf16.mxu0 %v5876_v42  ;;  %4412 = vmatpush1.bf16.msra.mxu1 %v5955_v7  ;;  %v5997_v42 = vld [vmem:[%s8322_s1 + $0xfd8] ss:$152 sps:$4 sm:$0xff]   ;;  %v6021_v7 = vld [vmem:[%s8322_s1 + $0x1a8] ss:$152 sps:$4 sm:$0xff]   ;;  %v6029_v8 = vld [vmem:[%s8322_s1 + $0x2dc] ss:$152 sps:$4 sm:$0xff]  }
 0x1a1   :  { %4413 = vmatprep.subr.bf16.mxu1 %v5963_v9  ;;  %v5964_v9 = vld [vmem:[%s8322_s1 + $0x8c0] ss:$152 sps:$4 sm:$0xff]  }
 0x1a3   :  { %4375 = vmatpush1.bf16.msra.mxu0 %v5874_v45  ;;  %v5948_v45 = vld [vmem:[%s8322_s1 + $0x534] ss:$152 sps:$4 sm:$0xff]  }
 0x1a4   :  { %4376 = vmatprep.subr.bf16.mxu0 %v5882_v46  ;;  %4414 = vmatpush1.bf16.msra.mxu1 %v5961_v12  ;;  %v6003_v46 = vld [vmem:[%s8322_s1 + $0x1108] ss:$152 sps:$4 sm:$0xff]   ;;  %v6035_v12 = vld [vmem:[%s8322_s1 + $0x40c] ss:$152 sps:$4 sm:$0xff]  }
 0x1a5   :  { %4415 = vmatprep.subr.bf16.mxu1 %v5969_v13  ;;  %v5970_v13 = vld [vmem:[%s8322_s1 + $0x9f0] ss:$152 sps:$4 sm:$0xff]  }
 0x1a7   :  { %4377 = vmatpush1.bf16.msra.mxu0 %v5880_v51  ;;  %v5954_v51 = vld [vmem:[%s8322_s1 + $0x664] ss:$152 sps:$4 sm:$0xff]  }
 0x1a8   :  { %4378 = vmatprep.subr.bf16.mxu0 %v5888_v52  ;;  %4416 = vmatpush1.bf16.msra.mxu1 %v5967_v19  ;;  %v6009_v52 = vld [vmem:[%s8322_s1 + $0x1238] ss:$152 sps:$4 sm:$0xff]   ;;  %v6041_v19 = vld [vmem:[%s8322_s1 + $0x53c] ss:$152 sps:$4 sm:$0xff]  }
 0x1a9   :  { %4417 = vmatprep.subr.bf16.mxu1 %v5975_v20  ;;  %v5976_v20 = vld [vmem:[%s8322_s1 + $0xb20] ss:$152 sps:$4 sm:$0xff]  }
 0x1ab   :  { %4379 = vmatpush1.bf16.msra.mxu0 %v5886_v56  ;;  %v691_v56 = vrot.slane %v7514_v18, %v7287_v50 }
 0x1ac   :  { %4380 = vmatprep.subr.bf16.mxu0 %v5894_v59  ;;  %4418 = vmatpush1.bf16.msra.mxu1 %v5973_v28  ;;  %v5952_v59 = vld [vmem:[%s8322_s1 + $0x660] ss:$152 sps:$4 sm:$0xff]   ;;  %v6047_v28 = vld [vmem:[%s8322_s1 + $0x66c] ss:$152 sps:$4 sm:$0xff]  }
 0x1ad   :  { %4419 = vmatprep.subr.bf16.mxu1 %v5981_v29  ;;  %v5982_v29 = vld [vmem:[%s8322_s1 + $0xc50] ss:$152 sps:$4 sm:$0xff]  }
 0x1af   :  { %4381 = vmatpush1.bf16.msra.mxu0 %v5892_v0 }
 0x1b0   :  { %4382 = vmatprep.subr.bf16.mxu0 %v5900_v2  ;;  %4420 = vmatpush1.bf16.msra.mxu1 %v5979_v31  ;;  %v6045_v31 = vld [vmem:[%s8322_s1 + $0x668] ss:$152 sps:$4 sm:$0xff]  }
 0x1b1   :  { %4421 = vmatprep.subr.bf16.mxu1 %v5987_v32  ;;  %v699_v32 = vrot.slane %v7514_v18, %v7371_v26 }
 0x1b3   :  { %4383 = vmatpush1.bf16.msra.mxu0 %v5898_v10  ;;  %v5972_v10 = vld [vmem:[%s8322_s1 + $0x9f4] ss:$152 sps:$4 sm:$0xff]  }
 0x1b4   :  { %4384 = vmatprep.subr.bf16.mxu0 %v5906_v11  ;;  %4422 = vmatpush1.bf16.msra.mxu1 %v5985_v35  ;;  %v6027_v11 = vld [vmem:[%s8322_s1 + $0x2d8] ss:$152 sps:$4 sm:$0xff]  }
 0x1b5   :  { %4423 = vmatprep.subr.bf16.mxu1 %v5993_v36  ;;  %v5996_v36 = vld [vmem:[%s8322_s1 + $0xeb4] ss:$152 sps:$4 sm:$0xff]  }
 0x1b7   :  { %4385 = vmatpush1.bf16.msra.mxu0 %v5904_v14  ;;  %v5978_v14 = vld [vmem:[%s8322_s1 + $0xb24] ss:$152 sps:$4 sm:$0xff]  }
 0x1b8   :  { %4386 = vmatprep.subr.bf16.mxu0 %v5912_v16  ;;  %4424 = vmatpush1.bf16.msra.mxu1 %v5991_v23  ;;  %v6033_v16 = vld [vmem:[%s8322_s1 + $0x408] ss:$152 sps:$4 sm:$0xff]  }
 0x1b9   :  { %4425 = vmatprep.subr.bf16.mxu1 %v5999_v39  ;;  %v6051_v39 = vld [vmem:[%s8322_s1 + $0x798] ss:$152 sps:$4 sm:$0xff]  }
 0x1bb   :  { %4387 = vmatpush1.bf16.msra.mxu0 %v5910_v25  ;;  %v5984_v25 = vld [vmem:[%s8322_s1 + $0xc54] ss:$152 sps:$4 sm:$0xff]  }
 0x1bc   :  { %4388 = vmatprep.subr.bf16.mxu0 %v5918_v27  ;;  %4426 = vmatpush1.bf16.msra.mxu1 %v5997_v42  ;;  %v6039_v27 = vld [vmem:[%s8322_s1 + $0x538] ss:$152 sps:$4 sm:$0xff]  }
 0x1bd   :  { %4427 = vmatprep.subr.bf16.mxu1 %v6005_v43  ;;  %v5994_v42 = vld [vmem:[%s8322_s1 + $0xeb0] ss:$152 sps:$4 sm:$0xff]   ;;  %v6002_v43 = vld [vmem:[%s8322_s1 + $0xfe4] ss:$152 sps:$4 sm:$0xff]  }
 0x1bf   :  { %4389 = vmatpush1.bf16.msra.mxu0 %v5916_v30  ;;  %v5990_v30 = vld [vmem:[%s8322_s1 + $0xd84] ss:$152 sps:$4 sm:$0xff]  }
 0x1c0   :  { %4440 = vmatprep.subr.bf16.mxu0 %v5924_v15  ;;  %4428 = vmatpush1.bf16.msra.mxu1 %v6003_v46  ;;  %v695_v15 = vrot.slane %v7514_v18, %v7365_v21  ;;  %v6000_v46 = vld [vmem:[%s8322_s1 + $0xfe0] ss:$152 sps:$4 sm:$0xff]  }
 0x1c1   :  { %4429 = vmatprep.subr.bf16.mxu1 %v6011_v47  ;;  %v6008_v47 = vld [vmem:[%s8322_s1 + $0x1114] ss:$152 sps:$4 sm:$0xff]  }
 0x1c2   :  { %4391 = vmatmul.mubr.bf16.vlgmr.msra.gmra.mrb[24].mxu0 %v6402_v58 }
 0x1c3   :  { %4441 = vmatpush1.bf16.msra.mxu0 %v5922_v33  ;;  %4472 = vmatprep.mubr.bf16.mxu0 %v6278_v17  ;;  %v6053_v33 = vld [vmem:[%s8322_s1 + $0x79c] ss:$152 sps:$4 sm:$0xff]  }
 0x1c4   :  { %4442 = vmatprep.subr.bf16.mxu0 %v5930_v34  ;;  %4430 = vmatpush1.bf16.msra.mxu1 %v6009_v52  ;;  %v5988_v34 = vld [vmem:[%s8322_s1 + $0xd80] ss:$152 sps:$4 sm:$0xff]   ;;  %v6006_v52 = vld [vmem:[%s8322_s1 + $0x1110] ss:$152 sps:$4 sm:$0xff]  }
 0x1c5   :  { %4481 = vmatprep.subr.bf16.mxu1 %v6017_v54  ;;  %v6069_v54 = vld [vmem:[%s8322_s1 + $0xb28] ss:$152 sps:$4 sm:$0xff]  }
 0x1c7   :  { %4443 = vmatpush1.bf16.msra.mxu0 %v5928_v37  ;;  %4432 = vmatmul.mubr.bf16.vlgmr.msra.gmra.mrb[24].mxu1 %v6402_v58 }
 0x1c8   :  { %4444 = vmatprep.subr.bf16.mxu0 %v5936_v38  ;;  %4482 = vmatpush1.bf16.msra.mxu1 %v6015_v62  ;;  %v6083_v62 = vld [vmem:[%s8322_s1 + $0xd8c] ss:$152 sps:$4 sm:$0xff]  }
 0x1c9   :  { %4513 = vmatprep.mubr.bf16.mxu1 %v6278_v17  ;;  %4483 = vmatprep.subr.bf16.mxu1 %v6023_v1  ;;  %v6081_v1 = vld [vmem:[%s8322_s1 + $0xd88] ss:$152 sps:$4 sm:$0xff]  }
 0x1cb   :  { %4445 = vmatpush1.bf16.msra.mxu0 %v5934_v40 }
 0x1cc   :  { %4446 = vmatprep.subr.bf16.mxu0 %v5942_v41  ;;  %4484 = vmatpush1.bf16.msra.mxu1 %v6021_v7  ;;  %v6059_v41 = vld [vmem:[%s8322_s1 + $0x8cc] ss:$152 sps:$4 sm:$0xff]   ;;  %v6030_v7 = vld [vmem:[%s8322_s1 + $0x2e0] ss:$152 sps:$4 sm:$0xff]  }
 0x1cd   :  { %4485 = vmatprep.subr.bf16.mxu1 %v6029_v8  ;;  %v6038_v8 = vld [vmem:[%s8322_s1 + $0x414] ss:$152 sps:$4 sm:$0xff]  }
 0x1cf   :  { %4447 = vmatpush1.bf16.msra.mxu0 %v5940_v44  ;;  %v6057_v44 = vld [vmem:[%s8322_s1 + $0x8c8] ss:$152 sps:$4 sm:$0xff]  }
 0x1d0   :  { %4448 = vmatprep.subr.bf16.mxu0 %v5948_v45  ;;  %4486 = vmatpush1.bf16.msra.mxu1 %v6027_v11  ;;  %v6065_v45 = vld [vmem:[%s8322_s1 + $0x9fc] ss:$152 sps:$4 sm:$0xff]   ;;  %v6036_v11 = vld [vmem:[%s8322_s1 + $0x410] ss:$152 sps:$4 sm:$0xff]  }
 0x1d1   :  { %4487 = vmatprep.subr.bf16.mxu1 %v6035_v12  ;;  %v6044_v12 = vld [vmem:[%s8322_s1 + $0x544] ss:$152 sps:$4 sm:$0xff]  }
 0x1d3   :  { %4449 = vmatpush1.bf16.msra.mxu0 %v5946_v49  ;;  %v6063_v49 = vld [vmem:[%s8322_s1 + $0x9f8] ss:$152 sps:$4 sm:$0xff]  }
 0x1d4   :  { %4450 = vmatprep.subr.bf16.mxu0 %v5954_v51  ;;  %4488 = vmatpush1.bf16.msra.mxu1 %v6033_v16  ;;  %v6071_v51 = vld [vmem:[%s8322_s1 + $0xb2c] ss:$152 sps:$4 sm:$0xff]   ;;  %v6042_v16 = vld [vmem:[%s8322_s1 + $0x540] ss:$152 sps:$4 sm:$0xff]  }
 0x1d5   :  { %v4146_v61 = vpop.f32.mrb[12].mxu0  ;;  %4489 = vmatprep.subr.bf16.mxu1 %v6041_v19  ;;  %v7951_v19 = vld [vmem:[%s8324_s2 + $0x10] sm:$0xff] }
 0x1d6   :  { %v4147_v63 = vadd.f32 %v4146_v61, %v687_v53  ;;  %v4148_v0 = vpop.f32.mrb[13].mxu0  ;;  %v6014_v53 = vld [vmem:[%s8322_s1 + $0x1244] ss:$152 sps:$4 sm:$0xff]   ;;  %v6075_v61 = vld [vmem:[%s8322_s1 + $0xc58] ss:$152 sps:$4 sm:$0xff]  }
 0x1d7   :  { %v4149_v2 = vadd.f32 %v4148_v0, %v691_v56  ;;  %v4150_v3 = vpop.f32.mrb[14].mxu0  ;;  %4451 = vmatpush1.bf16.msra.mxu0 %v5952_v59  ;;  %v6077_v56 = vld [vmem:[%s8322_s1 + $0xc5c] ss:$152 sps:$4 sm:$0xff]   ;;  %v6012_v59 = vld [vmem:[%s8322_s1 + $0x1240] ss:$152 sps:$4 sm:$0xff]  }
 0x1d8   :  { %4657 = vst [vmem:[%s8325_s3 + $0x60] sm:$0xff] %v4147_v63  ;;  %v4151_v5 = vpop.f32.mrb[15].mxu0  ;;  %4452 = vmatprep.subr.bf16.mxu0 %v5960_v60  ;;  %4490 = vmatpush1.bf16.msra.mxu1 %v6039_v27  ;;  %v6020_v60 = vld [vmem:[%s8322_s1 + $0x84] ss:$152 sps:$4 sm:$0xff]   ;;  %v6018_v63 = vld [vmem:[%s8322_s1 + $0x80] ss:$152 sps:$4 sm:$0xff]   ;;  %v703_v27 = vrot.slane %v7951_v19, %v7051_v22 }
 0x1d9   :  { %4658 = vst [vmem:[%s8325_s3 + $0x68] sm:$0xff] %v4149_v2  ;;  %4491 = vmatprep.subr.bf16.mxu1 %v6047_v28  ;;  %v6026_v0 = vld [vmem:[%s8322_s1 + $0x1b4] ss:$152 sps:$4 sm:$0xff]   ;;  %v6024_v3 = vld [vmem:[%s8322_s1 + $0x1b0] ss:$152 sps:$4 sm:$0xff]  }
 0x1da   :  { %v4187_v35 = vpop.f32.mrb[12].mxu1  ;;  %v6089_v2 = vld [vmem:[%s8322_s1 + $0xebc] ss:$152 sps:$4 sm:$0xff]   ;;  %v6087_v5 = vld [vmem:[%s8322_s1 + $0xeb8] ss:$152 sps:$4 sm:$0xff]  }
 0x1db   :  { %4453 = vmatpush1.bf16.msra.mxu0 %v5958_v4  ;;  %v4188_v37 = vadd.f32 %v4187_v35, %v695_v15  ;;  %v4189_v38 = vpop.f32.mrb[13].mxu1  ;;  %v6032_v4 = vld [vmem:[%s8322_s1 + $0x2e4] ss:$152 sps:$4 sm:$0xff]  }
 0x1dc   :  { %4454 = vmatprep.subr.bf16.mxu0 %v5966_v6  ;;  %v4190_v23 = vadd.f32 %v4189_v38, %v699_v32  ;;  %4492 = vmatpush1.bf16.msra.mxu1 %v6045_v31  ;;  %v4191_v18 = vpop.f32.mrb[14].mxu1  ;;  %v6095_v6 = vld [vmem:[%s8322_s1 + $0xfec] ss:$152 sps:$4 sm:$0xff]   ;;  %v6111_v32 = vld [vmem:[%s8322_s1 + $0x88] ss:$152 sps:$4 sm:$0xff]  }
 0x1dd   :  { %4659 = vst [vmem:[%s8325_s3 + $0x70] sm:$0xff] %v4188_v37  ;;  %v4192_v40 = vpop.f32.mrb[15].mxu1  ;;  %4493 = vmatprep.subr.bf16.mxu1 %v6053_v33  ;;  %v6113_v28 = vld [vmem:[%s8322_s1 + $0x8c] ss:$152 sps:$4 sm:$0xff]   ;;  %v6119_v35 = vld [vmem:[%s8322_s1 + $0x1bc] ss:$152 sps:$4 sm:$0xff]  }
 0x1de   :  { %4660 = vst [vmem:[%s8325_s3 + $0x78] sm:$0xff] %v4190_v23  ;;  %v6056_v15 = vld [vmem:[%s8322_s1 + $0x7a4] ss:$152 sps:$4 sm:$0xff]   ;;  %v6054_v38 = vld [vmem:[%s8322_s1 + $0x7a0] ss:$152 sps:$4 sm:$0xff]  }
 0x1df   :  { %4455 = vmatpush1.bf16.msra.mxu0 %v5964_v9  ;;  %v6093_v9 = vld [vmem:[%s8322_s1 + $0xfe8] ss:$152 sps:$4 sm:$0xff]   ;;  %v6062_v18 = vld [vmem:[%s8322_s1 + $0x8d4] ss:$152 sps:$4 sm:$0xff]  }
 0x1e0   :  { %4456 = vmatprep.subr.bf16.mxu0 %v5972_v10  ;;  %4494 = vmatpush1.bf16.msra.mxu1 %v6051_v39  ;;  %v6101_v10 = vld [vmem:[%s8322_s1 + $0x111c] ss:$152 sps:$4 sm:$0xff]   ;;  %v6117_v39 = vld [vmem:[%s8322_s1 + $0x1b8] ss:$152 sps:$4 sm:$0xff]   ;;  %v6125_v40 = vld [vmem:[%s8322_s1 + $0x2ec] ss:$152 sps:$4 sm:$0xff]  }
 0x1e1   :  { %4495 = vmatprep.subr.bf16.mxu1 %v6059_v41  ;;  %v6060_v41 = vld [vmem:[%s8322_s1 + $0x8d0] ss:$152 sps:$4 sm:$0xff]  }
 0x1e3   :  { %4457 = vmatpush1.bf16.msra.mxu0 %v5970_v13  ;;  %v6099_v13 = vld [vmem:[%s8322_s1 + $0x1118] ss:$152 sps:$4 sm:$0xff]  }
 0x1e4   :  { %4458 = vmatprep.subr.bf16.mxu0 %v5978_v14  ;;  %4496 = vmatpush1.bf16.msra.mxu1 %v6057_v44  ;;  %v6107_v14 = vld [vmem:[%s8322_s1 + $0x124c] ss:$152 sps:$4 sm:$0xff]   ;;  %v6131_v44 = vld [vmem:[%s8322_s1 + $0x41c] ss:$152 sps:$4 sm:$0xff]  }
 0x1e5   :  { %4497 = vmatprep.subr.bf16.mxu1 %v6065_v45  ;;  %v6066_v45 = vld [vmem:[%s8322_s1 + $0xa00] ss:$152 sps:$4 sm:$0xff]  }
 0x1e7   :  { %4459 = vmatpush1.bf16.msra.mxu0 %v5976_v20  ;;  %v6050_v20 = vld [vmem:[%s8322_s1 + $0x674] ss:$152 sps:$4 sm:$0xff]  }
 0x1e8   :  { %4460 = vmatprep.subr.bf16.mxu0 %v5984_v25  ;;  %4498 = vmatpush1.bf16.msra.mxu1 %v6063_v49  ;;  %v6105_v25 = vld [vmem:[%s8322_s1 + $0x1248] ss:$152 sps:$4 sm:$0xff]   ;;  %v6137_v49 = vld [vmem:[%s8322_s1 + $0x54c] ss:$152 sps:$4 sm:$0xff]  }
 0x1e9   :  { %4499 = vmatprep.subr.bf16.mxu1 %v6071_v51  ;;  %v6072_v51 = vld [vmem:[%s8322_s1 + $0xb30] ss:$152 sps:$4 sm:$0xff]  }
 0x1eb   :  { %4461 = vmatpush1.bf16.msra.mxu0 %v5982_v29  ;;  %v707_v29 = vrot.slane %v7951_v19, %v7059_v24 }
 0x1ec   :  { %4462 = vmatprep.subr.bf16.mxu0 %v5990_v30  ;;  %4500 = vmatpush1.bf16.msra.mxu1 %v6069_v54  ;;  %v6048_v30 = vld [vmem:[%s8322_s1 + $0x670] ss:$152 sps:$4 sm:$0xff]   ;;  %v6143_v54 = vld [vmem:[%s8322_s1 + $0x67c] ss:$152 sps:$4 sm:$0xff]  }
 0x1ed   :  { %4501 = vmatprep.subr.bf16.mxu1 %v6077_v56  ;;  %v6078_v56 = vld [vmem:[%s8322_s1 + $0xc60] ss:$152 sps:$4 sm:$0xff]  }
 0x1ef   :  { %4463 = vmatpush1.bf16.msra.mxu0 %v5988_v34 }
 0x1f0   :  { %4464 = vmatprep.subr.bf16.mxu0 %v5996_v36  ;;  %4502 = vmatpush1.bf16.msra.mxu1 %v6075_v61  ;;  %v6141_v61 = vld [vmem:[%s8322_s1 + $0x678] ss:$152 sps:$4 sm:$0xff]  }
 0x1f1   :  { %4503 = vmatprep.subr.bf16.mxu1 %v6083_v62  ;;  %v715_v62 = vrot.slane %v7951_v19, %v7146_v57 }
 0x1f3   :  { %4465 = vmatpush1.bf16.msra.mxu0 %v5994_v42  ;;  %v6068_v42 = vld [vmem:[%s8322_s1 + $0xa04] ss:$152 sps:$4 sm:$0xff]  }
 0x1f4   :  { %4466 = vmatprep.subr.bf16.mxu0 %v6002_v43  ;;  %4504 = vmatpush1.bf16.msra.mxu1 %v6081_v1  ;;  %v6123_v43 = vld [vmem:[%s8322_s1 + $0x2e8] ss:$152 sps:$4 sm:$0xff]  }
 0x1f5   :  { %4505 = vmatprep.subr.bf16.mxu1 %v6089_v2  ;;  %v6092_v2 = vld [vmem:[%s8322_s1 + $0xec4] ss:$152 sps:$4 sm:$0xff]  }
 0x1f7   :  { %4467 = vmatpush1.bf16.msra.mxu0 %v6000_v46  ;;  %v6074_v46 = vld [vmem:[%s8322_s1 + $0xb34] ss:$152 sps:$4 sm:$0xff]  }
 0x1f8   :  { %4468 = vmatprep.subr.bf16.mxu0 %v6008_v47  ;;  %4506 = vmatpush1.bf16.msra.mxu1 %v6087_v5  ;;  %v6129_v47 = vld [vmem:[%s8322_s1 + $0x418] ss:$152 sps:$4 sm:$0xff]  }
 0x1f9   :  { %4507 = vmatprep.subr.bf16.mxu1 %v6095_v6 }
 0x1fb   :  { %4469 = vmatpush1.bf16.msra.mxu0 %v6006_v52  ;;  %v6080_v52 = vld [vmem:[%s8322_s1 + $0xc64] ss:$152 sps:$4 sm:$0xff]  }
 0x1fc   :  { %4470 = vmatprep.subr.bf16.mxu0 %v6014_v53  ;;  %4508 = vmatpush1.bf16.msra.mxu1 %v6093_v9  ;;  %v6135_v53 = vld [vmem:[%s8322_s1 + $0x548] ss:$152 sps:$4 sm:$0xff]   ;;  %v6155_v9 = vld [vmem:[%s8322_s1 + $0x8dc] ss:$152 sps:$4 sm:$0xff]  }
 0x1fd   :  { %4509 = vmatprep.subr.bf16.mxu1 %v6101_v10  ;;  %v6090_v10 = vld [vmem:[%s8322_s1 + $0xec0] ss:$152 sps:$4 sm:$0xff]  }
 0x1ff   :  { %4471 = vmatpush1.bf16.msra.mxu0 %v6012_v59  ;;  %v6086_v59 = vld [vmem:[%s8322_s1 + $0xd94] ss:$152 sps:$4 sm:$0xff]  }
 0x200   :  { %4522 = vmatprep.subr.bf16.mxu0 %v6020_v60  ;;  %4510 = vmatpush1.bf16.msra.mxu1 %v6099_v13  ;;  %v711_v60 = vrot.slane %v7951_v19, %v7140_v55  ;;  %v6161_v13 = vld [vmem:[%s8322_s1 + $0xa0c] ss:$152 sps:$4 sm:$0xff]  }
 0x201   :  { %4511 = vmatprep.subr.bf16.mxu1 %v6107_v14  ;;  %v6096_v14 = vld [vmem:[%s8322_s1 + $0xff0] ss:$152 sps:$4 sm:$0xff]  }
 0x202   :  { %4473 = vmatmul.mubr.bf16.vlgmr.msra.gmra.mrb[28].mxu0 %v6402_v58 }
 0x203   :  { %4523 = vmatpush1.bf16.msra.mxu0 %v6018_v63  ;;  %4554 = vmatprep.mubr.bf16.mxu0 %v6278_v17  ;;  %v6149_v63 = vld [vmem:[%s8322_s1 + $0x7ac] ss:$152 sps:$4 sm:$0xff]  }
 0x204   :  { %4524 = vmatprep.subr.bf16.mxu0 %v6026_v0  ;;  %4512 = vmatpush1.bf16.msra.mxu1 %v6105_v25  ;;  %v6084_v0 = vld [vmem:[%s8322_s1 + $0xd90] ss:$152 sps:$4 sm:$0xff]   ;;  %v6167_v25 = vld [vmem:[%s8322_s1 + $0xb3c] ss:$152 sps:$4 sm:$0xff]  }
 0x205   :  { %4563 = vmatprep.subr.bf16.mxu1 %v6113_v28  ;;  %v6110_v28 = vld [vmem:[%s8322_s1 + $0x1254] ss:$152 sps:$4 sm:$0xff]  }
 0x207   :  { %4525 = vmatpush1.bf16.msra.mxu0 %v6024_v3  ;;  %4514 = vmatmul.mubr.bf16.vlgmr.msra.gmra.mrb[28].mxu1 %v6402_v58 }
 0x208   :  { %4526 = vmatprep.subr.bf16.mxu0 %v6032_v4  ;;  %4564 = vmatpush1.bf16.msra.mxu1 %v6111_v32  ;;  %v6171_v32 = vld [vmem:[%s8322_s1 + $0xc68] ss:$152 sps:$4 sm:$0xff]  }
 0x209   :  { %4595 = vmatprep.mubr.bf16.mxu1 %v6278_v17  ;;  %4565 = vmatprep.subr.bf16.mxu1 %v6119_v35  ;;  %v6122_v35 = vld [vmem:[%s8322_s1 + $0x1c4] ss:$152 sps:$4 sm:$0xff]  }
 0x20b   :  { %4527 = vmatpush1.bf16.msra.mxu0 %v6030_v7  ;;  %v6147_v7 = vld [vmem:[%s8322_s1 + $0x7a8] ss:$152 sps:$4 sm:$0xff]  }
 0x20c   :  { %4528 = vmatprep.subr.bf16.mxu0 %v6038_v8  ;;  %4566 = vmatpush1.bf16.msra.mxu1 %v6117_v39  ;;  %v6191_v39 = vld [vmem:[%s8322_s1 + $0xffc] ss:$152 sps:$4 sm:$0xff]  }
 0x20d   :  { %4567 = vmatprep.subr.bf16.mxu1 %v6125_v40  ;;  %v6134_v40 = vld [vmem:[%s8322_s1 + $0x424] ss:$152 sps:$4 sm:$0xff]  }
 0x20f   :  { %4529 = vmatpush1.bf16.msra.mxu0 %v6036_v11  ;;  %v6098_v11 = vld [vmem:[%s8322_s1 + $0xff4] ss:$152 sps:$4 sm:$0xff]  }
 0x210   :  { %4530 = vmatprep.subr.bf16.mxu0 %v6044_v12  ;;  %4568 = vmatpush1.bf16.msra.mxu1 %v6123_v43  ;;  %v6153_v12 = vld [vmem:[%s8322_s1 + $0x8d8] ss:$152 sps:$4 sm:$0xff]  }
 0x211   :  { %4569 = vmatprep.subr.bf16.mxu1 %v6131_v44  ;;  %v6132_v43 = vld [vmem:[%s8322_s1 + $0x420] ss:$152 sps:$4 sm:$0xff]   ;;  %v6140_v44 = vld [vmem:[%s8322_s1 + $0x554] ss:$152 sps:$4 sm:$0xff]  }
 0x213   :  { %4531 = vmatpush1.bf16.msra.mxu0 %v6042_v16  ;;  %v6104_v16 = vld [vmem:[%s8322_s1 + $0x1124] ss:$152 sps:$4 sm:$0xff]  }
 0x214   :  { %4532 = vmatprep.subr.bf16.mxu0 %v6050_v20  ;;  %4570 = vmatpush1.bf16.msra.mxu1 %v6129_v47  ;;  %v6159_v20 = vld [vmem:[%s8322_s1 + $0xa08] ss:$152 sps:$4 sm:$0xff]  }
 0x215   :  { %v4228_v31 = vpop.f32.mrb[16].mxu0  ;;  %4571 = vmatprep.subr.bf16.mxu1 %v6137_v49  ;;  %v6138_v47 = vld [vmem:[%s8322_s1 + $0x550] ss:$152 sps:$4 sm:$0xff]   ;;  %v6146_v49 = vld [vmem:[%s8322_s1 + $0x684] ss:$152 sps:$4 sm:$0xff]  }
 0x216   :  { %v4229_v33 = vadd.f32 %v4228_v31, %v703_v27  ;;  %v4230_v34 = vpop.f32.mrb[17].mxu0  ;;  %v6102_v27 = vld [vmem:[%s8322_s1 + $0x1120] ss:$152 sps:$4 sm:$0xff]   ;;  %v6116_v31 = vld [vmem:[%s8322_s1 + $0x94] ss:$152 sps:$4 sm:$0xff]  }
 0x217   :  { %v4231_v36 = vadd.f32 %v4230_v34, %v707_v29  ;;  %v4232_v37 = vpop.f32.mrb[18].mxu0  ;;  %4533 = vmatpush1.bf16.msra.mxu0 %v6048_v30  ;;  %v6165_v29 = vld [vmem:[%s8322_s1 + $0xb38] ss:$152 sps:$4 sm:$0xff]   ;;  %v6173_v30 = vld [vmem:[%s8322_s1 + $0xc6c] ss:$152 sps:$4 sm:$0xff]  }
 0x218   :  { %4661 = vst [vmem:[%s8325_s3 + $0x80] sm:$0xff] %v4229_v33  ;;  %v4233_v23 = vpop.f32.mrb[19].mxu0  ;;  %4534 = vmatprep.subr.bf16.mxu0 %v6056_v15  ;;  %4572 = vmatpush1.bf16.msra.mxu1 %v6135_v53  ;;  %v6108_v15 = vld [vmem:[%s8322_s1 + $0x1250] ss:$152 sps:$4 sm:$0xff]   ;;  %v6179_v33 = vld [vmem:[%s8322_s1 + $0xd9c] ss:$152 sps:$4 sm:$0xff]   ;;  %v723_v53 = vrot.slane %v7951_v19, %v7287_v50 }
 0x219   :  { %4662 = vst [vmem:[%s8325_s3 + $0x88] sm:$0xff] %v4231_v36  ;;  %4573 = vmatprep.subr.bf16.mxu1 %v6143_v54  ;;  %v6114_v34 = vld [vmem:[%s8322_s1 + $0x90] ss:$152 sps:$4 sm:$0xff]   ;;  %v6185_v37 = vld [vmem:[%s8322_s1 + $0xecc] ss:$152 sps:$4 sm:$0xff]  }
 0x21a   :  { %v4269_v1 = vpop.f32.mrb[16].mxu1  ;;  %v6177_v36 = vld [vmem:[%s8322_s1 + $0xd98] ss:$152 sps:$4 sm:$0xff]   ;;  %v6128_v23 = vld [vmem:[%s8322_s1 + $0x2f4] ss:$152 sps:$4 sm:$0xff]  }
 0x21b   :  { %4535 = vmatpush1.bf16.msra.mxu0 %v6054_v38  ;;  %v4270_v3 = vadd.f32 %v4269_v1, %v711_v60  ;;  %v4271_v4 = vpop.f32.mrb[17].mxu1  ;;  %v6120_v38 = vld [vmem:[%s8322_s1 + $0x1c0] ss:$152 sps:$4 sm:$0xff]  }
 0x21c   :  { %4536 = vmatprep.subr.bf16.mxu0 %v6062_v18  ;;  %v4272_v5 = vadd.f32 %v4271_v4, %v715_v62  ;;  %4574 = vmatpush1.bf16.msra.mxu1 %v6141_v61  ;;  %v4273_v6 = vpop.f32.mrb[18].mxu1  ;;  %v6183_v18 = vld [vmem:[%s8322_s1 + $0xec8] ss:$152 sps:$4 sm:$0xff]   ;;  %v6164_v4 = vld [vmem:[%s8322_s1 + $0xa14] ss:$152 sps:$4 sm:$0xff]  }
 0x21d   :  { %4663 = vst [vmem:[%s8325_s3 + $0x90] sm:$0xff] %v4270_v3  ;;  %v4274_v8 = vpop.f32.mrb[19].mxu1  ;;  %4575 = vmatprep.subr.bf16.mxu1 %v6149_v63  ;;  %v6144_v54 = vld [vmem:[%s8322_s1 + $0x680] ss:$152 sps:$4 sm:$0xff]   ;;  %v6170_v6 = vld [vmem:[%s8322_s1 + $0xb44] ss:$152 sps:$4 sm:$0xff]  }
 0x21e   :  { %4664 = vst [vmem:[%s8325_s3 + $0x98] sm:$0xff] %v4272_v5  ;;  %v6156_v3 = vld [vmem:[%s8322_s1 + $0x8e0] ss:$152 sps:$4 sm:$0xff]   ;;  %v6162_v5 = vld [vmem:[%s8322_s1 + $0xa10] ss:$152 sps:$4 sm:$0xff]  }
 0x21f   :  { %4537 = vmatpush1.bf16.msra.mxu0 %v6060_v41  ;;  %v6189_v41 = vld [vmem:[%s8322_s1 + $0xff8] ss:$152 sps:$4 sm:$0xff]   ;;  %v6176_v8 = vld [vmem:[%s8322_s1 + $0xc74] ss:$152 sps:$4 sm:$0xff]  }
 0x220   :  { %4538 = vmatprep.subr.bf16.mxu0 %v6068_v42  ;;  %4576 = vmatpush1.bf16.msra.mxu1 %v6147_v7  ;;  %v6197_v42 = vld [vmem:[%s8322_s1 + $0x112c] ss:$152 sps:$4 sm:$0xff]   ;;  %v6168_v7 = vld [vmem:[%s8322_s1 + $0xb40] ss:$152 sps:$4 sm:$0xff]  }
 0x221   :  { %4577 = vmatprep.subr.bf16.mxu1 %v6155_v9  ;;  %v6174_v9 = vld [vmem:[%s8322_s1 + $0xc70] ss:$152 sps:$4 sm:$0xff]  }
 0x223   :  { %4539 = vmatpush1.bf16.msra.mxu0 %v6066_v45  ;;  %v6195_v45 = vld [vmem:[%s8322_s1 + $0x1128] ss:$152 sps:$4 sm:$0xff]  }
 0x224   :  { %4540 = vmatprep.subr.bf16.mxu0 %v6074_v46  ;;  %4578 = vmatpush1.bf16.msra.mxu1 %v6153_v12  ;;  %v6203_v46 = vld [vmem:[%s8322_s1 + $0x125c] ss:$152 sps:$4 sm:$0xff]   ;;  %v731_v12 = vrot.slane %v7951_v19, %v7371_v26 }
 0x225   :  { %4579 = vmatprep.subr.bf16.mxu1 %v6161_v13  ;;  %v6180_v13 = vld [vmem:[%s8322_s1 + $0xda0] ss:$152 sps:$4 sm:$0xff]  }
 0x227   :  { %4541 = vmatpush1.bf16.msra.mxu0 %v6072_v51  ;;  %v6201_v51 = vld [vmem:[%s8322_s1 + $0x1258] ss:$152 sps:$4 sm:$0xff]  }
 0x228   :  { %4542 = vmatprep.subr.bf16.mxu0 %v6080_v52  ;;  %4580 = vmatpush1.bf16.msra.mxu1 %v6159_v20  ;;  %v719_v52 = vrot.slane %v7951_v19, %v7281_v48 }
 0x229   :  { %4581 = vmatprep.subr.bf16.mxu1 %v6167_v25 }
 0x22b   :  { %4543 = vmatpush1.bf16.msra.mxu0 %v6078_v56  ;;  %v6152_v56 = vld [vmem:[%s8322_s1 + $0x7b4] ss:$152 sps:$4 sm:$0xff]  }
 0x22c   :  { %4544 = vmatprep.subr.bf16.mxu0 %v6086_v59  ;;  %4582 = vmatpush1.bf16.msra.mxu1 %v6165_v29  ;;  %v6186_v29 = vld [vmem:[%s8322_s1 + $0xed0] ss:$152 sps:$4 sm:$0xff]  }
 0x22d   :  { %4583 = vmatprep.subr.bf16.mxu1 %v6173_v30  ;;  %v6194_v30 = vld [vmem:[%s8322_s1 + $0x1004] ss:$152 sps:$4 sm:$0xff]  }
 0x22f   :  { %4545 = vmatpush1.bf16.msra.mxu0 %v6084_v0  ;;  %v6150_v0 = vld [vmem:[%s8322_s1 + $0x7b0] ss:$152 sps:$4 sm:$0xff]  }
 0x230   :  { %4546 = vmatprep.subr.bf16.mxu0 %v6092_v2  ;;  %4584 = vmatpush1.bf16.msra.mxu1 %v6171_v32  ;;  %v6158_v2 = vld [vmem:[%s8322_s1 + $0x8e4] ss:$152 sps:$4 sm:$0xff]   ;;  %v6198_v32 = vld [vmem:[%s8322_s1 + $0x1130] ss:$152 sps:$4 sm:$0xff]  }
 0x231   :  { %4585 = vmatprep.subr.bf16.mxu1 %v6179_v33  ;;  %v6206_v33 = vld [vmem:[%s8322_s1 + $0x1264] ss:$152 sps:$4 sm:$0xff]  }
 0x233   :  { %4547 = vmatpush1.bf16.msra.mxu0 %v6090_v10  ;;  %v6182_v10 = vld [vmem:[%s8322_s1 + $0xda4] ss:$152 sps:$4 sm:$0xff]  }
 0x234   :  { %4548 = vmatprep.subr.bf16.mxu0 %v6098_v11  ;;  %4586 = vmatpush1.bf16.msra.mxu1 %v6177_v36  ;;  %v727_v11 = vrot.slane %v7951_v19, %v7365_v21 }
 0x235   :  { %4587 = vmatprep.subr.bf16.mxu1 %v6185_v37 }
 0x237   :  { %4549 = vmatpush1.bf16.msra.mxu0 %v6096_v14 }
 0x238   :  { %4550 = vmatprep.subr.bf16.mxu0 %v6104_v16  ;;  %4588 = vmatpush1.bf16.msra.mxu1 %v6183_v18  ;;  %v6188_v16 = vld [vmem:[%s8322_s1 + $0xed4] ss:$152 sps:$4 sm:$0xff]  }
 0x239   :  { %4589 = vmatprep.subr.bf16.mxu1 %v6191_v39 }
 0x23b   :  { %4551 = vmatpush1.bf16.msra.mxu0 %v6102_v27 }
 0x23c   :  { %4552 = vmatprep.subr.bf16.mxu0 %v6110_v28  ;;  %4590 = vmatpush1.bf16.msra.mxu1 %v6189_v41 }
 0x23d   :  { %4591 = vmatprep.subr.bf16.mxu1 %v6197_v42 }
 0x23f   :  { %4553 = vmatpush1.bf16.msra.mxu0 %v6108_v15  ;;  %v6192_v15 = vld [vmem:[%s8322_s1 + $0x1000] ss:$152 sps:$4 sm:$0xff]  }
 0x240   :  { %4604 = vmatprep.subr.bf16.mxu0 %v6116_v31  ;;  %4592 = vmatpush1.bf16.msra.mxu1 %v6195_v45  ;;  %v6200_v31 = vld [vmem:[%s8322_s1 + $0x1134] ss:$152 sps:$4 sm:$0xff]  }
 0x241   :  { %4593 = vmatprep.subr.bf16.mxu1 %v6203_v46 }
 0x242   :  { %4555 = vmatmul.mubr.bf16.vlgmr.msra.gmra.mrb[32].mxu0 %v6402_v58 }
 0x243   :  { %4605 = vmatpush1.bf16.msra.mxu0 %v6114_v34  ;;  %4636 = vmatprep.mubr.bf16.mxu0 %v6278_v17  ;;  %v6126_v17 = vld [vmem:[%s8322_s1 + $0x2f0] ss:$152 sps:$4 sm:$0xff]   ;;  %v6204_v34 = vld [vmem:[%s8322_s1 + $0x1260] ss:$152 sps:$4 sm:$0xff]  }
 0x244   :  { %4606 = vmatprep.subr.bf16.mxu0 %v6122_v35  ;;  %4594 = vmatpush1.bf16.msra.mxu1 %v6201_v51  ;;  %v629_v35 = vld [vmem:[%s8324_s2 + $0x18] sm:$0xff] }
 0x245   :  { %v735_v36 = vrot.slane %v629_v35, %v7051_v22  ;;  %v739_v37 = vrot.slane %v629_v35, %v7059_v24  ;;  %v747_v41 = vrot.slane %v629_v35, %v7146_v57  ;;  %v755_v51 = vrot.slane %v629_v35, %v7287_v50 }
 0x247   :  { %4607 = vmatpush1.bf16.msra.mxu0 %v6120_v38  ;;  %4596 = vmatmul.mubr.bf16.vlgmr.msra.gmra.mrb[32].mxu1 %v6402_v58 }
 0x248   :  { %4608 = vmatprep.subr.bf16.mxu0 %v6128_v23 }
 0x24b   :  { %4609 = vmatpush1.bf16.msra.mxu0 %v6126_v17 }
 0x24c   :  { %4610 = vmatprep.subr.bf16.mxu0 %v6134_v40 }
 0x24f   :  { %4611 = vmatpush1.bf16.msra.mxu0 %v6132_v43 }
 0x250   :  { %4612 = vmatprep.subr.bf16.mxu0 %v6140_v44 }
 0x253   :  { %4613 = vmatpush1.bf16.msra.mxu0 %v6138_v47 }
 0x254   :  { %4614 = vmatprep.subr.bf16.mxu0 %v6146_v49  ;;  %v751_v49 = vrot.slane %v629_v35, %v7281_v48 }
 0x255   :  { %v4310_v59 = vpop.f32.mrb[20].mxu0 }
 0x256   :  { %v4311_v60 = vadd.f32 %v4310_v59, %v719_v52  ;;  %v4312_v61 = vpop.f32.mrb[21].mxu0 }
 0x257   :  { %v4313_v62 = vadd.f32 %v4312_v61, %v723_v53  ;;  %v4314_v63 = vpop.f32.mrb[22].mxu0  ;;  %4615 = vmatpush1.bf16.msra.mxu0 %v6144_v54  ;;  %v759_v61 = vrot.slane %v629_v35, %v7365_v21  ;;  %v630_v21 = vld [vmem:[%s8324_s2 + $0x20] sm:$0x3f] }
 0x258   :  { %4665 = vst [vmem:[%s8325_s3 + $0xa0] sm:$0xff] %v4311_v60  ;;  %v4315_v1 = vpop.f32.mrb[23].mxu0  ;;  %4616 = vmatprep.subr.bf16.mxu0 %v6152_v56 }
 0x259   :  { %4666 = vst [vmem:[%s8325_s3 + $0xa8] sm:$0xff] %v4313_v62  ;;  %v763_v62 = vrot.slane %v629_v35, %v7371_v26  ;;  %v767_v26 = vrot.slane %v630_v21, %v7051_v22  ;;  %v779_v22 = vrot.slane %v630_v21, %v7146_v57 }
 0x25a   :  { %v4351_v14 = vpop.f32.mrb[20].mxu1 }
 0x25b   :  { %4617 = vmatpush1.bf16.msra.mxu0 %v6150_v0  ;;  %v4352_v20 = vadd.f32 %v4351_v14, %v727_v11  ;;  %v4353_v25 = vpop.f32.mrb[21].mxu1 }
 0x25c   :  { %4618 = vmatprep.subr.bf16.mxu0 %v6158_v2  ;;  %v4354_v27 = vadd.f32 %v4353_v25, %v731_v12  ;;  %v4355_v28 = vpop.f32.mrb[22].mxu1  ;;  %v775_v12 = vrot.slane %v630_v21, %v7140_v55 }
 0x25d   :  { %4667 = vst [vmem:[%s8325_s3 + $0xb0] sm:$0xff] %v4352_v20  ;;  %v4356_v19 = vpop.f32.mrb[23].mxu1 }
 0x25e   :  { %4668 = vst [vmem:[%s8325_s3 + $0xb8] sm:$0xff] %v4354_v27  ;;  %v783_v27 = vrot.slane %v630_v21, %v7281_v48 }
 0x25f   :  { %4619 = vmatpush1.bf16.msra.mxu0 %v6156_v3 }
 0x260   :  { %4620 = vmatprep.subr.bf16.mxu0 %v6164_v4 }
 0x263   :  { %4621 = vmatpush1.bf16.msra.mxu0 %v6162_v5  ;;  %v771_v5 = vrot.slane %v630_v21, %v7059_v24 }
 0x264   :  { %4622 = vmatprep.subr.bf16.mxu0 %v6170_v6 }
 0x267   :  { %4623 = vmatpush1.bf16.msra.mxu0 %v6168_v7 }
 0x268   :  { %4624 = vmatprep.subr.bf16.mxu0 %v6176_v8 }
 0x26b   :  { %4625 = vmatpush1.bf16.msra.mxu0 %v6174_v9 }
 0x26c   :  { %4626 = vmatprep.subr.bf16.mxu0 %v6182_v10 }
 0x26f   :  { %4627 = vmatpush1.bf16.msra.mxu0 %v6180_v13 }
 0x270   :  { %4628 = vmatprep.subr.bf16.mxu0 %v6188_v16 }
 0x273   :  { %4629 = vmatpush1.bf16.msra.mxu0 %v6186_v29 }
 0x274   :  { %4630 = vmatprep.subr.bf16.mxu0 %v6194_v30 }
 0x277   :  { %4631 = vmatpush1.bf16.msra.mxu0 %v6192_v15 }
 0x278   :  { %4632 = vmatprep.subr.bf16.mxu0 %v6200_v31 }
 0x27b   :  { %4633 = vmatpush1.bf16.msra.mxu0 %v6198_v32 }
 0x27c   :  { %4634 = vmatprep.subr.bf16.mxu0 %v6206_v33 }
 0x27f   :  { %4635 = vmatpush1.bf16.msra.mxu0 %v6204_v34 }
 0x282   :  { %4637 = vmatmul.mubr.bf16.vlgmr.msra.gmra.mrb[36].mxu0 %v6402_v58  ;;  %v743_v58 = vrot.slane %v629_v35, %v7140_v55  ;;  %v787_v55 = vrot.slane %v630_v21, %v7287_v50 }
 0x295   :  { %v4392_v38 = vpop.f32.mrb[24].mxu0 }
 0x296   :  { %v4393_v23 = vadd.f32 %v4392_v38, %v735_v36  ;;  %v4394_v18 = vpop.f32.mrb[25].mxu0 }
 0x297   :  { %v4395_v39 = vadd.f32 %v4394_v18, %v739_v37  ;;  %v4396_v17 = vpop.f32.mrb[26].mxu0 }
 0x298   :  { %4669 = vst [vmem:[%s8325_s3 + $0xc0] sm:$0xff] %v4393_v23  ;;  %v4397_v40 = vpop.f32.mrb[27].mxu0 }
 0x299   :  { %4670 = vst [vmem:[%s8325_s3 + $0xc8] sm:$0xff] %v4395_v39 }
 0x29a   :  { %v4433_v42 = vpop.f32.mrb[24].mxu1 }
 0x29b   :  { %v4434_v43 = vadd.f32 %v4433_v42, %v743_v58  ;;  %v4435_v44 = vpop.f32.mrb[25].mxu1 }
 0x29c   :  { %v4436_v45 = vadd.f32 %v4435_v44, %v747_v41  ;;  %v4437_v46 = vpop.f32.mrb[26].mxu1 }
 0x29d   :  { %4671 = vst [vmem:[%s8325_s3 + $0xd0] sm:$0xff] %v4434_v43  ;;  %v4438_v47 = vpop.f32.mrb[27].mxu1 }
 0x29e   :  { %4672 = vst [vmem:[%s8325_s3 + $0xd8] sm:$0xff] %v4436_v45 }
 0x2d5   :  { %v4474_v52 = vpop.f32.mrb[28].mxu0 }
 0x2d6   :  { %v4475_v53 = vadd.f32 %v4474_v52, %v751_v49  ;;  %v4476_v54 = vpop.f32.mrb[29].mxu0 }
 0x2d7   :  { %v4477_v56 = vadd.f32 %v4476_v54, %v755_v51  ;;  %v4478_v59 = vpop.f32.mrb[30].mxu0 }
 0x2d8   :  { %4673 = vst [vmem:[%s8325_s3 + $0xe0] sm:$0xff] %v4475_v53  ;;  %v4479_v60 = vpop.f32.mrb[31].mxu0 }
 0x2d9   :  { %4674 = vst [vmem:[%s8325_s3 + $0xe8] sm:$0xff] %v4477_v56 }
 0x2da   :  { %v4515_v63 = vpop.f32.mrb[28].mxu1 }
 0x2db   :  { %v4516_v0 = vadd.f32 %v4515_v63, %v759_v61  ;;  %v4517_v1 = vpop.f32.mrb[29].mxu1 }
 0x2dc   :  { %v4518_v2 = vadd.f32 %v4517_v1, %v763_v62  ;;  %v4519_v3 = vpop.f32.mrb[30].mxu1 }
 0x2dd   :  { %4675 = vst [vmem:[%s8325_s3 + $0xf0] sm:$0xff] %v4516_v0  ;;  %v4520_v4 = vpop.f32.mrb[31].mxu1 }
 0x2de   :  { %4676 = vst [vmem:[%s8325_s3 + $0xf8] sm:$0xff] %v4518_v2 }
 0x315   :  { %v4556_v6 = vpop.f32.mrb[32].mxu0 }
 0x316   :  { %v4557_v7 = vadd.f32 %v4556_v6, %v767_v26  ;;  %v4558_v8 = vpop.f32.mrb[33].mxu0 }
 0x317   :  { %v4559_v9 = vadd.f32 %v4558_v8, %v771_v5  ;;  %v4560_v10 = vpop.f32.mrb[34].mxu0 }
 0x318   :  { %4677 = vst [vmem:[%s8325_s3 + $0x100] sm:$0xff] %v4557_v7  ;;  %v4561_v11 = vpop.f32.mrb[35].mxu0 }
 0x319   :  { %4678 = vst [vmem:[%s8325_s3 + $0x108] sm:$0xff] %v4559_v9 }
 0x31a   :  { %v4597_v13 = vpop.f32.mrb[32].mxu1 }
 0x31b   :  { %v4598_v24 = vadd.f32 %v4597_v13, %v775_v12  ;;  %v4599_v14 = vpop.f32.mrb[33].mxu1 }
 0x31c   :  { %v4600_v16 = vadd.f32 %v4599_v14, %v779_v22  ;;  %v4601_v20 = vpop.f32.mrb[34].mxu1 }
 0x31d   :  { %4679 = vst [vmem:[%s8325_s3 + $0x110] sm:$0xff] %v4598_v24  ;;  %v4602_v25 = vpop.f32.mrb[35].mxu1 }
 0x31e   :  { %4680 = vst [vmem:[%s8325_s3 + $0x118] sm:$0xff] %v4600_v16 }
 0x355   :  { %v4638_v28 = vpop.f32.mrb[36].mxu0 }
 0x356   :  { %v4639_v57 = vadd.f32 %v4638_v28, %v783_v27  ;;  %v4640_v19 = vpop.f32.mrb[37].mxu0 }
 0x357   :  { %v4641_v29 = vadd.f32 %v4640_v19, %v787_v55  ;;  %v4642_v30 = vpop.f32.mrb[38].mxu0 }
 0x358   :  { %4681 = vst [vmem:[%s8325_s3 + $0x120] sm:$0xff] %v4639_v57  ;;  %v4643_v15 = vpop.f32.mrb[39].mxu0 }
 0x359   :  { %4682 = vst [vmem:[%s8325_s3 + $0x128] sm:$0xff] %v4641_v29 }

</bundles_post_ra>
